<compile_context>
chip_gen: v7x
topology: tpu7x:2x2x1
jax: 0.10.0
libtpu: 0.0.40
codegen_flags: <defaults>
</compile_context>

<pallas_src>
import functools
import math

import jax
import jax.numpy as jnp
from jax.experimental import pallas as pl
from jax.experimental.pallas import tpu as pltpu

_NEG_SLOPE = 0.01     # F.leaky_relu / nn.LeakyReLU default
_LN_EPS = 1e-5        # nn.LayerNorm default

_VMEM_SPEC = pl.BlockSpec(memory_space=pltpu.MemorySpace.VMEM)


# ----------------------------------------------------------------------------
# Single fused kernel for the whole forward pass
# ----------------------------------------------------------------------------
def _vnn_fused_kernel(treedef, has_token, use_var, *refs):
    obs_ref = refs[0]
    nxt = 1
    token_ref = None
    if has_token:
        token_ref = refs[nxt]
        nxt += 1
    mu_ref = refs[-1]
    p = jax.tree_util.tree_unflatten(treedef, refs[nxt:-1])

    def linear(x, w_ref, b_ref=None):
        y = jnp.dot(x, w_ref[...], preferred_element_type=jnp.float32)
        if b_ref is not None:
            y = y + b_ref[...]
        return y

    def layer_norm(x, gamma_beta):
        g_ref, b_ref = gamma_beta
        m = jnp.mean(x, axis=-1, keepdims=True)
        v = jnp.mean((x - m) ** 2, axis=-1, keepdims=True)
        return (x - m) * jax.lax.rsqrt(v + _LN_EPS) * g_ref[...] + b_ref[...]

    def leaky(x):
        return jnp.where(x >= 0, x, _NEG_SLOPE * x)

    obs = obs_ref[...]

    # ---- fc1 as partial matmuls over the row-split weight (no concat) -------
    h = linear(obs, p["fc1_w_obs"]) + p["fc1_b"][...]
    if has_token:
        (w_t1, b_t1), ln_t1, (w_t2, b_t2), ln_t2 = p["token_proj"]
        t = layer_norm(jnp.tanh(linear(token_ref[...], w_t1, b_t1)), ln_t1)
        t = layer_norm(jnp.tanh(linear(t, w_t2, b_t2)), ln_t2)
        h = h + linear(t, p["fc1_w_tok"])

    x1 = leaky(layer_norm(h, p["ln1"]))                        # (B, 32)
    x2 = leaky(layer_norm(linear(x1, *p["fc2"]), p["ln2"]))    # (B, 64)
    x3 = leaky(layer_norm(linear(x2, *p["fc3"]), p["ln3"]))    # (B, 128)
    x_main = linear(x3, *p["out"])                             # (B, A)

    if use_var:
        n = obs.shape[0]

        def batch_var_row(x):                                  # unbiased, (1, F)
            m = jnp.mean(x, axis=0, keepdims=True)
            v = jnp.sum((x - m) ** 2, axis=0, keepdims=True) / (n - 1)
            return jnp.where(jnp.isnan(v), 0.0, v)             # nan_to_num(nan=0)

        def run_head(v, layers):
            *hidden, last = layers
            for (w, b, g, be) in hidden:
                v = layer_norm(leaky(linear(v, w, b)), (g, be))
            return linear(v, *last)

        o1 = run_head(batch_var_row(x1), p["vh1"])             # (1, A)
        o2 = run_head(batch_var_row(x2), p["vh2"])             # (1, A)
        o3 = run_head(batch_var_row(x3), p["vh3"])             # (1, A)

        # act_net1 on [x_main || o1 || o2 || o3] via partial matmuls; the
        # (1, 310) variance contribution is computed ONCE and broadcast.
        w_m, w_o1, w_o2, w_o3 = p["a1_w"]
        var_contrib = linear(o1, w_o1) + linear(o2, w_o2) + linear(o3, w_o3)
        pre = linear(x_main, w_m) + p["a1_b"][...] + var_contrib
        a = leaky(layer_norm(pre, p["a1_ln"]))                 # (B, 310)
        # TODO(synk): nn.Dropout(0.1) is identity in eval mode; training-mode
        # stochastic dropout is not implemented.
        a = leaky(layer_norm(linear(a, *p["a2"]), p["a2_ln"])) # (B, 155)
        mu = jnp.tanh(linear(a, *p["a3"]))                     # (B, A)
    else:
        mu = jnp.tanh(x_main)

    # torch.nan_to_num(mu, nan=0.0): NaN -> 0, +/-inf -> finite extremes.
    mu = jnp.where(jnp.isnan(mu), 0.0, mu)
    fmax = jnp.finfo(jnp.float32).max
    mu = jnp.clip(mu, -fmax, fmax)
    mu_ref[...] = mu


def enhanced_vnn_forward(params, obs, token=None):
    B, obs_dim = obs.shape
    num_act = params["out"][0].shape[1]
    has_token = token is not None
    use_var = B > 1

    # Build the kernel-parameter pytree; large concatenated-input weights are
    # pre-split by rows (trace-time slices of tiny arrays) so the kernel never
    # needs jnp.concatenate.
    w_fc1, b_fc1 = params["fc1"]
    kp = {
        "fc1_w_obs": w_fc1[:obs_dim],
        "fc1_b": b_fc1,
        "ln1": params["norm1"],
        "fc2": params["fc2"],
        "ln2": params["norm2"],
        "fc3": params["fc3"],
        "ln3": params["norm3"],
        "out": params["out"],
    }
    if has_token:
        kp["fc1_w_tok"] = w_fc1[obs_dim:]
        kp["token_proj"] = params["token_proj"]
    if use_var:
        kp["vh1"] = params["var_head1"]
        kp["vh2"] = params["var_head2"]
        kp["vh3"] = params["var_head3"]
        wa1, ba1 = params["act_net1"]
        A = num_act
        kp["a1_w"] = tuple(wa1[i * A:(i + 1) * A] for i in range(4))
        kp["a1_b"] = ba1
        kp["a1_ln"] = params["norm_act1"]
        kp["a2"] = params["act_net2"]
        kp["a2_ln"] = params["norm_act2"]
        kp["a3"] = params["act_net3"]

    leaves, treedef = jax.tree_util.tree_flatten(kp)
    args = [obs] + ([token] if has_token else []) + list(leaves)

    kernel = functools.partial(_vnn_fused_kernel, treedef, has_token, use_var)
    mu = pl.pallas_call(
        kernel,
        out_shape=jax.ShapeDtypeStruct((B, num_act), jnp.float32),
        in_specs=[_VMEM_SPEC] * len(args),
        out_specs=_VMEM_SPEC,
    )(*args)

    # std = softplus(log_std) + 0.001 with torch.nan_to_num(nan=1, posinf=10,
    # neginf=0.001) — a (num_act,) elementwise op, so plain jnp (no kernel).
    std = jax.nn.softplus(params["log_std"]) + 0.001
    std = jnp.nan_to_num(std, nan=1.0, posinf=10.0, neginf=0.001).reshape(-1)
    # torch.distributions.Normal(mu, std) is returned as its (mu, std) params.
    return mu, std


# ----------------------------------------------------------------------------
# Pure-jnp reference (for correctness check)
# ----------------------------------------------------------------------------
def reference_forward(params, obs, token=None):
    def lin(x, wb):
        w, b = wb
        return x @ w + b

    def lnorm(x, gb):
        g, be = gb
        m = jnp.mean(x, -1, keepdims=True)
        v = jnp.mean((x - m) ** 2, -1, keepdims=True)
        return (x - m) * jax.lax.rsqrt(v + _LN_EPS) * g + be

    def leaky(x):
        return jnp.where(x >= 0, x, _NEG_SLOPE * x)

    if token is not None:
        (w1, b1), l1, (w2, b2), l2 = params["token_proj"]
        t = lnorm(jnp.tanh(token @ w1 + b1), l1)
        t = lnorm(jnp.tanh(t @ w2 + b2), l2)
        obs = jnp.concatenate([obs, t], axis=1)
    x1 = leaky(lnorm(lin(obs, params["fc1"]), params["norm1"]))
    x2 = leaky(lnorm(lin(x1, params["fc2"]), params["norm2"]))
    x3 = leaky(lnorm(lin(x2, params["fc3"]), params["norm3"]))
    x_main = lin(x3, params["out"])
    B = obs.shape[0]
    if B > 1:
        def bvar(x):
            v = jnp.var(x, axis=0, keepdims=True, ddof=1)
            return jnp.broadcast_to(jnp.nan_to_num(v, nan=0.0), (B, x.shape[1]))

        def head(v, layers):
            *hidden, last = layers
            for (w, b, g, be) in hidden:
                v = lnorm(leaky(v @ w + b), (g, be))
            w, b = last
            return v @ w + b

        o1 = head(bvar(x1), params["var_head1"])
        o2 = head(bvar(x2), params["var_head2"])
        o3 = head(bvar(x3), params["var_head3"])
        combined = jnp.concatenate([x_main, o1, o2, o3], axis=1)
        a = leaky(lnorm(lin(combined, params["act_net1"]), params["norm_act1"]))
        a = leaky(lnorm(lin(a, params["act_net2"]), params["norm_act2"]))
        mu = jnp.tanh(lin(a, params["act_net3"]))
    else:
        mu = jnp.tanh(x_main)
    mu = jnp.nan_to_num(mu, nan=0.0)
    std = jax.nn.softplus(params["log_std"]) + 0.001
    std = jnp.nan_to_num(std, nan=1.0, posinf=10.0, neginf=0.001).reshape(-1)
    return mu, std


# ----------------------------------------------------------------------------
# Parameter initialization (deterministic, PyTorch-Linear-like uniform init)
# ----------------------------------------------------------------------------
def init_params(key, num_obs, num_act, token_dim=4):
    keys = iter(jax.random.split(key, 64))

    def linear(fan_in, fan_out):
        k1, k2 = jax.random.split(next(keys))
        bound = 1.0 / math.sqrt(fan_in)
        w = jax.random.uniform(k1, (fan_in, fan_out), jnp.float32, -bound, bound)
        b = jax.random.uniform(k2, (1, fan_out), jnp.float32, -bound, bound)
        return w, b

    def ln(dim):
        return jnp.ones((1, dim), jnp.float32), jnp.zeros((1, dim), jnp.float32)

    def head(dims):
        layers = []
        for i in range(len(dims) - 1):
            w, b = linear(dims[i], dims[i + 1])
            if i < len(dims) - 2:
                g, be = ln(dims[i + 1])
                layers.append((w, b, g, be))
            else:
                layers.append((w, b))
        return layers

    td = token_dim
    params = {
        "token_proj": [linear(td, 2 * td), ln(2 * td), linear(2 * td, td), ln(td)],
        "fc1": linear(num_obs + td, 32), "norm1": ln(32),
        "fc2": linear(32, 64),           "norm2": ln(64),
        "fc3": linear(64, 128),          "norm3": ln(128),
        "out": linear(128, num_act),
        "var_head1": head([32, 64, 128, 164, num_act]),
        "var_head2": head([64, 128, 164, 186, num_act]),
        "var_head3": head([128, 164, 186, num_act]),
        "act_net1": linear(num_act * 4, 310), "norm_act1": ln(310),
        "act_net2": linear(310, 155),         "norm_act2": ln(155),
        "act_net3": linear(155, num_act),
        "log_std": jnp.zeros((1, num_act), jnp.float32),
    }
    return params


# ----------------------------------------------------------------------------
if __name__ == "__main__":
    num_obs, num_act, token_dim = 8, 4, 4
    batch = 2

    key = jax.random.PRNGKey(0)
    pkey, okey, tkey = jax.random.split(key, 3)

    params = init_params(pkey, num_obs, num_act, token_dim)
    obs = jax.random.normal(okey, (batch, num_obs), jnp.float32)
    token = jax.random.normal(tkey, (batch, token_dim), jnp.float32)

    # batch > 1 path (variance heads + act_net active)
    mu, std = enhanced_vnn_forward(params, obs, token)
    jax.block_until_ready((mu, std))
    mu_ref, std_ref = reference_forward(params, obs, token)
    assert mu.shape == (batch, num_act)
    assert std.shape == (num_act,)
    assert bool(jnp.allclose(mu, mu_ref, atol=2e-3, rtol=2e-3))
    assert bool(jnp.allclose(std, std_ref, atol=1e-6))

    # batch == 1 path (mu = tanh(x_main))
    mu1, std1 = enhanced_vnn_forward(params, obs[:1], token[:1])
    jax.block_until_ready((mu1, std1))
    mu1_ref, _ = reference_forward(params, obs[:1], token[:1])
    assert mu1.shape == (1, num_act)
    assert bool(jnp.allclose(mu1, mu1_ref, atol=2e-3, rtol=2e-3))

    print("KERNEL_OK")
</pallas_src>

<mosaic_0001>
module attributes {stable_mosaic.version = 11 : i64} {
  func.func @_vnn_fused_kernel(%arg0: memref<2x8xf32, #tpu.memory_space<vmem>>, %arg1: memref<2x4xf32, #tpu.memory_space<vmem>>, %arg2: memref<1x310xf32, #tpu.memory_space<vmem>>, %arg3: memref<1x310xf32, #tpu.memory_space<vmem>>, %arg4: memref<1x310xf32, #tpu.memory_space<vmem>>, %arg5: memref<4x310xf32, #tpu.memory_space<vmem>>, %arg6: memref<4x310xf32, #tpu.memory_space<vmem>>, %arg7: memref<4x310xf32, #tpu.memory_space<vmem>>, %arg8: memref<4x310xf32, #tpu.memory_space<vmem>>, %arg9: memref<310x155xf32, #tpu.memory_space<vmem>>, %arg10: memref<1x155xf32, #tpu.memory_space<vmem>>, %arg11: memref<1x155xf32, #tpu.memory_space<vmem>>, %arg12: memref<1x155xf32, #tpu.memory_space<vmem>>, %arg13: memref<155x4xf32, #tpu.memory_space<vmem>>, %arg14: memref<1x4xf32, #tpu.memory_space<vmem>>, %arg15: memref<1x32xf32, #tpu.memory_space<vmem>>, %arg16: memref<8x32xf32, #tpu.memory_space<vmem>>, %arg17: memref<4x32xf32, #tpu.memory_space<vmem>>, %arg18: memref<32x64xf32, #tpu.memory_space<vmem>>, %arg19: memref<1x64xf32, #tpu.memory_space<vmem>>, %arg20: memref<64x128xf32, #tpu.memory_space<vmem>>, %arg21: memref<1x128xf32, #tpu.memory_space<vmem>>, %arg22: memref<1x32xf32, #tpu.memory_space<vmem>>, %arg23: memref<1x32xf32, #tpu.memory_space<vmem>>, %arg24: memref<1x64xf32, #tpu.memory_space<vmem>>, %arg25: memref<1x64xf32, #tpu.memory_space<vmem>>, %arg26: memref<1x128xf32, #tpu.memory_space<vmem>>, %arg27: memref<1x128xf32, #tpu.memory_space<vmem>>, %arg28: memref<128x4xf32, #tpu.memory_space<vmem>>, %arg29: memref<1x4xf32, #tpu.memory_space<vmem>>, %arg30: memref<4x8xf32, #tpu.memory_space<vmem>>, %arg31: memref<1x8xf32, #tpu.memory_space<vmem>>, %arg32: memref<1x8xf32, #tpu.memory_space<vmem>>, %arg33: memref<1x8xf32, #tpu.memory_space<vmem>>, %arg34: memref<8x4xf32, #tpu.memory_space<vmem>>, %arg35: memref<1x4xf32, #tpu.memory_space<vmem>>, %arg36: memref<1x4xf32, #tpu.memory_space<vmem>>, %arg37: memref<1x4xf32, #tpu.memory_space<vmem>>, %arg38: memref<32x64xf32, #tpu.memory_space<vmem>>, %arg39: memref<1x64xf32, #tpu.memory_space<vmem>>, %arg40: memref<1x64xf32, #tpu.memory_space<vmem>>, %arg41: memref<1x64xf32, #tpu.memory_space<vmem>>, %arg42: memref<64x128xf32, #tpu.memory_space<vmem>>, %arg43: memref<1x128xf32, #tpu.memory_space<vmem>>, %arg44: memref<1x128xf32, #tpu.memory_space<vmem>>, %arg45: memref<1x128xf32, #tpu.memory_space<vmem>>, %arg46: memref<128x164xf32, #tpu.memory_space<vmem>>, %arg47: memref<1x164xf32, #tpu.memory_space<vmem>>, %arg48: memref<1x164xf32, #tpu.memory_space<vmem>>, %arg49: memref<1x164xf32, #tpu.memory_space<vmem>>, %arg50: memref<164x4xf32, #tpu.memory_space<vmem>>, %arg51: memref<1x4xf32, #tpu.memory_space<vmem>>, %arg52: memref<64x128xf32, #tpu.memory_space<vmem>>, %arg53: memref<1x128xf32, #tpu.memory_space<vmem>>, %arg54: memref<1x128xf32, #tpu.memory_space<vmem>>, %arg55: memref<1x128xf32, #tpu.memory_space<vmem>>, %arg56: memref<128x164xf32, #tpu.memory_space<vmem>>, %arg57: memref<1x164xf32, #tpu.memory_space<vmem>>, %arg58: memref<1x164xf32, #tpu.memory_space<vmem>>, %arg59: memref<1x164xf32, #tpu.memory_space<vmem>>, %arg60: memref<164x186xf32, #tpu.memory_space<vmem>>, %arg61: memref<1x186xf32, #tpu.memory_space<vmem>>, %arg62: memref<1x186xf32, #tpu.memory_space<vmem>>, %arg63: memref<1x186xf32, #tpu.memory_space<vmem>>, %arg64: memref<186x4xf32, #tpu.memory_space<vmem>>, %arg65: memref<1x4xf32, #tpu.memory_space<vmem>>, %arg66: memref<128x164xf32, #tpu.memory_space<vmem>>, %arg67: memref<1x164xf32, #tpu.memory_space<vmem>>, %arg68: memref<1x164xf32, #tpu.memory_space<vmem>>, %arg69: memref<1x164xf32, #tpu.memory_space<vmem>>, %arg70: memref<164x186xf32, #tpu.memory_space<vmem>>, %arg71: memref<1x186xf32, #tpu.memory_space<vmem>>, %arg72: memref<1x186xf32, #tpu.memory_space<vmem>>, %arg73: memref<1x186xf32, #tpu.memory_space<vmem>>, %arg74: memref<186x4xf32, #tpu.memory_space<vmem>>, %arg75: memref<1x4xf32, #tpu.memory_space<vmem>>, %arg76: memref<2x4xf32, #tpu.memory_space<vmem>>) attributes {dimension_semantics = [], scalar_prefetch = 0 : i64, scratch_operands = 0 : i64, tpu.core_type = #tpu.core_type<tc>} {
    %c0 = arith.constant 0 : index
    %c0_0 = arith.constant 0 : index
    %0 = vector.load %arg0[%c0, %c0_0] : memref<2x8xf32, #tpu.memory_space<vmem>>, vector<2x8xf32>
    %c0_1 = arith.constant 0 : index
    %c0_2 = arith.constant 0 : index
    %1 = vector.load %arg16[%c0_1, %c0_2] : memref<8x32xf32, #tpu.memory_space<vmem>>, vector<8x32xf32>
    %cst = arith.constant dense<0.000000e+00> : vector<2x32xf32>
    %2 = tpu.matmul %0, %1, %cst {dimension_numbers = #tpu.dot_dimension_numbers<[1], [0], [0], [1], [0, 0, 1, 1], [], []>} : vector<2x8xf32>, vector<8x32xf32>, vector<2x32xf32> -> vector<2x32xf32>
    %c0_3 = arith.constant 0 : index
    %c0_4 = arith.constant 0 : index
    %3 = vector.load %arg15[%c0_3, %c0_4] : memref<1x32xf32, #tpu.memory_space<vmem>>, vector<1x32xf32>
    %4 = vector.broadcast %3 : vector<1x32xf32> to vector<2x32xf32>
    %5 = arith.addf %2, %4 : vector<2x32xf32>
    %c0_5 = arith.constant 0 : index
    %c0_6 = arith.constant 0 : index
    %6 = vector.load %arg1[%c0_5, %c0_6] : memref<2x4xf32, #tpu.memory_space<vmem>>, vector<2x4xf32>
    %c0_7 = arith.constant 0 : index
    %c0_8 = arith.constant 0 : index
    %7 = vector.load %arg30[%c0_7, %c0_8] : memref<4x8xf32, #tpu.memory_space<vmem>>, vector<4x8xf32>
    %cst_9 = arith.constant dense<0.000000e+00> : vector<2x8xf32>
    %8 = tpu.matmul %6, %7, %cst_9 {dimension_numbers = #tpu.dot_dimension_numbers<[1], [0], [0], [1], [0, 0, 1, 1], [], []>} : vector<2x4xf32>, vector<4x8xf32>, vector<2x8xf32> -> vector<2x8xf32>
    %c0_10 = arith.constant 0 : index
    %c0_11 = arith.constant 0 : index
    %9 = vector.load %arg31[%c0_10, %c0_11] : memref<1x8xf32, #tpu.memory_space<vmem>>, vector<1x8xf32>
    %10 = vector.broadcast %9 : vector<1x8xf32> to vector<2x8xf32>
    %11 = arith.addf %8, %10 : vector<2x8xf32>
    %12 = math.tanh %11 : vector<2x8xf32>
    %cst_12 = arith.constant dense<0.000000e+00> : vector<2xf32>
    %13 = vector.multi_reduction <add>, %12, %cst_12 [1] : vector<2x8xf32> to vector<2xf32>
    %14 = vector.shape_cast %13 : vector<2xf32> to vector<2x1xf32>
    %cst_13 = arith.constant 8.000000e+00 : f32
    %15 = vector.broadcast %cst_13 : f32 to vector<2x1xf32>
    %16 = arith.divf %14, %15 : vector<2x1xf32>
    %17 = vector.broadcast %16 : vector<2x1xf32> to vector<2x8xf32>
    %18 = arith.subf %12, %17 : vector<2x8xf32>
    %19 = arith.mulf %18, %18 : vector<2x8xf32>
    %cst_14 = arith.constant dense<0.000000e+00> : vector<2xf32>
    %20 = vector.multi_reduction <add>, %19, %cst_14 [1] : vector<2x8xf32> to vector<2xf32>
    %21 = vector.shape_cast %20 : vector<2xf32> to vector<2x1xf32>
    %cst_15 = arith.constant 8.000000e+00 : f32
    %22 = vector.broadcast %cst_15 : f32 to vector<2x1xf32>
    %23 = arith.divf %21, %22 : vector<2x1xf32>
    %24 = vector.broadcast %16 : vector<2x1xf32> to vector<2x8xf32>
    %25 = arith.subf %12, %24 : vector<2x8xf32>
    %cst_16 = arith.constant 9.99999974E-6 : f32
    %26 = vector.broadcast %cst_16 : f32 to vector<2x1xf32>
    %27 = arith.addf %23, %26 : vector<2x1xf32>
    %28 = math.rsqrt %27 : vector<2x1xf32>
    %29 = vector.broadcast %28 : vector<2x1xf32> to vector<2x8xf32>
    %30 = arith.mulf %25, %29 : vector<2x8xf32>
    %c0_17 = arith.constant 0 : index
    %c0_18 = arith.constant 0 : index
    %31 = vector.load %arg32[%c0_17, %c0_18] : memref<1x8xf32, #tpu.memory_space<vmem>>, vector<1x8xf32>
    %32 = vector.broadcast %31 : vector<1x8xf32> to vector<2x8xf32>
    %33 = arith.mulf %30, %32 : vector<2x8xf32>
    %c0_19 = arith.constant 0 : index
    %c0_20 = arith.constant 0 : index
    %34 = vector.load %arg33[%c0_19, %c0_20] : memref<1x8xf32, #tpu.memory_space<vmem>>, vector<1x8xf32>
    %35 = vector.broadcast %34 : vector<1x8xf32> to vector<2x8xf32>
    %36 = arith.addf %33, %35 : vector<2x8xf32>
    %c0_21 = arith.constant 0 : index
    %c0_22 = arith.constant 0 : index
    %37 = vector.load %arg34[%c0_21, %c0_22] : memref<8x4xf32, #tpu.memory_space<vmem>>, vector<8x4xf32>
    %cst_23 = arith.constant dense<0.000000e+00> : vector<2x4xf32>
    %38 = tpu.matmul %36, %37, %cst_23 {dimension_numbers = #tpu.dot_dimension_numbers<[1], [0], [0], [1], [0, 0, 1, 1], [], []>} : vector<2x8xf32>, vector<8x4xf32>, vector<2x4xf32> -> vector<2x4xf32>
    %c0_24 = arith.constant 0 : index
    %c0_25 = arith.constant 0 : index
    %39 = vector.load %arg35[%c0_24, %c0_25] : memref<1x4xf32, #tpu.memory_space<vmem>>, vector<1x4xf32>
    %40 = vector.broadcast %39 : vector<1x4xf32> to vector<2x4xf32>
    %41 = arith.addf %38, %40 : vector<2x4xf32>
    %42 = math.tanh %41 : vector<2x4xf32>
    %cst_26 = arith.constant dense<0.000000e+00> : vector<2xf32>
    %43 = vector.multi_reduction <add>, %42, %cst_26 [1] : vector<2x4xf32> to vector<2xf32>
    %44 = vector.shape_cast %43 : vector<2xf32> to vector<2x1xf32>
    %cst_27 = arith.constant 4.000000e+00 : f32
    %45 = vector.broadcast %cst_27 : f32 to vector<2x1xf32>
    %46 = arith.divf %44, %45 : vector<2x1xf32>
    %47 = vector.broadcast %46 : vector<2x1xf32> to vector<2x4xf32>
    %48 = arith.subf %42, %47 : vector<2x4xf32>
    %49 = arith.mulf %48, %48 : vector<2x4xf32>
    %cst_28 = arith.constant dense<0.000000e+00> : vector<2xf32>
    %50 = vector.multi_reduction <add>, %49, %cst_28 [1] : vector<2x4xf32> to vector<2xf32>
    %51 = vector.shape_cast %50 : vector<2xf32> to vector<2x1xf32>
    %cst_29 = arith.constant 4.000000e+00 : f32
    %52 = vector.broadcast %cst_29 : f32 to vector<2x1xf32>
    %53 = arith.divf %51, %52 : vector<2x1xf32>
    %54 = vector.broadcast %46 : vector<2x1xf32> to vector<2x4xf32>
    %55 = arith.subf %42, %54 : vector<2x4xf32>
    %cst_30 = arith.constant 9.99999974E-6 : f32
    %56 = vector.broadcast %cst_30 : f32 to vector<2x1xf32>
    %57 = arith.addf %53, %56 : vector<2x1xf32>
    %58 = math.rsqrt %57 : vector<2x1xf32>
    %59 = vector.broadcast %58 : vector<2x1xf32> to vector<2x4xf32>
    %60 = arith.mulf %55, %59 : vector<2x4xf32>
    %c0_31 = arith.constant 0 : index
    %c0_32 = arith.constant 0 : index
    %61 = vector.load %arg36[%c0_31, %c0_32] : memref<1x4xf32, #tpu.memory_space<vmem>>, vector<1x4xf32>
    %62 = vector.broadcast %61 : vector<1x4xf32> to vector<2x4xf32>
    %63 = arith.mulf %60, %62 : vector<2x4xf32>
    %c0_33 = arith.constant 0 : index
    %c0_34 = arith.constant 0 : index
    %64 = vector.load %arg37[%c0_33, %c0_34] : memref<1x4xf32, #tpu.memory_space<vmem>>, vector<1x4xf32>
    %65 = vector.broadcast %64 : vector<1x4xf32> to vector<2x4xf32>
    %66 = arith.addf %63, %65 : vector<2x4xf32>
    %c0_35 = arith.constant 0 : index
    %c0_36 = arith.constant 0 : index
    %67 = vector.load %arg17[%c0_35, %c0_36] : memref<4x32xf32, #tpu.memory_space<vmem>>, vector<4x32xf32>
    %cst_37 = arith.constant dense<0.000000e+00> : vector<2x32xf32>
    %68 = tpu.matmul %66, %67, %cst_37 {dimension_numbers = #tpu.dot_dimension_numbers<[1], [0], [0], [1], [0, 0, 1, 1], [], []>} : vector<2x4xf32>, vector<4x32xf32>, vector<2x32xf32> -> vector<2x32xf32>
    %69 = arith.addf %5, %68 : vector<2x32xf32>
    %cst_38 = arith.constant dense<0.000000e+00> : vector<2xf32>
    %70 = vector.multi_reduction <add>, %69, %cst_38 [1] : vector<2x32xf32> to vector<2xf32>
    %71 = vector.shape_cast %70 : vector<2xf32> to vector<2x1xf32>
    %cst_39 = arith.constant 3.200000e+01 : f32
    %72 = vector.broadcast %cst_39 : f32 to vector<2x1xf32>
    %73 = arith.divf %71, %72 : vector<2x1xf32>
    %74 = vector.broadcast %73 : vector<2x1xf32> to vector<2x32xf32>
    %75 = arith.subf %69, %74 : vector<2x32xf32>
    %76 = arith.mulf %75, %75 : vector<2x32xf32>
    %cst_40 = arith.constant dense<0.000000e+00> : vector<2xf32>
    %77 = vector.multi_reduction <add>, %76, %cst_40 [1] : vector<2x32xf32> to vector<2xf32>
    %78 = vector.shape_cast %77 : vector<2xf32> to vector<2x1xf32>
    %cst_41 = arith.constant 3.200000e+01 : f32
    %79 = vector.broadcast %cst_41 : f32 to vector<2x1xf32>
    %80 = arith.divf %78, %79 : vector<2x1xf32>
    %81 = vector.broadcast %73 : vector<2x1xf32> to vector<2x32xf32>
    %82 = arith.subf %69, %81 : vector<2x32xf32>
    %cst_42 = arith.constant 9.99999974E-6 : f32
    %83 = vector.broadcast %cst_42 : f32 to vector<2x1xf32>
    %84 = arith.addf %80, %83 : vector<2x1xf32>
    %85 = math.rsqrt %84 : vector<2x1xf32>
    %86 = vector.broadcast %85 : vector<2x1xf32> to vector<2x32xf32>
    %87 = arith.mulf %82, %86 : vector<2x32xf32>
    %c0_43 = arith.constant 0 : index
    %c0_44 = arith.constant 0 : index
    %88 = vector.load %arg22[%c0_43, %c0_44] : memref<1x32xf32, #tpu.memory_space<vmem>>, vector<1x32xf32>
    %89 = vector.broadcast %88 : vector<1x32xf32> to vector<2x32xf32>
    %90 = arith.mulf %87, %89 : vector<2x32xf32>
    %c0_45 = arith.constant 0 : index
    %c0_46 = arith.constant 0 : index
    %91 = vector.load %arg23[%c0_45, %c0_46] : memref<1x32xf32, #tpu.memory_space<vmem>>, vector<1x32xf32>
    %92 = vector.broadcast %91 : vector<1x32xf32> to vector<2x32xf32>
    %93 = arith.addf %90, %92 : vector<2x32xf32>
    %cst_47 = arith.constant 0.000000e+00 : f32
    %94 = vector.broadcast %cst_47 : f32 to vector<2x32xf32>
    %95 = arith.cmpf oge, %93, %94 : vector<2x32xf32>
    %cst_48 = arith.constant 0.00999999977 : f32
    %96 = vector.broadcast %cst_48 : f32 to vector<2x32xf32>
    %97 = arith.mulf %96, %93 : vector<2x32xf32>
    %98 = arith.select %95, %93, %97 : vector<2x32xi1>, vector<2x32xf32>
    %c0_49 = arith.constant 0 : index
    %c0_50 = arith.constant 0 : index
    %99 = vector.load %arg18[%c0_49, %c0_50] : memref<32x64xf32, #tpu.memory_space<vmem>>, vector<32x64xf32>
    %cst_51 = arith.constant dense<0.000000e+00> : vector<2x64xf32>
    %100 = tpu.matmul %98, %99, %cst_51 {dimension_numbers = #tpu.dot_dimension_numbers<[1], [0], [0], [1], [0, 0, 1, 1], [], []>} : vector<2x32xf32>, vector<32x64xf32>, vector<2x64xf32> -> vector<2x64xf32>
    %c0_52 = arith.constant 0 : index
    %c0_53 = arith.constant 0 : index
    %101 = vector.load %arg19[%c0_52, %c0_53] : memref<1x64xf32, #tpu.memory_space<vmem>>, vector<1x64xf32>
    %102 = vector.broadcast %101 : vector<1x64xf32> to vector<2x64xf32>
    %103 = arith.addf %100, %102 : vector<2x64xf32>
    %cst_54 = arith.constant dense<0.000000e+00> : vector<2xf32>
    %104 = vector.multi_reduction <add>, %103, %cst_54 [1] : vector<2x64xf32> to vector<2xf32>
    %105 = vector.shape_cast %104 : vector<2xf32> to vector<2x1xf32>
    %cst_55 = arith.constant 6.400000e+01 : f32
    %106 = vector.broadcast %cst_55 : f32 to vector<2x1xf32>
    %107 = arith.divf %105, %106 : vector<2x1xf32>
    %108 = vector.broadcast %107 : vector<2x1xf32> to vector<2x64xf32>
    %109 = arith.subf %103, %108 : vector<2x64xf32>
    %110 = arith.mulf %109, %109 : vector<2x64xf32>
    %cst_56 = arith.constant dense<0.000000e+00> : vector<2xf32>
    %111 = vector.multi_reduction <add>, %110, %cst_56 [1] : vector<2x64xf32> to vector<2xf32>
    %112 = vector.shape_cast %111 : vector<2xf32> to vector<2x1xf32>
    %cst_57 = arith.constant 6.400000e+01 : f32
    %113 = vector.broadcast %cst_57 : f32 to vector<2x1xf32>
    %114 = arith.divf %112, %113 : vector<2x1xf32>
    %115 = vector.broadcast %107 : vector<2x1xf32> to vector<2x64xf32>
    %116 = arith.subf %103, %115 : vector<2x64xf32>
    %cst_58 = arith.constant 9.99999974E-6 : f32
    %117 = vector.broadcast %cst_58 : f32 to vector<2x1xf32>
    %118 = arith.addf %114, %117 : vector<2x1xf32>
    %119 = math.rsqrt %118 : vector<2x1xf32>
    %120 = vector.broadcast %119 : vector<2x1xf32> to vector<2x64xf32>
    %121 = arith.mulf %116, %120 : vector<2x64xf32>
    %c0_59 = arith.constant 0 : index
    %c0_60 = arith.constant 0 : index
    %122 = vector.load %arg24[%c0_59, %c0_60] : memref<1x64xf32, #tpu.memory_space<vmem>>, vector<1x64xf32>
    %123 = vector.broadcast %122 : vector<1x64xf32> to vector<2x64xf32>
    %124 = arith.mulf %121, %123 : vector<2x64xf32>
    %c0_61 = arith.constant 0 : index
    %c0_62 = arith.constant 0 : index
    %125 = vector.load %arg25[%c0_61, %c0_62] : memref<1x64xf32, #tpu.memory_space<vmem>>, vector<1x64xf32>
    %126 = vector.broadcast %125 : vector<1x64xf32> to vector<2x64xf32>
    %127 = arith.addf %124, %126 : vector<2x64xf32>
    %cst_63 = arith.constant 0.000000e+00 : f32
    %128 = vector.broadcast %cst_63 : f32 to vector<2x64xf32>
    %129 = arith.cmpf oge, %127, %128 : vector<2x64xf32>
    %cst_64 = arith.constant 0.00999999977 : f32
    %130 = vector.broadcast %cst_64 : f32 to vector<2x64xf32>
    %131 = arith.mulf %130, %127 : vector<2x64xf32>
    %132 = arith.select %129, %127, %131 : vector<2x64xi1>, vector<2x64xf32>
    %c0_65 = arith.constant 0 : index
    %c0_66 = arith.constant 0 : index
    %133 = vector.load %arg20[%c0_65, %c0_66] : memref<64x128xf32, #tpu.memory_space<vmem>>, vector<64x128xf32>
    %cst_67 = arith.constant dense<0.000000e+00> : vector<2x128xf32>
    %134 = tpu.matmul %132, %133, %cst_67 {dimension_numbers = #tpu.dot_dimension_numbers<[1], [0], [0], [1], [0, 0, 1, 1], [], []>} : vector<2x64xf32>, vector<64x128xf32>, vector<2x128xf32> -> vector<2x128xf32>
    %c0_68 = arith.constant 0 : index
    %c0_69 = arith.constant 0 : index
    %135 = vector.load %arg21[%c0_68, %c0_69] : memref<1x128xf32, #tpu.memory_space<vmem>>, vector<1x128xf32>
    %136 = vector.broadcast %135 : vector<1x128xf32> to vector<2x128xf32>
    %137 = arith.addf %134, %136 : vector<2x128xf32>
    %cst_70 = arith.constant dense<0.000000e+00> : vector<2xf32>
    %138 = vector.multi_reduction <add>, %137, %cst_70 [1] : vector<2x128xf32> to vector<2xf32>
    %139 = vector.shape_cast %138 : vector<2xf32> to vector<2x1xf32>
    %cst_71 = arith.constant 1.280000e+02 : f32
    %140 = vector.broadcast %cst_71 : f32 to vector<2x1xf32>
    %141 = arith.divf %139, %140 : vector<2x1xf32>
    %142 = vector.broadcast %141 : vector<2x1xf32> to vector<2x128xf32>
    %143 = arith.subf %137, %142 : vector<2x128xf32>
    %144 = arith.mulf %143, %143 : vector<2x128xf32>
    %cst_72 = arith.constant dense<0.000000e+00> : vector<2xf32>
    %145 = vector.multi_reduction <add>, %144, %cst_72 [1] : vector<2x128xf32> to vector<2xf32>
    %146 = vector.shape_cast %145 : vector<2xf32> to vector<2x1xf32>
    %cst_73 = arith.constant 1.280000e+02 : f32
    %147 = vector.broadcast %cst_73 : f32 to vector<2x1xf32>
    %148 = arith.divf %146, %147 : vector<2x1xf32>
    %149 = vector.broadcast %141 : vector<2x1xf32> to vector<2x128xf32>
    %150 = arith.subf %137, %149 : vector<2x128xf32>
    %cst_74 = arith.constant 9.99999974E-6 : f32
    %151 = vector.broadcast %cst_74 : f32 to vector<2x1xf32>
    %152 = arith.addf %148, %151 : vector<2x1xf32>
    %153 = math.rsqrt %152 : vector<2x1xf32>
    %154 = vector.broadcast %153 : vector<2x1xf32> to vector<2x128xf32>
    %155 = arith.mulf %150, %154 : vector<2x128xf32>
    %c0_75 = arith.constant 0 : index
    %c0_76 = arith.constant 0 : index
    %156 = vector.load %arg26[%c0_75, %c0_76] : memref<1x128xf32, #tpu.memory_space<vmem>>, vector<1x128xf32>
    %157 = vector.broadcast %156 : vector<1x128xf32> to vector<2x128xf32>
    %158 = arith.mulf %155, %157 : vector<2x128xf32>
    %c0_77 = arith.constant 0 : index
    %c0_78 = arith.constant 0 : index
    %159 = vector.load %arg27[%c0_77, %c0_78] : memref<1x128xf32, #tpu.memory_space<vmem>>, vector<1x128xf32>
    %160 = vector.broadcast %159 : vector<1x128xf32> to vector<2x128xf32>
    %161 = arith.addf %158, %160 : vector<2x128xf32>
    %cst_79 = arith.constant 0.000000e+00 : f32
    %162 = vector.broadcast %cst_79 : f32 to vector<2x128xf32>
    %163 = arith.cmpf oge, %161, %162 : vector<2x128xf32>
    %cst_80 = arith.constant 0.00999999977 : f32
    %164 = vector.broadcast %cst_80 : f32 to vector<2x128xf32>
    %165 = arith.mulf %164, %161 : vector<2x128xf32>
    %166 = arith.select %163, %161, %165 : vector<2x128xi1>, vector<2x128xf32>
    %c0_81 = arith.constant 0 : index
    %c0_82 = arith.constant 0 : index
    %167 = vector.load %arg28[%c0_81, %c0_82] : memref<128x4xf32, #tpu.memory_space<vmem>>, vector<128x4xf32>
    %cst_83 = arith.constant dense<0.000000e+00> : vector<2x4xf32>
    %168 = tpu.matmul %166, %167, %cst_83 {dimension_numbers = #tpu.dot_dimension_numbers<[1], [0], [0], [1], [0, 0, 1, 1], [], []>} : vector<2x128xf32>, vector<128x4xf32>, vector<2x4xf32> -> vector<2x4xf32>
    %c0_84 = arith.constant 0 : index
    %c0_85 = arith.constant 0 : index
    %169 = vector.load %arg29[%c0_84, %c0_85] : memref<1x4xf32, #tpu.memory_space<vmem>>, vector<1x4xf32>
    %170 = vector.broadcast %169 : vector<1x4xf32> to vector<2x4xf32>
    %171 = arith.addf %168, %170 : vector<2x4xf32>
    %cst_86 = arith.constant dense<0.000000e+00> : vector<32xf32>
    %172 = vector.multi_reduction <add>, %98, %cst_86 [0] : vector<2x32xf32> to vector<32xf32>
    %173 = vector.shape_cast %172 : vector<32xf32> to vector<1x32xf32>
    %cst_87 = arith.constant 2.000000e+00 : f32
    %174 = vector.broadcast %cst_87 : f32 to vector<1x32xf32>
    %175 = arith.divf %173, %174 : vector<1x32xf32>
    %176 = vector.broadcast %175 : vector<1x32xf32> to vector<2x32xf32>
    %177 = arith.subf %98, %176 : vector<2x32xf32>
    %178 = arith.mulf %177, %177 : vector<2x32xf32>
    %cst_88 = arith.constant dense<0.000000e+00> : vector<32xf32>
    %179 = vector.multi_reduction <add>, %178, %cst_88 [0] : vector<2x32xf32> to vector<32xf32>
    %180 = vector.shape_cast %179 : vector<32xf32> to vector<1x32xf32>
    %cst_89 = arith.constant 1.000000e+00 : f32
    %181 = vector.broadcast %cst_89 : f32 to vector<1x32xf32>
    %182 = arith.divf %180, %181 : vector<1x32xf32>
    %183 = arith.cmpf one, %182, %182 : vector<1x32xf32>
    %cst_90 = arith.constant 0.000000e+00 : f32
    %184 = vector.broadcast %cst_90 : f32 to vector<1x32xf32>
    %185 = arith.select %183, %184, %182 : vector<1x32xi1>, vector<1x32xf32>
    %c0_91 = arith.constant 0 : index
    %c0_92 = arith.constant 0 : index
    %186 = vector.load %arg38[%c0_91, %c0_92] : memref<32x64xf32, #tpu.memory_space<vmem>>, vector<32x64xf32>
    %cst_93 = arith.constant dense<0.000000e+00> : vector<1x64xf32>
    %187 = tpu.matmul %185, %186, %cst_93 {dimension_numbers = #tpu.dot_dimension_numbers<[1], [0], [0], [1], [0, 0, 1, 1], [], []>} : vector<1x32xf32>, vector<32x64xf32>, vector<1x64xf32> -> vector<1x64xf32>
    %c0_94 = arith.constant 0 : index
    %c0_95 = arith.constant 0 : index
    %188 = vector.load %arg39[%c0_94, %c0_95] : memref<1x64xf32, #tpu.memory_space<vmem>>, vector<1x64xf32>
    %189 = arith.addf %187, %188 : vector<1x64xf32>
    %cst_96 = arith.constant 0.000000e+00 : f32
    %190 = vector.broadcast %cst_96 : f32 to vector<1x64xf32>
    %191 = arith.cmpf oge, %189, %190 : vector<1x64xf32>
    %cst_97 = arith.constant 0.00999999977 : f32
    %192 = vector.broadcast %cst_97 : f32 to vector<1x64xf32>
    %193 = arith.mulf %192, %189 : vector<1x64xf32>
    %194 = arith.select %191, %189, %193 : vector<1x64xi1>, vector<1x64xf32>
    %cst_98 = arith.constant dense<0.000000e+00> : vector<1xf32>
    %195 = vector.multi_reduction <add>, %194, %cst_98 [1] : vector<1x64xf32> to vector<1xf32>
    %196 = vector.shape_cast %195 : vector<1xf32> to vector<1x1xf32>
    %cst_99 = arith.constant 6.400000e+01 : f32
    %197 = vector.broadcast %cst_99 : f32 to vector<1x1xf32>
    %198 = arith.divf %196, %197 : vector<1x1xf32>
    %199 = vector.broadcast %198 : vector<1x1xf32> to vector<1x64xf32>
    %200 = arith.subf %194, %199 : vector<1x64xf32>
    %201 = arith.mulf %200, %200 : vector<1x64xf32>
    %cst_100 = arith.constant dense<0.000000e+00> : vector<1xf32>
    %202 = vector.multi_reduction <add>, %201, %cst_100 [1] : vector<1x64xf32> to vector<1xf32>
    %203 = vector.shape_cast %202 : vector<1xf32> to vector<1x1xf32>
    %cst_101 = arith.constant 6.400000e+01 : f32
    %204 = vector.broadcast %cst_101 : f32 to vector<1x1xf32>
    %205 = arith.divf %203, %204 : vector<1x1xf32>
    %206 = vector.broadcast %198 : vector<1x1xf32> to vector<1x64xf32>
    %207 = arith.subf %194, %206 : vector<1x64xf32>
    %cst_102 = arith.constant 9.99999974E-6 : f32
    %208 = vector.broadcast %cst_102 : f32 to vector<1x1xf32>
    %209 = arith.addf %205, %208 : vector<1x1xf32>
    %210 = math.rsqrt %209 : vector<1x1xf32>
    %211 = vector.broadcast %210 : vector<1x1xf32> to vector<1x64xf32>
    %212 = arith.mulf %207, %211 : vector<1x64xf32>
    %c0_103 = arith.constant 0 : index
    %c0_104 = arith.constant 0 : index
    %213 = vector.load %arg40[%c0_103, %c0_104] : memref<1x64xf32, #tpu.memory_space<vmem>>, vector<1x64xf32>
    %214 = arith.mulf %212, %213 : vector<1x64xf32>
    %c0_105 = arith.constant 0 : index
    %c0_106 = arith.constant 0 : index
    %215 = vector.load %arg41[%c0_105, %c0_106] : memref<1x64xf32, #tpu.memory_space<vmem>>, vector<1x64xf32>
    %216 = arith.addf %214, %215 : vector<1x64xf32>
    %c0_107 = arith.constant 0 : index
    %c0_108 = arith.constant 0 : index
    %217 = vector.load %arg42[%c0_107, %c0_108] : memref<64x128xf32, #tpu.memory_space<vmem>>, vector<64x128xf32>
    %cst_109 = arith.constant dense<0.000000e+00> : vector<1x128xf32>
    %218 = tpu.matmul %216, %217, %cst_109 {dimension_numbers = #tpu.dot_dimension_numbers<[1], [0], [0], [1], [0, 0, 1, 1], [], []>} : vector<1x64xf32>, vector<64x128xf32>, vector<1x128xf32> -> vector<1x128xf32>
    %c0_110 = arith.constant 0 : index
    %c0_111 = arith.constant 0 : index
    %219 = vector.load %arg43[%c0_110, %c0_111] : memref<1x128xf32, #tpu.memory_space<vmem>>, vector<1x128xf32>
    %220 = arith.addf %218, %219 : vector<1x128xf32>
    %cst_112 = arith.constant 0.000000e+00 : f32
    %221 = vector.broadcast %cst_112 : f32 to vector<1x128xf32>
    %222 = arith.cmpf oge, %220, %221 : vector<1x128xf32>
    %cst_113 = arith.constant 0.00999999977 : f32
    %223 = vector.broadcast %cst_113 : f32 to vector<1x128xf32>
    %224 = arith.mulf %223, %220 : vector<1x128xf32>
    %225 = arith.select %222, %220, %224 : vector<1x128xi1>, vector<1x128xf32>
    %cst_114 = arith.constant dense<0.000000e+00> : vector<1xf32>
    %226 = vector.multi_reduction <add>, %225, %cst_114 [1] : vector<1x128xf32> to vector<1xf32>
    %227 = vector.shape_cast %226 : vector<1xf32> to vector<1x1xf32>
    %cst_115 = arith.constant 1.280000e+02 : f32
    %228 = vector.broadcast %cst_115 : f32 to vector<1x1xf32>
    %229 = arith.divf %227, %228 : vector<1x1xf32>
    %230 = vector.broadcast %229 : vector<1x1xf32> to vector<1x128xf32>
    %231 = arith.subf %225, %230 : vector<1x128xf32>
    %232 = arith.mulf %231, %231 : vector<1x128xf32>
    %cst_116 = arith.constant dense<0.000000e+00> : vector<1xf32>
    %233 = vector.multi_reduction <add>, %232, %cst_116 [1] : vector<1x128xf32> to vector<1xf32>
    %234 = vector.shape_cast %233 : vector<1xf32> to vector<1x1xf32>
    %cst_117 = arith.constant 1.280000e+02 : f32
    %235 = vector.broadcast %cst_117 : f32 to vector<1x1xf32>
    %236 = arith.divf %234, %235 : vector<1x1xf32>
    %237 = vector.broadcast %229 : vector<1x1xf32> to vector<1x128xf32>
    %238 = arith.subf %225, %237 : vector<1x128xf32>
    %cst_118 = arith.constant 9.99999974E-6 : f32
    %239 = vector.broadcast %cst_118 : f32 to vector<1x1xf32>
    %240 = arith.addf %236, %239 : vector<1x1xf32>
    %241 = math.rsqrt %240 : vector<1x1xf32>
    %242 = vector.broadcast %241 : vector<1x1xf32> to vector<1x128xf32>
    %243 = arith.mulf %238, %242 : vector<1x128xf32>
    %c0_119 = arith.constant 0 : index
    %c0_120 = arith.constant 0 : index
    %244 = vector.load %arg44[%c0_119, %c0_120] : memref<1x128xf32, #tpu.memory_space<vmem>>, vector<1x128xf32>
    %245 = arith.mulf %243, %244 : vector<1x128xf32>
    %c0_121 = arith.constant 0 : index
    %c0_122 = arith.constant 0 : index
    %246 = vector.load %arg45[%c0_121, %c0_122] : memref<1x128xf32, #tpu.memory_space<vmem>>, vector<1x128xf32>
    %247 = arith.addf %245, %246 : vector<1x128xf32>
    %c0_123 = arith.constant 0 : index
    %c0_124 = arith.constant 0 : index
    %248 = vector.load %arg46[%c0_123, %c0_124] : memref<128x164xf32, #tpu.memory_space<vmem>>, vector<128x164xf32>
    %cst_125 = arith.constant dense<0.000000e+00> : vector<1x164xf32>
    %249 = tpu.matmul %247, %248, %cst_125 {dimension_numbers = #tpu.dot_dimension_numbers<[1], [0], [0], [1], [0, 0, 1, 1], [], []>} : vector<1x128xf32>, vector<128x164xf32>, vector<1x164xf32> -> vector<1x164xf32>
    %c0_126 = arith.constant 0 : index
    %c0_127 = arith.constant 0 : index
    %250 = vector.load %arg47[%c0_126, %c0_127] : memref<1x164xf32, #tpu.memory_space<vmem>>, vector<1x164xf32>
    %251 = arith.addf %249, %250 : vector<1x164xf32>
    %cst_128 = arith.constant 0.000000e+00 : f32
    %252 = vector.broadcast %cst_128 : f32 to vector<1x164xf32>
    %253 = arith.cmpf oge, %251, %252 : vector<1x164xf32>
    %cst_129 = arith.constant 0.00999999977 : f32
    %254 = vector.broadcast %cst_129 : f32 to vector<1x164xf32>
    %255 = arith.mulf %254, %251 : vector<1x164xf32>
    %256 = arith.select %253, %251, %255 : vector<1x164xi1>, vector<1x164xf32>
    %cst_130 = arith.constant dense<0.000000e+00> : vector<1xf32>
    %257 = vector.multi_reduction <add>, %256, %cst_130 [1] : vector<1x164xf32> to vector<1xf32>
    %258 = vector.shape_cast %257 : vector<1xf32> to vector<1x1xf32>
    %cst_131 = arith.constant 1.640000e+02 : f32
    %259 = vector.broadcast %cst_131 : f32 to vector<1x1xf32>
    %260 = arith.divf %258, %259 : vector<1x1xf32>
    %261 = vector.broadcast %260 : vector<1x1xf32> to vector<1x164xf32>
    %262 = arith.subf %256, %261 : vector<1x164xf32>
    %263 = arith.mulf %262, %262 : vector<1x164xf32>
    %cst_132 = arith.constant dense<0.000000e+00> : vector<1xf32>
    %264 = vector.multi_reduction <add>, %263, %cst_132 [1] : vector<1x164xf32> to vector<1xf32>
    %265 = vector.shape_cast %264 : vector<1xf32> to vector<1x1xf32>
    %cst_133 = arith.constant 1.640000e+02 : f32
    %266 = vector.broadcast %cst_133 : f32 to vector<1x1xf32>
    %267 = arith.divf %265, %266 : vector<1x1xf32>
    %268 = vector.broadcast %260 : vector<1x1xf32> to vector<1x164xf32>
    %269 = arith.subf %256, %268 : vector<1x164xf32>
    %cst_134 = arith.constant 9.99999974E-6 : f32
    %270 = vector.broadcast %cst_134 : f32 to vector<1x1xf32>
    %271 = arith.addf %267, %270 : vector<1x1xf32>
    %272 = math.rsqrt %271 : vector<1x1xf32>
    %273 = vector.broadcast %272 : vector<1x1xf32> to vector<1x164xf32>
    %274 = arith.mulf %269, %273 : vector<1x164xf32>
    %c0_135 = arith.constant 0 : index
    %c0_136 = arith.constant 0 : index
    %275 = vector.load %arg48[%c0_135, %c0_136] : memref<1x164xf32, #tpu.memory_space<vmem>>, vector<1x164xf32>
    %276 = arith.mulf %274, %275 : vector<1x164xf32>
    %c0_137 = arith.constant 0 : index
    %c0_138 = arith.constant 0 : index
    %277 = vector.load %arg49[%c0_137, %c0_138] : memref<1x164xf32, #tpu.memory_space<vmem>>, vector<1x164xf32>
    %278 = arith.addf %276, %277 : vector<1x164xf32>
    %c0_139 = arith.constant 0 : index
    %c0_140 = arith.constant 0 : index
    %279 = vector.load %arg50[%c0_139, %c0_140] : memref<164x4xf32, #tpu.memory_space<vmem>>, vector<164x4xf32>
    %cst_141 = arith.constant dense<0.000000e+00> : vector<1x4xf32>
    %280 = tpu.matmul %278, %279, %cst_141 {dimension_numbers = #tpu.dot_dimension_numbers<[1], [0], [0], [1], [0, 0, 1, 1], [], []>} : vector<1x164xf32>, vector<164x4xf32>, vector<1x4xf32> -> vector<1x4xf32>
    %c0_142 = arith.constant 0 : index
    %c0_143 = arith.constant 0 : index
    %281 = vector.load %arg51[%c0_142, %c0_143] : memref<1x4xf32, #tpu.memory_space<vmem>>, vector<1x4xf32>
    %282 = arith.addf %280, %281 : vector<1x4xf32>
    %cst_144 = arith.constant dense<0.000000e+00> : vector<64xf32>
    %283 = vector.multi_reduction <add>, %132, %cst_144 [0] : vector<2x64xf32> to vector<64xf32>
    %284 = vector.shape_cast %283 : vector<64xf32> to vector<1x64xf32>
    %cst_145 = arith.constant 2.000000e+00 : f32
    %285 = vector.broadcast %cst_145 : f32 to vector<1x64xf32>
    %286 = arith.divf %284, %285 : vector<1x64xf32>
    %287 = vector.broadcast %286 : vector<1x64xf32> to vector<2x64xf32>
    %288 = arith.subf %132, %287 : vector<2x64xf32>
    %289 = arith.mulf %288, %288 : vector<2x64xf32>
    %cst_146 = arith.constant dense<0.000000e+00> : vector<64xf32>
    %290 = vector.multi_reduction <add>, %289, %cst_146 [0] : vector<2x64xf32> to vector<64xf32>
    %291 = vector.shape_cast %290 : vector<64xf32> to vector<1x64xf32>
    %cst_147 = arith.constant 1.000000e+00 : f32
    %292 = vector.broadcast %cst_147 : f32 to vector<1x64xf32>
    %293 = arith.divf %291, %292 : vector<1x64xf32>
    %294 = arith.cmpf one, %293, %293 : vector<1x64xf32>
    %cst_148 = arith.constant 0.000000e+00 : f32
    %295 = vector.broadcast %cst_148 : f32 to vector<1x64xf32>
    %296 = arith.select %294, %295, %293 : vector<1x64xi1>, vector<1x64xf32>
    %c0_149 = arith.constant 0 : index
    %c0_150 = arith.constant 0 : index
    %297 = vector.load %arg52[%c0_149, %c0_150] : memref<64x128xf32, #tpu.memory_space<vmem>>, vector<64x128xf32>
    %cst_151 = arith.constant dense<0.000000e+00> : vector<1x128xf32>
    %298 = tpu.matmul %296, %297, %cst_151 {dimension_numbers = #tpu.dot_dimension_numbers<[1], [0], [0], [1], [0, 0, 1, 1], [], []>} : vector<1x64xf32>, vector<64x128xf32>, vector<1x128xf32> -> vector<1x128xf32>
    %c0_152 = arith.constant 0 : index
    %c0_153 = arith.constant 0 : index
    %299 = vector.load %arg53[%c0_152, %c0_153] : memref<1x128xf32, #tpu.memory_space<vmem>>, vector<1x128xf32>
    %300 = arith.addf %298, %299 : vector<1x128xf32>
    %cst_154 = arith.constant 0.000000e+00 : f32
    %301 = vector.broadcast %cst_154 : f32 to vector<1x128xf32>
    %302 = arith.cmpf oge, %300, %301 : vector<1x128xf32>
    %cst_155 = arith.constant 0.00999999977 : f32
    %303 = vector.broadcast %cst_155 : f32 to vector<1x128xf32>
    %304 = arith.mulf %303, %300 : vector<1x128xf32>
    %305 = arith.select %302, %300, %304 : vector<1x128xi1>, vector<1x128xf32>
    %cst_156 = arith.constant dense<0.000000e+00> : vector<1xf32>
    %306 = vector.multi_reduction <add>, %305, %cst_156 [1] : vector<1x128xf32> to vector<1xf32>
    %307 = vector.shape_cast %306 : vector<1xf32> to vector<1x1xf32>
    %cst_157 = arith.constant 1.280000e+02 : f32
    %308 = vector.broadcast %cst_157 : f32 to vector<1x1xf32>
    %309 = arith.divf %307, %308 : vector<1x1xf32>
    %310 = vector.broadcast %309 : vector<1x1xf32> to vector<1x128xf32>
    %311 = arith.subf %305, %310 : vector<1x128xf32>
    %312 = arith.mulf %311, %311 : vector<1x128xf32>
    %cst_158 = arith.constant dense<0.000000e+00> : vector<1xf32>
    %313 = vector.multi_reduction <add>, %312, %cst_158 [1] : vector<1x128xf32> to vector<1xf32>
    %314 = vector.shape_cast %313 : vector<1xf32> to vector<1x1xf32>
    %cst_159 = arith.constant 1.280000e+02 : f32
    %315 = vector.broadcast %cst_159 : f32 to vector<1x1xf32>
    %316 = arith.divf %314, %315 : vector<1x1xf32>
    %317 = vector.broadcast %309 : vector<1x1xf32> to vector<1x128xf32>
    %318 = arith.subf %305, %317 : vector<1x128xf32>
    %cst_160 = arith.constant 9.99999974E-6 : f32
    %319 = vector.broadcast %cst_160 : f32 to vector<1x1xf32>
    %320 = arith.addf %316, %319 : vector<1x1xf32>
    %321 = math.rsqrt %320 : vector<1x1xf32>
    %322 = vector.broadcast %321 : vector<1x1xf32> to vector<1x128xf32>
    %323 = arith.mulf %318, %322 : vector<1x128xf32>
    %c0_161 = arith.constant 0 : index
    %c0_162 = arith.constant 0 : index
    %324 = vector.load %arg54[%c0_161, %c0_162] : memref<1x128xf32, #tpu.memory_space<vmem>>, vector<1x128xf32>
    %325 = arith.mulf %323, %324 : vector<1x128xf32>
    %c0_163 = arith.constant 0 : index
    %c0_164 = arith.constant 0 : index
    %326 = vector.load %arg55[%c0_163, %c0_164] : memref<1x128xf32, #tpu.memory_space<vmem>>, vector<1x128xf32>
    %327 = arith.addf %325, %326 : vector<1x128xf32>
    %c0_165 = arith.constant 0 : index
    %c0_166 = arith.constant 0 : index
    %328 = vector.load %arg56[%c0_165, %c0_166] : memref<128x164xf32, #tpu.memory_space<vmem>>, vector<128x164xf32>
    %cst_167 = arith.constant dense<0.000000e+00> : vector<1x164xf32>
    %329 = tpu.matmul %327, %328, %cst_167 {dimension_numbers = #tpu.dot_dimension_numbers<[1], [0], [0], [1], [0, 0, 1, 1], [], []>} : vector<1x128xf32>, vector<128x164xf32>, vector<1x164xf32> -> vector<1x164xf32>
    %c0_168 = arith.constant 0 : index
    %c0_169 = arith.constant 0 : index
    %330 = vector.load %arg57[%c0_168, %c0_169] : memref<1x164xf32, #tpu.memory_space<vmem>>, vector<1x164xf32>
    %331 = arith.addf %329, %330 : vector<1x164xf32>
    %cst_170 = arith.constant 0.000000e+00 : f32
    %332 = vector.broadcast %cst_170 : f32 to vector<1x164xf32>
    %333 = arith.cmpf oge, %331, %332 : vector<1x164xf32>
    %cst_171 = arith.constant 0.00999999977 : f32
    %334 = vector.broadcast %cst_171 : f32 to vector<1x164xf32>
    %335 = arith.mulf %334, %331 : vector<1x164xf32>
    %336 = arith.select %333, %331, %335 : vector<1x164xi1>, vector<1x164xf32>
    %cst_172 = arith.constant dense<0.000000e+00> : vector<1xf32>
    %337 = vector.multi_reduction <add>, %336, %cst_172 [1] : vector<1x164xf32> to vector<1xf32>
    %338 = vector.shape_cast %337 : vector<1xf32> to vector<1x1xf32>
    %cst_173 = arith.constant 1.640000e+02 : f32
    %339 = vector.broadcast %cst_173 : f32 to vector<1x1xf32>
    %340 = arith.divf %338, %339 : vector<1x1xf32>
    %341 = vector.broadcast %340 : vector<1x1xf32> to vector<1x164xf32>
    %342 = arith.subf %336, %341 : vector<1x164xf32>
    %343 = arith.mulf %342, %342 : vector<1x164xf32>
    %cst_174 = arith.constant dense<0.000000e+00> : vector<1xf32>
    %344 = vector.multi_reduction <add>, %343, %cst_174 [1] : vector<1x164xf32> to vector<1xf32>
    %345 = vector.shape_cast %344 : vector<1xf32> to vector<1x1xf32>
    %cst_175 = arith.constant 1.640000e+02 : f32
    %346 = vector.broadcast %cst_175 : f32 to vector<1x1xf32>
    %347 = arith.divf %345, %346 : vector<1x1xf32>
    %348 = vector.broadcast %340 : vector<1x1xf32> to vector<1x164xf32>
    %349 = arith.subf %336, %348 : vector<1x164xf32>
    %cst_176 = arith.constant 9.99999974E-6 : f32
    %350 = vector.broadcast %cst_176 : f32 to vector<1x1xf32>
    %351 = arith.addf %347, %350 : vector<1x1xf32>
    %352 = math.rsqrt %351 : vector<1x1xf32>
    %353 = vector.broadcast %352 : vector<1x1xf32> to vector<1x164xf32>
    %354 = arith.mulf %349, %353 : vector<1x164xf32>
    %c0_177 = arith.constant 0 : index
    %c0_178 = arith.constant 0 : index
    %355 = vector.load %arg58[%c0_177, %c0_178] : memref<1x164xf32, #tpu.memory_space<vmem>>, vector<1x164xf32>
    %356 = arith.mulf %354, %355 : vector<1x164xf32>
    %c0_179 = arith.constant 0 : index
    %c0_180 = arith.constant 0 : index
    %357 = vector.load %arg59[%c0_179, %c0_180] : memref<1x164xf32, #tpu.memory_space<vmem>>, vector<1x164xf32>
    %358 = arith.addf %356, %357 : vector<1x164xf32>
    %c0_181 = arith.constant 0 : index
    %c0_182 = arith.constant 0 : index
    %359 = vector.load %arg60[%c0_181, %c0_182] : memref<164x186xf32, #tpu.memory_space<vmem>>, vector<164x186xf32>
    %cst_183 = arith.constant dense<0.000000e+00> : vector<1x186xf32>
    %360 = tpu.matmul %358, %359, %cst_183 {dimension_numbers = #tpu.dot_dimension_numbers<[1], [0], [0], [1], [0, 0, 1, 1], [], []>} : vector<1x164xf32>, vector<164x186xf32>, vector<1x186xf32> -> vector<1x186xf32>
    %c0_184 = arith.constant 0 : index
    %c0_185 = arith.constant 0 : index
    %361 = vector.load %arg61[%c0_184, %c0_185] : memref<1x186xf32, #tpu.memory_space<vmem>>, vector<1x186xf32>
    %362 = arith.addf %360, %361 : vector<1x186xf32>
    %cst_186 = arith.constant 0.000000e+00 : f32
    %363 = vector.broadcast %cst_186 : f32 to vector<1x186xf32>
    %364 = arith.cmpf oge, %362, %363 : vector<1x186xf32>
    %cst_187 = arith.constant 0.00999999977 : f32
    %365 = vector.broadcast %cst_187 : f32 to vector<1x186xf32>
    %366 = arith.mulf %365, %362 : vector<1x186xf32>
    %367 = arith.select %364, %362, %366 : vector<1x186xi1>, vector<1x186xf32>
    %cst_188 = arith.constant dense<0.000000e+00> : vector<1xf32>
    %368 = vector.multi_reduction <add>, %367, %cst_188 [1] : vector<1x186xf32> to vector<1xf32>
    %369 = vector.shape_cast %368 : vector<1xf32> to vector<1x1xf32>
    %cst_189 = arith.constant 1.860000e+02 : f32
    %370 = vector.broadcast %cst_189 : f32 to vector<1x1xf32>
    %371 = arith.divf %369, %370 : vector<1x1xf32>
    %372 = vector.broadcast %371 : vector<1x1xf32> to vector<1x186xf32>
    %373 = arith.subf %367, %372 : vector<1x186xf32>
    %374 = arith.mulf %373, %373 : vector<1x186xf32>
    %cst_190 = arith.constant dense<0.000000e+00> : vector<1xf32>
    %375 = vector.multi_reduction <add>, %374, %cst_190 [1] : vector<1x186xf32> to vector<1xf32>
    %376 = vector.shape_cast %375 : vector<1xf32> to vector<1x1xf32>
    %cst_191 = arith.constant 1.860000e+02 : f32
    %377 = vector.broadcast %cst_191 : f32 to vector<1x1xf32>
    %378 = arith.divf %376, %377 : vector<1x1xf32>
    %379 = vector.broadcast %371 : vector<1x1xf32> to vector<1x186xf32>
    %380 = arith.subf %367, %379 : vector<1x186xf32>
    %cst_192 = arith.constant 9.99999974E-6 : f32
    %381 = vector.broadcast %cst_192 : f32 to vector<1x1xf32>
    %382 = arith.addf %378, %381 : vector<1x1xf32>
    %383 = math.rsqrt %382 : vector<1x1xf32>
    %384 = vector.broadcast %383 : vector<1x1xf32> to vector<1x186xf32>
    %385 = arith.mulf %380, %384 : vector<1x186xf32>
    %c0_193 = arith.constant 0 : index
    %c0_194 = arith.constant 0 : index
    %386 = vector.load %arg62[%c0_193, %c0_194] : memref<1x186xf32, #tpu.memory_space<vmem>>, vector<1x186xf32>
    %387 = arith.mulf %385, %386 : vector<1x186xf32>
    %c0_195 = arith.constant 0 : index
    %c0_196 = arith.constant 0 : index
    %388 = vector.load %arg63[%c0_195, %c0_196] : memref<1x186xf32, #tpu.memory_space<vmem>>, vector<1x186xf32>
    %389 = arith.addf %387, %388 : vector<1x186xf32>
    %c0_197 = arith.constant 0 : index
    %c0_198 = arith.constant 0 : index
    %390 = vector.load %arg64[%c0_197, %c0_198] : memref<186x4xf32, #tpu.memory_space<vmem>>, vector<186x4xf32>
    %cst_199 = arith.constant dense<0.000000e+00> : vector<1x4xf32>
    %391 = tpu.matmul %389, %390, %cst_199 {dimension_numbers = #tpu.dot_dimension_numbers<[1], [0], [0], [1], [0, 0, 1, 1], [], []>} : vector<1x186xf32>, vector<186x4xf32>, vector<1x4xf32> -> vector<1x4xf32>
    %c0_200 = arith.constant 0 : index
    %c0_201 = arith.constant 0 : index
    %392 = vector.load %arg65[%c0_200, %c0_201] : memref<1x4xf32, #tpu.memory_space<vmem>>, vector<1x4xf32>
    %393 = arith.addf %391, %392 : vector<1x4xf32>
    %cst_202 = arith.constant dense<0.000000e+00> : vector<128xf32>
    %394 = vector.multi_reduction <add>, %166, %cst_202 [0] : vector<2x128xf32> to vector<128xf32>
    %395 = vector.shape_cast %394 : vector<128xf32> to vector<1x128xf32>
    %cst_203 = arith.constant 2.000000e+00 : f32
    %396 = vector.broadcast %cst_203 : f32 to vector<1x128xf32>
    %397 = arith.divf %395, %396 : vector<1x128xf32>
    %398 = vector.broadcast %397 : vector<1x128xf32> to vector<2x128xf32>
    %399 = arith.subf %166, %398 : vector<2x128xf32>
    %400 = arith.mulf %399, %399 : vector<2x128xf32>
    %cst_204 = arith.constant dense<0.000000e+00> : vector<128xf32>
    %401 = vector.multi_reduction <add>, %400, %cst_204 [0] : vector<2x128xf32> to vector<128xf32>
    %402 = vector.shape_cast %401 : vector<128xf32> to vector<1x128xf32>
    %cst_205 = arith.constant 1.000000e+00 : f32
    %403 = vector.broadcast %cst_205 : f32 to vector<1x128xf32>
    %404 = arith.divf %402, %403 : vector<1x128xf32>
    %405 = arith.cmpf one, %404, %404 : vector<1x128xf32>
    %cst_206 = arith.constant 0.000000e+00 : f32
    %406 = vector.broadcast %cst_206 : f32 to vector<1x128xf32>
    %407 = arith.select %405, %406, %404 : vector<1x128xi1>, vector<1x128xf32>
    %c0_207 = arith.constant 0 : index
    %c0_208 = arith.constant 0 : index
    %408 = vector.load %arg66[%c0_207, %c0_208] : memref<128x164xf32, #tpu.memory_space<vmem>>, vector<128x164xf32>
    %cst_209 = arith.constant dense<0.000000e+00> : vector<1x164xf32>
    %409 = tpu.matmul %407, %408, %cst_209 {dimension_numbers = #tpu.dot_dimension_numbers<[1], [0], [0], [1], [0, 0, 1, 1], [], []>} : vector<1x128xf32>, vector<128x164xf32>, vector<1x164xf32> -> vector<1x164xf32>
    %c0_210 = arith.constant 0 : index
    %c0_211 = arith.constant 0 : index
    %410 = vector.load %arg67[%c0_210, %c0_211] : memref<1x164xf32, #tpu.memory_space<vmem>>, vector<1x164xf32>
    %411 = arith.addf %409, %410 : vector<1x164xf32>
    %cst_212 = arith.constant 0.000000e+00 : f32
    %412 = vector.broadcast %cst_212 : f32 to vector<1x164xf32>
    %413 = arith.cmpf oge, %411, %412 : vector<1x164xf32>
    %cst_213 = arith.constant 0.00999999977 : f32
    %414 = vector.broadcast %cst_213 : f32 to vector<1x164xf32>
    %415 = arith.mulf %414, %411 : vector<1x164xf32>
    %416 = arith.select %413, %411, %415 : vector<1x164xi1>, vector<1x164xf32>
    %cst_214 = arith.constant dense<0.000000e+00> : vector<1xf32>
    %417 = vector.multi_reduction <add>, %416, %cst_214 [1] : vector<1x164xf32> to vector<1xf32>
    %418 = vector.shape_cast %417 : vector<1xf32> to vector<1x1xf32>
    %cst_215 = arith.constant 1.640000e+02 : f32
    %419 = vector.broadcast %cst_215 : f32 to vector<1x1xf32>
    %420 = arith.divf %418, %419 : vector<1x1xf32>
    %421 = vector.broadcast %420 : vector<1x1xf32> to vector<1x164xf32>
    %422 = arith.subf %416, %421 : vector<1x164xf32>
    %423 = arith.mulf %422, %422 : vector<1x164xf32>
    %cst_216 = arith.constant dense<0.000000e+00> : vector<1xf32>
    %424 = vector.multi_reduction <add>, %423, %cst_216 [1] : vector<1x164xf32> to vector<1xf32>
    %425 = vector.shape_cast %424 : vector<1xf32> to vector<1x1xf32>
    %cst_217 = arith.constant 1.640000e+02 : f32
    %426 = vector.broadcast %cst_217 : f32 to vector<1x1xf32>
    %427 = arith.divf %425, %426 : vector<1x1xf32>
    %428 = vector.broadcast %420 : vector<1x1xf32> to vector<1x164xf32>
    %429 = arith.subf %416, %428 : vector<1x164xf32>
    %cst_218 = arith.constant 9.99999974E-6 : f32
    %430 = vector.broadcast %cst_218 : f32 to vector<1x1xf32>
    %431 = arith.addf %427, %430 : vector<1x1xf32>
    %432 = math.rsqrt %431 : vector<1x1xf32>
    %433 = vector.broadcast %432 : vector<1x1xf32> to vector<1x164xf32>
    %434 = arith.mulf %429, %433 : vector<1x164xf32>
    %c0_219 = arith.constant 0 : index
    %c0_220 = arith.constant 0 : index
    %435 = vector.load %arg68[%c0_219, %c0_220] : memref<1x164xf32, #tpu.memory_space<vmem>>, vector<1x164xf32>
    %436 = arith.mulf %434, %435 : vector<1x164xf32>
    %c0_221 = arith.constant 0 : index
    %c0_222 = arith.constant 0 : index
    %437 = vector.load %arg69[%c0_221, %c0_222] : memref<1x164xf32, #tpu.memory_space<vmem>>, vector<1x164xf32>
    %438 = arith.addf %436, %437 : vector<1x164xf32>
    %c0_223 = arith.constant 0 : index
    %c0_224 = arith.constant 0 : index
    %439 = vector.load %arg70[%c0_223, %c0_224] : memref<164x186xf32, #tpu.memory_space<vmem>>, vector<164x186xf32>
    %cst_225 = arith.constant dense<0.000000e+00> : vector<1x186xf32>
    %440 = tpu.matmul %438, %439, %cst_225 {dimension_numbers = #tpu.dot_dimension_numbers<[1], [0], [0], [1], [0, 0, 1, 1], [], []>} : vector<1x164xf32>, vector<164x186xf32>, vector<1x186xf32> -> vector<1x186xf32>
    %c0_226 = arith.constant 0 : index
    %c0_227 = arith.constant 0 : index
    %441 = vector.load %arg71[%c0_226, %c0_227] : memref<1x186xf32, #tpu.memory_space<vmem>>, vector<1x186xf32>
    %442 = arith.addf %440, %441 : vector<1x186xf32>
    %cst_228 = arith.constant 0.000000e+00 : f32
    %443 = vector.broadcast %cst_228 : f32 to vector<1x186xf32>
    %444 = arith.cmpf oge, %442, %443 : vector<1x186xf32>
    %cst_229 = arith.constant 0.00999999977 : f32
    %445 = vector.broadcast %cst_229 : f32 to vector<1x186xf32>
    %446 = arith.mulf %445, %442 : vector<1x186xf32>
    %447 = arith.select %444, %442, %446 : vector<1x186xi1>, vector<1x186xf32>
    %cst_230 = arith.constant dense<0.000000e+00> : vector<1xf32>
    %448 = vector.multi_reduction <add>, %447, %cst_230 [1] : vector<1x186xf32> to vector<1xf32>
    %449 = vector.shape_cast %448 : vector<1xf32> to vector<1x1xf32>
    %cst_231 = arith.constant 1.860000e+02 : f32
    %450 = vector.broadcast %cst_231 : f32 to vector<1x1xf32>
    %451 = arith.divf %449, %450 : vector<1x1xf32>
    %452 = vector.broadcast %451 : vector<1x1xf32> to vector<1x186xf32>
    %453 = arith.subf %447, %452 : vector<1x186xf32>
    %454 = arith.mulf %453, %453 : vector<1x186xf32>
    %cst_232 = arith.constant dense<0.000000e+00> : vector<1xf32>
    %455 = vector.multi_reduction <add>, %454, %cst_232 [1] : vector<1x186xf32> to vector<1xf32>
    %456 = vector.shape_cast %455 : vector<1xf32> to vector<1x1xf32>
    %cst_233 = arith.constant 1.860000e+02 : f32
    %457 = vector.broadcast %cst_233 : f32 to vector<1x1xf32>
    %458 = arith.divf %456, %457 : vector<1x1xf32>
    %459 = vector.broadcast %451 : vector<1x1xf32> to vector<1x186xf32>
    %460 = arith.subf %447, %459 : vector<1x186xf32>
    %cst_234 = arith.constant 9.99999974E-6 : f32
    %461 = vector.broadcast %cst_234 : f32 to vector<1x1xf32>
    %462 = arith.addf %458, %461 : vector<1x1xf32>
    %463 = math.rsqrt %462 : vector<1x1xf32>
    %464 = vector.broadcast %463 : vector<1x1xf32> to vector<1x186xf32>
    %465 = arith.mulf %460, %464 : vector<1x186xf32>
    %c0_235 = arith.constant 0 : index
    %c0_236 = arith.constant 0 : index
    %466 = vector.load %arg72[%c0_235, %c0_236] : memref<1x186xf32, #tpu.memory_space<vmem>>, vector<1x186xf32>
    %467 = arith.mulf %465, %466 : vector<1x186xf32>
    %c0_237 = arith.constant 0 : index
    %c0_238 = arith.constant 0 : index
    %468 = vector.load %arg73[%c0_237, %c0_238] : memref<1x186xf32, #tpu.memory_space<vmem>>, vector<1x186xf32>
    %469 = arith.addf %467, %468 : vector<1x186xf32>
    %c0_239 = arith.constant 0 : index
    %c0_240 = arith.constant 0 : index
    %470 = vector.load %arg74[%c0_239, %c0_240] : memref<186x4xf32, #tpu.memory_space<vmem>>, vector<186x4xf32>
    %cst_241 = arith.constant dense<0.000000e+00> : vector<1x4xf32>
    %471 = tpu.matmul %469, %470, %cst_241 {dimension_numbers = #tpu.dot_dimension_numbers<[1], [0], [0], [1], [0, 0, 1, 1], [], []>} : vector<1x186xf32>, vector<186x4xf32>, vector<1x4xf32> -> vector<1x4xf32>
    %c0_242 = arith.constant 0 : index
    %c0_243 = arith.constant 0 : index
    %472 = vector.load %arg75[%c0_242, %c0_243] : memref<1x4xf32, #tpu.memory_space<vmem>>, vector<1x4xf32>
    %473 = arith.addf %471, %472 : vector<1x4xf32>
    %c0_244 = arith.constant 0 : index
    %c0_245 = arith.constant 0 : index
    %474 = vector.load %arg6[%c0_244, %c0_245] : memref<4x310xf32, #tpu.memory_space<vmem>>, vector<4x310xf32>
    %cst_246 = arith.constant dense<0.000000e+00> : vector<1x310xf32>
    %475 = tpu.matmul %282, %474, %cst_246 {dimension_numbers = #tpu.dot_dimension_numbers<[1], [0], [0], [1], [0, 0, 1, 1], [], []>} : vector<1x4xf32>, vector<4x310xf32>, vector<1x310xf32> -> vector<1x310xf32>
    %c0_247 = arith.constant 0 : index
    %c0_248 = arith.constant 0 : index
    %476 = vector.load %arg7[%c0_247, %c0_248] : memref<4x310xf32, #tpu.memory_space<vmem>>, vector<4x310xf32>
    %cst_249 = arith.constant dense<0.000000e+00> : vector<1x310xf32>
    %477 = tpu.matmul %393, %476, %cst_249 {dimension_numbers = #tpu.dot_dimension_numbers<[1], [0], [0], [1], [0, 0, 1, 1], [], []>} : vector<1x4xf32>, vector<4x310xf32>, vector<1x310xf32> -> vector<1x310xf32>
    %478 = arith.addf %475, %477 : vector<1x310xf32>
    %c0_250 = arith.constant 0 : index
    %c0_251 = arith.constant 0 : index
    %479 = vector.load %arg8[%c0_250, %c0_251] : memref<4x310xf32, #tpu.memory_space<vmem>>, vector<4x310xf32>
    %cst_252 = arith.constant dense<0.000000e+00> : vector<1x310xf32>
    %480 = tpu.matmul %473, %479, %cst_252 {dimension_numbers = #tpu.dot_dimension_numbers<[1], [0], [0], [1], [0, 0, 1, 1], [], []>} : vector<1x4xf32>, vector<4x310xf32>, vector<1x310xf32> -> vector<1x310xf32>
    %481 = arith.addf %478, %480 : vector<1x310xf32>
    %c0_253 = arith.constant 0 : index
    %c0_254 = arith.constant 0 : index
    %482 = vector.load %arg5[%c0_253, %c0_254] : memref<4x310xf32, #tpu.memory_space<vmem>>, vector<4x310xf32>
    %cst_255 = arith.constant dense<0.000000e+00> : vector<2x310xf32>
    %483 = tpu.matmul %171, %482, %cst_255 {dimension_numbers = #tpu.dot_dimension_numbers<[1], [0], [0], [1], [0, 0, 1, 1], [], []>} : vector<2x4xf32>, vector<4x310xf32>, vector<2x310xf32> -> vector<2x310xf32>
    %c0_256 = arith.constant 0 : index
    %c0_257 = arith.constant 0 : index
    %484 = vector.load %arg2[%c0_256, %c0_257] : memref<1x310xf32, #tpu.memory_space<vmem>>, vector<1x310xf32>
    %485 = vector.broadcast %484 : vector<1x310xf32> to vector<2x310xf32>
    %486 = arith.addf %483, %485 : vector<2x310xf32>
    %487 = vector.broadcast %481 : vector<1x310xf32> to vector<2x310xf32>
    %488 = arith.addf %486, %487 : vector<2x310xf32>
    %cst_258 = arith.constant dense<0.000000e+00> : vector<2xf32>
    %489 = vector.multi_reduction <add>, %488, %cst_258 [1] : vector<2x310xf32> to vector<2xf32>
    %490 = vector.shape_cast %489 : vector<2xf32> to vector<2x1xf32>
    %cst_259 = arith.constant 3.100000e+02 : f32
    %491 = vector.broadcast %cst_259 : f32 to vector<2x1xf32>
    %492 = arith.divf %490, %491 : vector<2x1xf32>
    %493 = vector.broadcast %492 : vector<2x1xf32> to vector<2x310xf32>
    %494 = arith.subf %488, %493 : vector<2x310xf32>
    %495 = arith.mulf %494, %494 : vector<2x310xf32>
    %cst_260 = arith.constant dense<0.000000e+00> : vector<2xf32>
    %496 = vector.multi_reduction <add>, %495, %cst_260 [1] : vector<2x310xf32> to vector<2xf32>
    %497 = vector.shape_cast %496 : vector<2xf32> to vector<2x1xf32>
    %cst_261 = arith.constant 3.100000e+02 : f32
    %498 = vector.broadcast %cst_261 : f32 to vector<2x1xf32>
    %499 = arith.divf %497, %498 : vector<2x1xf32>
    %500 = vector.broadcast %492 : vector<2x1xf32> to vector<2x310xf32>
    %501 = arith.subf %488, %500 : vector<2x310xf32>
    %cst_262 = arith.constant 9.99999974E-6 : f32
    %502 = vector.broadcast %cst_262 : f32 to vector<2x1xf32>
    %503 = arith.addf %499, %502 : vector<2x1xf32>
    %504 = math.rsqrt %503 : vector<2x1xf32>
    %505 = vector.broadcast %504 : vector<2x1xf32> to vector<2x310xf32>
    %506 = arith.mulf %501, %505 : vector<2x310xf32>
    %c0_263 = arith.constant 0 : index
    %c0_264 = arith.constant 0 : index
    %507 = vector.load %arg3[%c0_263, %c0_264] : memref<1x310xf32, #tpu.memory_space<vmem>>, vector<1x310xf32>
    %508 = vector.broadcast %507 : vector<1x310xf32> to vector<2x310xf32>
    %509 = arith.mulf %506, %508 : vector<2x310xf32>
    %c0_265 = arith.constant 0 : index
    %c0_266 = arith.constant 0 : index
    %510 = vector.load %arg4[%c0_265, %c0_266] : memref<1x310xf32, #tpu.memory_space<vmem>>, vector<1x310xf32>
    %511 = vector.broadcast %510 : vector<1x310xf32> to vector<2x310xf32>
    %512 = arith.addf %509, %511 : vector<2x310xf32>
    %cst_267 = arith.constant 0.000000e+00 : f32
    %513 = vector.broadcast %cst_267 : f32 to vector<2x310xf32>
    %514 = arith.cmpf oge, %512, %513 : vector<2x310xf32>
    %cst_268 = arith.constant 0.00999999977 : f32
    %515 = vector.broadcast %cst_268 : f32 to vector<2x310xf32>
    %516 = arith.mulf %515, %512 : vector<2x310xf32>
    %517 = arith.select %514, %512, %516 : vector<2x310xi1>, vector<2x310xf32>
    %c0_269 = arith.constant 0 : index
    %c0_270 = arith.constant 0 : index
    %518 = vector.load %arg9[%c0_269, %c0_270] : memref<310x155xf32, #tpu.memory_space<vmem>>, vector<310x155xf32>
    %cst_271 = arith.constant dense<0.000000e+00> : vector<2x155xf32>
    %519 = tpu.matmul %517, %518, %cst_271 {dimension_numbers = #tpu.dot_dimension_numbers<[1], [0], [0], [1], [0, 0, 1, 1], [], []>} : vector<2x310xf32>, vector<310x155xf32>, vector<2x155xf32> -> vector<2x155xf32>
    %c0_272 = arith.constant 0 : index
    %c0_273 = arith.constant 0 : index
    %520 = vector.load %arg10[%c0_272, %c0_273] : memref<1x155xf32, #tpu.memory_space<vmem>>, vector<1x155xf32>
    %521 = vector.broadcast %520 : vector<1x155xf32> to vector<2x155xf32>
    %522 = arith.addf %519, %521 : vector<2x155xf32>
    %cst_274 = arith.constant dense<0.000000e+00> : vector<2xf32>
    %523 = vector.multi_reduction <add>, %522, %cst_274 [1] : vector<2x155xf32> to vector<2xf32>
    %524 = vector.shape_cast %523 : vector<2xf32> to vector<2x1xf32>
    %cst_275 = arith.constant 1.550000e+02 : f32
    %525 = vector.broadcast %cst_275 : f32 to vector<2x1xf32>
    %526 = arith.divf %524, %525 : vector<2x1xf32>
    %527 = vector.broadcast %526 : vector<2x1xf32> to vector<2x155xf32>
    %528 = arith.subf %522, %527 : vector<2x155xf32>
    %529 = arith.mulf %528, %528 : vector<2x155xf32>
    %cst_276 = arith.constant dense<0.000000e+00> : vector<2xf32>
    %530 = vector.multi_reduction <add>, %529, %cst_276 [1] : vector<2x155xf32> to vector<2xf32>
    %531 = vector.shape_cast %530 : vector<2xf32> to vector<2x1xf32>
    %cst_277 = arith.constant 1.550000e+02 : f32
    %532 = vector.broadcast %cst_277 : f32 to vector<2x1xf32>
    %533 = arith.divf %531, %532 : vector<2x1xf32>
    %534 = vector.broadcast %526 : vector<2x1xf32> to vector<2x155xf32>
    %535 = arith.subf %522, %534 : vector<2x155xf32>
    %cst_278 = arith.constant 9.99999974E-6 : f32
    %536 = vector.broadcast %cst_278 : f32 to vector<2x1xf32>
    %537 = arith.addf %533, %536 : vector<2x1xf32>
    %538 = math.rsqrt %537 : vector<2x1xf32>
    %539 = vector.broadcast %538 : vector<2x1xf32> to vector<2x155xf32>
    %540 = arith.mulf %535, %539 : vector<2x155xf32>
    %c0_279 = arith.constant 0 : index
    %c0_280 = arith.constant 0 : index
    %541 = vector.load %arg11[%c0_279, %c0_280] : memref<1x155xf32, #tpu.memory_space<vmem>>, vector<1x155xf32>
    %542 = vector.broadcast %541 : vector<1x155xf32> to vector<2x155xf32>
    %543 = arith.mulf %540, %542 : vector<2x155xf32>
    %c0_281 = arith.constant 0 : index
    %c0_282 = arith.constant 0 : index
    %544 = vector.load %arg12[%c0_281, %c0_282] : memref<1x155xf32, #tpu.memory_space<vmem>>, vector<1x155xf32>
    %545 = vector.broadcast %544 : vector<1x155xf32> to vector<2x155xf32>
    %546 = arith.addf %543, %545 : vector<2x155xf32>
    %cst_283 = arith.constant 0.000000e+00 : f32
    %547 = vector.broadcast %cst_283 : f32 to vector<2x155xf32>
    %548 = arith.cmpf oge, %546, %547 : vector<2x155xf32>
    %cst_284 = arith.constant 0.00999999977 : f32
    %549 = vector.broadcast %cst_284 : f32 to vector<2x155xf32>
    %550 = arith.mulf %549, %546 : vector<2x155xf32>
    %551 = arith.select %548, %546, %550 : vector<2x155xi1>, vector<2x155xf32>
    %c0_285 = arith.constant 0 : index
    %c0_286 = arith.constant 0 : index
    %552 = vector.load %arg13[%c0_285, %c0_286] : memref<155x4xf32, #tpu.memory_space<vmem>>, vector<155x4xf32>
    %cst_287 = arith.constant dense<0.000000e+00> : vector<2x4xf32>
    %553 = tpu.matmul %551, %552, %cst_287 {dimension_numbers = #tpu.dot_dimension_numbers<[1], [0], [0], [1], [0, 0, 1, 1], [], []>} : vector<2x155xf32>, vector<155x4xf32>, vector<2x4xf32> -> vector<2x4xf32>
    %c0_288 = arith.constant 0 : index
    %c0_289 = arith.constant 0 : index
    %554 = vector.load %arg14[%c0_288, %c0_289] : memref<1x4xf32, #tpu.memory_space<vmem>>, vector<1x4xf32>
    %555 = vector.broadcast %554 : vector<1x4xf32> to vector<2x4xf32>
    %556 = arith.addf %553, %555 : vector<2x4xf32>
    %557 = math.tanh %556 : vector<2x4xf32>
    %558 = arith.cmpf one, %557, %557 : vector<2x4xf32>
    %cst_290 = arith.constant 0.000000e+00 : f32
    %559 = vector.broadcast %cst_290 : f32 to vector<2x4xf32>
    %560 = arith.select %558, %559, %557 : vector<2x4xi1>, vector<2x4xf32>
    %cst_291 = arith.constant -3.40282347E+38 : f32
    %cst_292 = arith.constant 3.40282347E+38 : f32
    %561 = vector.broadcast %cst_291 : f32 to vector<2x4xf32>
    %562 = arith.maximumf %561, %560 : vector<2x4xf32>
    %563 = vector.broadcast %cst_292 : f32 to vector<2x4xf32>
    %564 = arith.minimumf %563, %562 : vector<2x4xf32>
    %c0_293 = arith.constant 0 : index
    %c0_294 = arith.constant 0 : index
    %565 = vector.load %arg76[%c0_293, %c0_294] : memref<2x4xf32, #tpu.memory_space<vmem>>, vector<2x4xf32>
    tpu.vector_store %arg76[%c0_293, %c0_294], %564 {strides = array<i32>} : memref<2x4xf32, #tpu.memory_space<vmem>>, vector<2x4xf32>,
    return
  }
}

</mosaic_0001>

<bundles_post_ra>
// kernel: tpu_custom_call.1
= control target key start
LH: loop header
LB: loop body
LE: loop exit
PB: predicated region body
PF: predicated region fallthrough
CT: control target
= control target key end

     0   :  { %s5780_s6 = smov 1   ;;  %s5781_s10 = smov 2   ;;  %s7200_s0 = inlined_call_operand.smem [shape: u32[77], index: -1, kind: input, shape index: {}] }
   0x1   :  { %s5897_s5 = sld [smem:[%s7200_s0]]   ;;  %s5782_s14 = smov 3  }
   0x2   :  { %s5902_s9 = sld [smem:[%s7200_s0 + %s5780_s6]]   ;;  %s5783_s18 = smov 4  }
   0x3   :  { %s5907_s13 = sld [smem:[%s7200_s0 + %s5781_s10]]   ;;  %s5784_s22 = smov 5  }
   0x4   :  { %s5912_s17 = sld [smem:[%s7200_s0 + %s5782_s14]]   ;;  %s5785_s26 = smov 6  }
   0x5   :  { %s5917_s21 = sld [smem:[%s7200_s0 + %s5783_s18]]   ;;  %s5786_s30 = smov 7  }
   0x6   :  { %s5922_s25 = sld [smem:[%s7200_s0 + %s5784_s22]]   ;;  %s5787_s4 = smov 8  }
   0x7   :  { %7233 = sst [smem:[#allocation63_spill]] %s5897_s5  ;;  %s5788_s10 = smov 9  }
   0x8   :  { %7234 = sst [smem:[#allocation64_spill]] %s5902_s9  ;;  %s5789_s15 = smov 10  }
   0x9   :  { %7235 = sst [smem:[#allocation65_spill]] %s5907_s13  ;;  %s5790_s20 = smov 11  }
   0xa   :  { %7236 = sst [smem:[#allocation66_spill]] %s5912_s17  ;;  %s5792_s1 = smov 13  }
   0xb   :  { %7237 = sst [smem:[#allocation67_spill]] %s5917_s21  ;;  %s5793_s7 = smov 14  }
   0xc   :  { %7238 = sst [smem:[#allocation68_spill]] %s5922_s25  ;;  %s5795_s22 = smov 16  }
   0xd   :  { %s5927_s29 = sld [smem:[%s7200_s0 + %s5785_s26]]   ;;  %s5791_s26 = smov 12  }
   0xe   :  { %s5932_s3 = sld [smem:[%s7200_s0 + %s5786_s30]]   ;;  %s5796_s28 = smov 17  }
   0xf   :  { %s5937_s8 = sld [smem:[%s7200_s0 + %s5787_s4]]  }
  0x10   :  { %s5942_s14 = sld [smem:[%s7200_s0 + %s5788_s10]]  }
  0x11   :  { %s5947_s19 = sld [smem:[%s7200_s0 + %s5789_s15]]   ;;  %s5794_s15 = smov 15  }
  0x12   :  { %s5952_s24 = sld [smem:[%s7200_s0 + %s5790_s20]]  }
  0x13   :  { %7239 = sst [smem:[#allocation69_spill]] %s5927_s29 }
  0x14   :  { %7240 = sst [smem:[#allocation70_spill]] %s5932_s3 }
  0x15   :  { %7241 = sst [smem:[#allocation71_spill]] %s5937_s8 }
  0x16   :  { %7242 = sst [smem:[#allocation72_spill]] %s5942_s14 }
  0x17   :  { %7243 = sst [smem:[#allocation73_spill]] %s5947_s19 }
  0x18   :  { %7244 = sst [smem:[#allocation74_spill]] %s5952_s24 }
  0x19   :  { %s5957_s30 = sld [smem:[%s7200_s0 + %s5791_s26]]  }
  0x1a   :  { %s5962_s6 = sld [smem:[%s7200_s0 + %s5792_s1]]  }
  0x1b   :  { %s5967_s12 = sld [smem:[%s7200_s0 + %s5793_s7]]   ;;  %s5797_s7 = smov 18  }
  0x1c   :  { %s5972_s20 = sld [smem:[%s7200_s0 + %s5794_s15]]   ;;  %s5798_s15 = smov 19  }
  0x1d   :  { %s5977_s27 = sld [smem:[%s7200_s0 + %s5795_s22]]   ;;  %s5799_s22 = smov 20  }
  0x1e   :  { %s5982_s4 = sld [smem:[%s7200_s0 + %s5796_s28]]   ;;  %s5800_s28 = smov 21  }
  0x1f   :  { %7245 = sst [smem:[#allocation75_spill]] %s5957_s30 }
  0x20   :  { %7246 = sst [smem:[#allocation76_spill]] %s5962_s6 }
  0x21   :  { %7247 = sst [smem:[#allocation77_spill]] %s5967_s12 }
  0x22   :  { %s5987_s12 = sld [smem:[%s7200_s0 + %s5797_s7]]   ;;  %s5801_s7 = smov 22  }
  0x23   :  { %7248 = sst [smem:[#allocation78_spill]] %s5977_s27 }
  0x24   :  { %7249 = sst [smem:[#allocation79_spill]] %s5982_s4 }
  0x25   :  { %s5992_s30 = sld [smem:[%s7200_s0 + %s5798_s15]]   ;;  %s5802_s15 = smov 23  }
  0x26   :  { %s5997_s24 = sld [smem:[%s7200_s0 + %s5799_s22]]   ;;  %s5803_s22 = smov 24  }
  0x27   :  { %s6002_s6 = sld [smem:[%s7200_s0 + %s5800_s28]]   ;;  %s5804_s28 = smov 25  }
  0x28   :  { %7250 = sst [smem:[#allocation80_spill]] %s5987_s12 }
  0x29   :  { %s6007_s19 = sld [smem:[%s7200_s0 + %s5801_s7]]   ;;  %s5805_s7 = smov 26  }
  0x2a   :  { %s6012_s21 = sld [smem:[%s7200_s0 + %s5802_s15]]   ;;  %s5806_s15 = smov 27  }
  0x2b   :  { %s6017_s17 = sld [smem:[%s7200_s0 + %s5803_s22]]   ;;  %s5807_s22 = smov 28  }
  0x2c   :  { %7251 = sst [smem:[#allocation81_spill]] %s5997_s24 }
  0x2d   :  { %7252 = sst [smem:[#allocation82_spill]] %s6002_s6 }
  0x2e   :  { %s6022_s14 = sld [smem:[%s7200_s0 + %s5804_s28]]   ;;  %s5808_s28 = smov 29  }
  0x2f   :  { %s6027_s13 = sld [smem:[%s7200_s0 + %s5805_s7]]   ;;  %s5809_s7 = smov 30  }
  0x30   :  { %7253 = sst [smem:[#allocation83_spill]] %s6012_s21 }
  0x31   :  { %s6032_s8 = sld [smem:[%s7200_s0 + %s5806_s15]]   ;;  %s5810_s15 = smov 31  }
  0x32   :  { %s6037_s25 = sld [smem:[%s7200_s0 + %s5807_s22]]   ;;  %s5811_s22 = smov 32  }
  0x33   :  { %s6042_s29 = sld [smem:[%s7200_s0 + %s5808_s28]]   ;;  %s5812_s28 = smov 33  }
  0x34   :  { %7254 = sst [smem:[#allocation84_spill]] %s6022_s14 }
  0x35   :  { %s6047_s3 = sld [smem:[%s7200_s0 + %s5809_s7]]   ;;  %s5813_s7 = smov 34  }
  0x36   :  { %s6052_s24 = sld [smem:[%s7200_s0 + %s5810_s15]]   ;;  %s5814_s15 = smov 35  }
  0x37   :  { %7255 = sst [smem:[#allocation85_spill]] %s6032_s8 }
  0x38   :  { %7256 = sst [smem:[#allocation86_spill]] %s6037_s25 }
  0x39   :  { %s6057_s25 = sld [smem:[%s7200_s0 + %s5811_s22]]   ;;  %s5815_s22 = smov 36  }
  0x3a   :  { %s6062_s12 = sld [smem:[%s7200_s0 + %s5812_s28]]   ;;  %s5816_s28 = smov 37  }
  0x3b   :  { %7257 = sst [smem:[#allocation87_spill]] %s6047_s3 }
  0x3c   :  { %7258 = sst [smem:[#allocation88_spill]] %s6052_s24 }
  0x3d   :  { %s6067_s4 = sld [smem:[%s7200_s0 + %s5813_s7]]   ;;  %s5817_s7 = smov 38  }
  0x3e   :  { %s6072_s5 = sld [smem:[%s7200_s0 + %s5814_s15]]   ;;  %s5818_s15 = smov 39  }
  0x3f   :  { %s6077_s27 = sld [smem:[%s7200_s0 + %s5815_s22]]   ;;  %s5819_s22 = smov 40  }
  0x40   :  { %7259 = sst [smem:[#allocation89_spill]] %s6062_s12 }
  0x41   :  { %s6082_s9 = sld [smem:[%s7200_s0 + %s5816_s28]]   ;;  %s5820_s28 = smov 41  }
  0x42   :  { %s6092_s3 = sld [smem:[%s7200_s0 + %s5818_s15]]   ;;  %s5822_s15 = smov 43  }
  0x43   :  { %7260 = sst [smem:[#allocation90_spill]] %s6067_s4 }
  0x44   :  { %s6087_s4 = sld [smem:[%s7200_s0 + %s5817_s7]]   ;;  %s5821_s7 = smov 42  }
  0x45   :  { %7261 = sst [smem:[#allocation91_spill]] %s6077_s27 }
  0x46   :  { %s6097_s27 = sld [smem:[%s7200_s0 + %s5819_s22]]   ;;  %s5823_s22 = smov 44  }
  0x47   :  { %s6102_s12 = sld [smem:[%s7200_s0 + %s5820_s28]]   ;;  %s5824_s28 = smov 45  }
  0x48   :  { %7263 = sst [smem:[#allocation93_spill]] %s6092_s3 }
  0x49   :  { %s6112_s3 = sld [smem:[%s7200_s0 + %s5822_s15]]   ;;  %s5826_s15 = smov 47  }
  0x4a   :  { %7262 = sst [smem:[#allocation92_spill]] %s6087_s4 }
  0x4b   :  { %s6107_s4 = sld [smem:[%s7200_s0 + %s5821_s7]]   ;;  %s5825_s7 = smov 46  }
  0x4c   :  { %s6117_s24 = sld [smem:[%s7200_s0 + %s5823_s22]]   ;;  %s5827_s22 = smov 48  }
  0x4d   :  { %7264 = sst [smem:[#allocation94_spill]] %s6102_s12 }
  0x4e   :  { %s6122_s12 = sld [smem:[%s7200_s0 + %s5824_s28]]   ;;  %s5828_s28 = smov 49  }
  0x4f   :  { %s6132_s8 = sld [smem:[%s7200_s0 + %s5826_s15]]   ;;  %s5830_s15 = smov 51  }
  0x50   :  { %s6142_s14 = sld [smem:[%s7200_s0 + %s5828_s28]]   ;;  %s5832_s28 = smov 53  }
  0x51   :  { %7265 = sst [smem:[#allocation95_spill]] %s6107_s4 }
  0x52   :  { %7266 = sst [smem:[#allocation96_spill]] %s6117_s24 }
  0x53   :  { %s6127_s4 = sld [smem:[%s7200_s0 + %s5825_s7]]   ;;  %s5829_s7 = smov 50  }
  0x54   :  { %s6137_s24 = sld [smem:[%s7200_s0 + %s5827_s22]]   ;;  %s5831_s22 = smov 52  }
  0x55   :  { %7268 = sst [smem:[#allocation98_spill]] %s6132_s8 }
  0x56   :  { %7270 = sst [smem:[#allocation100_spill]] %s6142_s14 }
  0x57   :  { %s6152_s8 = sld [smem:[%s7200_s0 + %s5830_s15]]   ;;  %s5834_s15 = smov 55  }
  0x58   :  { %s6162_s14 = sld [smem:[%s7200_s0 + %s5832_s28]]   ;;  %s5836_s28 = smov 57  }
  0x59   :  { %7267 = sst [smem:[#allocation97_spill]] %s6127_s4 }
  0x5a   :  { %7269 = sst [smem:[#allocation99_spill]] %s6137_s24 }
  0x5b   :  { %s6147_s4 = sld [smem:[%s7200_s0 + %s5829_s7]]   ;;  %s5833_s7 = smov 54  }
  0x5c   :  { %s6157_s24 = sld [smem:[%s7200_s0 + %s5831_s22]]   ;;  %s5835_s22 = smov 56  }
  0x5d   :  { %7272 = sst [smem:[#allocation102_spill]] %s6152_s8 }
  0x5e   :  { %s6172_s8 = sld [smem:[%s7200_s0 + %s5834_s15]]   ;;  %s5838_s15 = smov 59  }
  0x5f   :  { %s6182_s21 = sld [smem:[%s7200_s0 + %s5836_s28]]   ;;  %s5840_s28 = smov 61  }
  0x60   :  { %s6192_s6 = sld [smem:[%s7200_s0 + %s5838_s15]]   ;;  %s5842_s15 = smov 63  }
  0x61   :  { %7271 = sst [smem:[#allocation101_spill]] %s6147_s4 }
  0x62   :  { %7273 = sst [smem:[#allocation103_spill]] %s6157_s24 }
  0x63   :  { %s6167_s4 = sld [smem:[%s7200_s0 + %s5833_s7]]   ;;  %s5837_s7 = smov 58  }
  0x64   :  { %s6177_s24 = sld [smem:[%s7200_s0 + %s5835_s22]]   ;;  %s5839_s22 = smov 60  }
  0x65   :  { %7276 = sst [smem:[#allocation106_spill]] %s6182_s21 }
  0x66   :  { %7278 = sst [smem:[#allocation108_spill]] %s6192_s6 }
  0x67   :  { %s6202_s21 = sld [smem:[%s7200_s0 + %s5840_s28]]   ;;  %s5844_s28 = smov 65  }
  0x68   :  { %s6212_s6 = sld [smem:[%s7200_s0 + %s5842_s15]]   ;;  %s5846_s15 = smov 67  }
  0x69   :  { %7274 = sst [smem:[#allocation104_spill]] %s6167_s4 }
  0x6a   :  { %7275 = sst [smem:[#allocation105_spill]] %s6177_s24 }
  0x6b   :  { %s6187_s4 = sld [smem:[%s7200_s0 + %s5837_s7]]   ;;  %s5841_s7 = smov 62  }
  0x6c   :  { %s6197_s24 = sld [smem:[%s7200_s0 + %s5839_s22]]   ;;  %s5843_s22 = smov 64  }
  0x6d   :  { %7280 = sst [smem:[#allocation110_spill]] %s6202_s21 }
  0x6e   :  { %7282 = sst [smem:[#allocation112_spill]] %s6212_s6 }
  0x6f   :  { %s6222_s21 = sld [smem:[%s7200_s0 + %s5844_s28]]   ;;  %s5848_s28 = smov 69  }
  0x70   :  { %s6232_s6 = sld [smem:[%s7200_s0 + %s5846_s15]]   ;;  %s5850_s15 = smov 71  }
  0x71   :  { %7277 = sst [smem:[#allocation107_spill]] %s6187_s4 }
  0x72   :  { %7279 = sst [smem:[#allocation109_spill]] %s6197_s24 }
  0x73   :  { %s6207_s4 = sld [smem:[%s7200_s0 + %s5841_s7]]   ;;  %s5845_s7 = smov 66  }
  0x74   :  { %s6217_s24 = sld [smem:[%s7200_s0 + %s5843_s22]]   ;;  %s5847_s22 = smov 68  }
  0x75   :  { %7284 = sst [smem:[#allocation114_spill]] %s6222_s21 }
  0x76   :  { %7286 = sst [smem:[#allocation116_spill]] %s6232_s6 }
  0x77   :  { %s6242_s21 = sld [smem:[%s7200_s0 + %s5848_s28]]   ;;  %s5852_s28 = smov 73  }
  0x78   :  { %s6252_s6 = sld [smem:[%s7200_s0 + %s5850_s15]]   ;;  %s5854_s15 = smov 75  }
  0x79   :  { %7281 = sst [smem:[#allocation111_spill]] %s6207_s4 }
  0x7a   :  { %7283 = sst [smem:[#allocation113_spill]] %s6217_s24 }
  0x7b   :  { %s6227_s4 = sld [smem:[%s7200_s0 + %s5845_s7]]   ;;  %s5849_s7 = smov 70  }
  0x7c   :  { %s6237_s24 = sld [smem:[%s7200_s0 + %s5847_s22]]   ;;  %s5851_s22 = smov 72  }
  0x7d   :  { %7288 = sst [smem:[#allocation118_spill]] %s6242_s21 }
  0x7e   :  { %7290 = sst [smem:[#allocation120_spill]] %s6252_s6 }
  0x7f   :  { %s6262_s21 = sld [smem:[%s7200_s0 + %s5852_s28]]  }
  0x80   :  { %s6272_s6 = sld [smem:[%s7200_s0 + %s5854_s15]]  }
  0x81   :  { %7285 = sst [smem:[#allocation115_spill]] %s6227_s4 }
  0x82   :  { %7287 = sst [smem:[#allocation117_spill]] %s6237_s24 }
  0x83   :  { %s6247_s4 = sld [smem:[%s7200_s0 + %s5849_s7]]   ;;  %s5853_s7 = smov 74  }
  0x84   :  { %s6257_s24 = sld [smem:[%s7200_s0 + %s5851_s22]]   ;;  %s5855_s22 = smov 76  }
  0x89   :  { %7289 = sst [smem:[#allocation119_spill]] %s6247_s4 }
  0x8a   :  { %7291 = sst [smem:[#allocation121_spill]] %s6257_s24 }
  0x8b   :  { %s6267_s4 = sld [smem:[%s7200_s0 + %s5853_s7]]  }
  0x8c   :  { %s6277_s24 = sld [smem:[%s7200_s0 + %s5855_s22]]  }
  0x8d   :  { %158 = vsyncpa [#allocation3], 0 }
  0x8e   :  { %159 = vsyncpa [#allocation6], 0 }
  0x8f   :  { %160 = vsyncpa [#allocation9], 0 }
  0x90   :  { %161 = vsyncpa [#allocation12], 0 }
  0x91   :  { %162 = vsyncpa [#allocation15], 0 }
  0x92   :  { %163 = vsyncpa [#allocation18], 0 }
  0x93   :  { %164 = vsyncpa [#allocation21], 0 }
  0x94   :  { %165 = vsyncpa [#allocation24], 0 }
  0x95   :  { %166 = vsyncpa [#allocation27], 0 }
  0x96   :  { %167 = vsyncpa [#allocation30], 0 }
  0x97   :  { %168 = vsyncpa [#allocation33], 0 }
  0x98   :  { %169 = vsyncpa [#allocation36], 0 }
  0x99   :  { %170 = vsyncpa [#allocation39], 0 }
  0x9a   :  { %171 = vsyncpa [#allocation42], 0 }
  0x9b   :  { %172 = vsyncpa [#allocation45], 0 }
  0x9c   :  { %173 = vsyncpa [#allocation4], 0  ;;  %s5856_s0 = smov [#allocation5]   ;;  %s5857_s1 = smov [#allocation8]  }
  0x9d   :  { %s226_s28 = sshll.u32 %s5856_s0, 4  ;;  %s248_s2 = sshll.u32 %s5857_s1, 4  ;;  %s227_s28 = int_to_ptr.vmem [resolvable:$true] %s226_s28  ;;  %s249_s2 = int_to_ptr.vmem [resolvable:$true] %s248_s2 }
  0x9e   :  { %s5110_s7 = scalar_lea.hbm %s5992_s30, 16 }
  0x9f   :  { %p5111_p0 = scmp.ne.s32.totalorder %s5992_s30, %s5110_s7  ;;  %p5114_p1 = scmp.lt.u32.totalorder %s5110_s7, %s5992_s30 }
  0xa1   :  { %p5116_p2 = pnand %p5114_p1, %p5111_p0 }
  0xa3   :  { %5119 = shalt.err (!%p5116_p2)
}
  0xa4   :  { %s5120_s10 = scalar_lea.vmem %s227_s28, 16  ;;  %s5124_s11 = scalar_lea.vmem %s227_s28, 32 }
  0xa5   :  { %p5121_p3 = scmp.ne.s32.totalorder %s227_s28, %s5120_s10  ;;  %p5125_p4 = scmp.lt.s32.totalorder %s227_s28, %s227_s28 }
  0xa6   :  { %p5126_p5 = scmp.lt.s32.totalorder %s5124_s11, %s5120_s10 }
  0xa8   :  { %p5127_p6 = por %p5126_p5, %p5125_p4 }
  0xaa   :  { %p5128_p7 = pnand %p5127_p6, %p5121_p3 }
  0xac   :  { %5131 = shalt.err (!%p5128_p7)
}
  0xad   :  { %229 = dma.hbm_to_vmem [thread:$0]  %s5992_s30, 16, %s227_s28, [#allocation6]  }
  0xae   :  { %s5132_s15 = scalar_lea.hbm %s6007_s19, 16 }
  0xaf   :  { %p5133_p8 = scmp.ne.s32.totalorder %s6007_s19, %s5132_s15  ;;  %p5136_p9 = scmp.lt.u32.totalorder %s5132_s15, %s6007_s19 }
  0xb1   :  { %p5138_p10 = pnand %p5136_p9, %p5133_p8 }
  0xb3   :  { %5141 = shalt.err (!%p5138_p10)
}
  0xb4   :  { %s5142_s16 = scalar_lea.vmem %s249_s2, 16  ;;  %s5146_s18 = scalar_lea.vmem %s249_s2, 32 }
  0xb5   :  { %p5143_p11 = scmp.ne.s32.totalorder %s249_s2, %s5142_s16  ;;  %p5147_p12 = scmp.lt.s32.totalorder %s249_s2, %s249_s2 }
  0xb6   :  { %p5148_p13 = scmp.lt.s32.totalorder %s5146_s18, %s5142_s16 }
  0xb8   :  { %p5149_p0 = por %p5148_p13, %p5147_p12 }
  0xba   :  { %p5150_p1 = pnand %p5149_p0, %p5143_p11 }
  0xbc   :  { %5153 = shalt.err (!%p5150_p1)
}
  0xbd   :  { %251 = dma.hbm_to_vmem [thread:$0]  %s6007_s19, 16, %s249_s2, [#allocation9]  }
  0xbe   :  { %s5858_s22 = smov [#allocation11]   ;;  %s5859_s23 = smov [#allocation14]  }
  0xbf   :  { %s268_s30 = sshll.u32 %s5858_s22, 4  ;;  %s288_s26 = sshll.u32 %s5859_s23, 4  ;;  %s269_s30 = int_to_ptr.vmem [resolvable:$true] %s268_s30  ;;  %s289_s26 = int_to_ptr.vmem [resolvable:$true] %s288_s26 }
  0xc0   :  { %s5154_s0 = scalar_lea.hbm %s6017_s17, 16 }
  0xc1   :  { %p5155_p2 = scmp.ne.s32.totalorder %s6017_s17, %s5154_s0  ;;  %p5158_p3 = scmp.lt.u32.totalorder %s5154_s0, %s6017_s17 }
  0xc3   :  { %p5160_p4 = pnand %p5158_p3, %p5155_p2 }
  0xc5   :  { %5163 = shalt.err (!%p5160_p4)
}
  0xc6   :  { %s5164_s28 = scalar_lea.vmem %s269_s30, 16  ;;  %s5168_s1 = scalar_lea.vmem %s269_s30, 32 }
  0xc7   :  { %p5165_p5 = scmp.ne.s32.totalorder %s269_s30, %s5164_s28  ;;  %p5169_p6 = scmp.lt.s32.totalorder %s269_s30, %s269_s30 }
  0xc8   :  { %p5170_p7 = scmp.lt.s32.totalorder %s5168_s1, %s5164_s28 }
  0xca   :  { %p5171_p8 = por %p5170_p7, %p5169_p6 }
  0xcc   :  { %p5172_p9 = pnand %p5171_p8, %p5165_p5 }
  0xce   :  { %5175 = shalt.err (!%p5172_p9)
}
  0xcf   :  { %271 = dma.hbm_to_vmem [thread:$0]  %s6017_s17, 16, %s269_s30, [#allocation12]  }
  0xd0   :  { %s5176_s19 = scalar_lea.hbm %s6027_s13, 16 }
  0xd1   :  { %p5177_p10 = scmp.ne.s32.totalorder %s6027_s13, %s5176_s19  ;;  %p5180_p11 = scmp.lt.u32.totalorder %s5176_s19, %s6027_s13 }
  0xd3   :  { %p5182_p12 = pnand %p5180_p11, %p5177_p10 }
  0xd5   :  { %5185 = shalt.err (!%p5182_p12)
}
  0xd6   :  { %s5186_s2 = scalar_lea.vmem %s289_s26, 16  ;;  %s5190_s7 = scalar_lea.vmem %s289_s26, 32 }
  0xd7   :  { %p5187_p13 = scmp.ne.s32.totalorder %s289_s26, %s5186_s2  ;;  %p5191_p0 = scmp.lt.s32.totalorder %s289_s26, %s289_s26 }
  0xd8   :  { %p5192_p1 = scmp.lt.s32.totalorder %s5190_s7, %s5186_s2 }
  0xda   :  { %p5193_p2 = por %p5192_p1, %p5191_p0 }
  0xdc   :  { %p5194_p3 = pnand %p5193_p2, %p5187_p13 }
  0xde   :  { %5197 = shalt.err (!%p5194_p3)
}
  0xdf   :  { %291 = dma.hbm_to_vmem [thread:$0]  %s6027_s13, 16, %s289_s26, [#allocation15]  }
  0xe0   :  { %s5860_s10 = smov [#allocation17]   ;;  %s5861_s11 = smov [#allocation20]  }
  0xe1   :  { %s310_s17 = sshll.u32 %s5860_s10, 4  ;;  %s332_s15 = sshll.u32 %s5861_s11, 4  ;;  %s311_s17 = int_to_ptr.vmem [resolvable:$true] %s310_s17  ;;  %s333_s15 = int_to_ptr.vmem [resolvable:$true] %s332_s15 }
  0xe2   :  { %s5198_s16 = scalar_lea.hbm %s6042_s29, 16 }
  0xe3   :  { %p5199_p4 = scmp.ne.s32.totalorder %s6042_s29, %s5198_s16  ;;  %p5202_p5 = scmp.lt.u32.totalorder %s5198_s16, %s6042_s29 }
  0xe5   :  { %p5204_p6 = pnand %p5202_p5, %p5199_p4 }
  0xe7   :  { %5207 = shalt.err (!%p5204_p6)
}
  0xe8   :  { %s5208_s18 = scalar_lea.vmem %s311_s17, 16  ;;  %s5212_s22 = scalar_lea.vmem %s311_s17, 32 }
  0xe9   :  { %p5209_p7 = scmp.ne.s32.totalorder %s311_s17, %s5208_s18  ;;  %p5213_p8 = scmp.lt.s32.totalorder %s311_s17, %s311_s17 }
  0xea   :  { %p5214_p9 = scmp.lt.s32.totalorder %s5212_s22, %s5208_s18 }
  0xec   :  { %p5215_p10 = por %p5214_p9, %p5213_p8 }
  0xee   :  { %p5216_p11 = pnand %p5215_p10, %p5209_p7 }
  0xf0   :  { %5219 = shalt.err (!%p5216_p11)
}
  0xf1   :  { %313 = dma.hbm_to_vmem [thread:$0]  %s6042_s29, 16, %s311_s17, [#allocation18]  }
  0xf2   :  { %s5220_s13 = scalar_lea.hbm %s6057_s25, 16 }
  0xf3   :  { %p5221_p12 = scmp.ne.s32.totalorder %s6057_s25, %s5220_s13  ;;  %p5224_p13 = scmp.lt.u32.totalorder %s5220_s13, %s6057_s25 }
  0xf5   :  { %p5226_p0 = pnand %p5224_p13, %p5221_p12 }
  0xf7   :  { %5229 = shalt.err (!%p5226_p0)
}
  0xf8   :  { %s5230_s30 = scalar_lea.vmem %s333_s15, 16  ;;  %s5234_s23 = scalar_lea.vmem %s333_s15, 32 }
  0xf9   :  { %p5231_p1 = scmp.ne.s32.totalorder %s333_s15, %s5230_s30  ;;  %p5235_p2 = scmp.lt.s32.totalorder %s333_s15, %s333_s15 }
  0xfa   :  { %p5236_p3 = scmp.lt.s32.totalorder %s5234_s23, %s5230_s30 }
  0xfc   :  { %p5237_p4 = por %p5236_p3, %p5235_p2 }
  0xfe   :  { %p5238_p5 = pnand %p5237_p4, %p5231_p1 }
 0x100   :  { %5241 = shalt.err (!%p5238_p5)
}
 0x101   :  { %335 = dma.hbm_to_vmem [thread:$0]  %s6057_s25, 16, %s333_s15, [#allocation21]  }
 0x102   :  { %s5862_s26 = smov [#allocation23]   ;;  %s5863_s0 = smov [#allocation26]  }
 0x103   :  { %s354_s29 = sshll.u32 %s5862_s26, 4  ;;  %s374_s28 = sshll.u32 %s5863_s0, 4  ;;  %s355_s29 = int_to_ptr.vmem [resolvable:$true] %s354_s29  ;;  %s375_s28 = int_to_ptr.vmem [resolvable:$true] %s374_s28 }
 0x104   :  { %s5242_s1 = scalar_lea.hbm %s6072_s5, 16 }
 0x105   :  { %p5243_p6 = scmp.ne.s32.totalorder %s6072_s5, %s5242_s1  ;;  %p5246_p7 = scmp.lt.u32.totalorder %s5242_s1, %s6072_s5 }
 0x107   :  { %p5248_p8 = pnand %p5246_p7, %p5243_p6 }
 0x109   :  { %5251 = shalt.err (!%p5248_p8)
}
 0x10a   :  { %s5252_s19 = scalar_lea.vmem %s355_s29, 16  ;;  %s5256_s2 = scalar_lea.vmem %s355_s29, 32 }
 0x10b   :  { %p5253_p9 = scmp.ne.s32.totalorder %s355_s29, %s5252_s19  ;;  %p5257_p10 = scmp.lt.s32.totalorder %s355_s29, %s355_s29 }
 0x10c   :  { %p5258_p11 = scmp.lt.s32.totalorder %s5256_s2, %s5252_s19 }
 0x10e   :  { %p5259_p12 = por %p5258_p11, %p5257_p10 }
 0x110   :  { %p5260_p13 = pnand %p5259_p12, %p5253_p9 }
 0x112   :  { %5263 = shalt.err (!%p5260_p13)
}
 0x113   :  { %357 = dma.hbm_to_vmem [thread:$0]  %s6072_s5, 16, %s355_s29, [#allocation24]  }
 0x114   :  { %s5264_s25 = scalar_lea.hbm %s6082_s9, 16 }
 0x115   :  { %p5265_p0 = scmp.ne.s32.totalorder %s6082_s9, %s5264_s25  ;;  %p5268_p1 = scmp.lt.u32.totalorder %s5264_s25, %s6082_s9 }
 0x117   :  { %p5270_p2 = pnand %p5268_p1, %p5265_p0 }
 0x119   :  { %5273 = shalt.err (!%p5270_p2)
}
 0x11a   :  { %s5274_s7 = scalar_lea.vmem %s375_s28, 16  ;;  %s5278_s10 = scalar_lea.vmem %s375_s28, 32 }
 0x11b   :  { %p5275_p3 = scmp.ne.s32.totalorder %s375_s28, %s5274_s7  ;;  %p5279_p4 = scmp.lt.s32.totalorder %s375_s28, %s375_s28 }
 0x11c   :  { %p5280_p5 = scmp.lt.s32.totalorder %s5278_s10, %s5274_s7 }
 0x11e   :  { %p5281_p6 = por %p5280_p5, %p5279_p4 }
 0x120   :  { %p5282_p7 = pnand %p5281_p6, %p5275_p3 }
 0x122   :  { %5285 = shalt.err (!%p5282_p7)
}
 0x123   :  { %377 = dma.hbm_to_vmem [thread:$0]  %s6082_s9, 16, %s375_s28, [#allocation27]  }
 0x124   :  { %s5864_s17 = smov [#allocation29]   ;;  %s5865_s11 = smov [#allocation32]  }
 0x125   :  { %s396_s5 = sshll.u32 %s5864_s17, 4  ;;  %s418_s15 = sshll.u32 %s5865_s11, 4  ;;  %s397_s5 = int_to_ptr.vmem [resolvable:$true] %s396_s5  ;;  %s419_s15 = int_to_ptr.vmem [resolvable:$true] %s418_s15 }
 0x126   :  { %s5286_s16 = scalar_lea.hbm %s6097_s27, 16 }
 0x127   :  { %p5287_p8 = scmp.ne.s32.totalorder %s6097_s27, %s5286_s16  ;;  %p5290_p9 = scmp.lt.u32.totalorder %s5286_s16, %s6097_s27 }
 0x129   :  { %p5292_p10 = pnand %p5290_p9, %p5287_p8 }
 0x12b   :  { %5295 = shalt.err (!%p5292_p10)
}
 0x12c   :  { %s5296_s18 = scalar_lea.vmem %s397_s5, 16  ;;  %s5300_s22 = scalar_lea.vmem %s397_s5, 32 }
 0x12d   :  { %p5297_p11 = scmp.ne.s32.totalorder %s397_s5, %s5296_s18  ;;  %p5301_p12 = scmp.lt.s32.totalorder %s397_s5, %s397_s5 }
 0x12e   :  { %p5302_p13 = scmp.lt.s32.totalorder %s5300_s22, %s5296_s18 }
 0x130   :  { %p5303_p0 = por %p5302_p13, %p5301_p12 }
 0x132   :  { %p5304_p1 = pnand %p5303_p0, %p5297_p11 }
 0x134   :  { %5307 = shalt.err (!%p5304_p1)
}
 0x135   :  { %399 = dma.hbm_to_vmem [thread:$0]  %s6097_s27, 16, %s397_s5, [#allocation30]  }
 0x136   :  { %s5308_s9 = scalar_lea.hbm %s6112_s3, 16 }
 0x137   :  { %p5309_p2 = scmp.ne.s32.totalorder %s6112_s3, %s5308_s9  ;;  %p5312_p3 = scmp.lt.u32.totalorder %s5308_s9, %s6112_s3 }
 0x139   :  { %p5314_p4 = pnand %p5312_p3, %p5309_p2 }
 0x13b   :  { %5317 = shalt.err (!%p5314_p4)
}
 0x13c   :  { %s5318_s13 = scalar_lea.vmem %s419_s15, 16  ;;  %s5322_s30 = scalar_lea.vmem %s419_s15, 32 }
 0x13d   :  { %p5319_p5 = scmp.ne.s32.totalorder %s419_s15, %s5318_s13  ;;  %p5323_p6 = scmp.lt.s32.totalorder %s419_s15, %s419_s15 }
 0x13e   :  { %p5324_p7 = scmp.lt.s32.totalorder %s5322_s30, %s5318_s13 }
 0x140   :  { %p5325_p8 = por %p5324_p7, %p5323_p6 }
 0x142   :  { %p5326_p9 = pnand %p5325_p8, %p5319_p5 }
 0x144   :  { %5329 = shalt.err (!%p5326_p9)
}
 0x145   :  { %421 = dma.hbm_to_vmem [thread:$0]  %s6112_s3, 16, %s419_s15, [#allocation33]  }
 0x146   :  { %s5866_s23 = smov [#allocation35]   ;;  %s5867_s26 = smov [#allocation38]  }
 0x147   :  { %s438_s27 = sshll.u32 %s5866_s23, 4  ;;  %s470_s29 = sshll.u32 %s5867_s26, 4  ;;  %s439_s27 = int_to_ptr.vmem [resolvable:$true] %s438_s27  ;;  %s471_s29 = int_to_ptr.vmem [resolvable:$true] %s470_s29 }
 0x148   :  { %s5330_s0 = scalar_lea.hbm %s6122_s12, 16 }
 0x149   :  { %p5331_p10 = scmp.ne.s32.totalorder %s6122_s12, %s5330_s0  ;;  %p5334_p11 = scmp.lt.u32.totalorder %s5330_s0, %s6122_s12 }
 0x14b   :  { %p5336_p12 = pnand %p5334_p11, %p5331_p10 }
 0x14d   :  { %5339 = shalt.err (!%p5336_p12)
}
 0x14e   :  { %s5340_s28 = scalar_lea.vmem %s439_s27, 16  ;;  %s5344_s1 = scalar_lea.vmem %s439_s27, 32 }
 0x14f   :  { %p5341_p13 = scmp.ne.s32.totalorder %s439_s27, %s5340_s28  ;;  %p5345_p0 = scmp.lt.s32.totalorder %s439_s27, %s439_s27 }
 0x150   :  { %p5346_p1 = scmp.lt.s32.totalorder %s5344_s1, %s5340_s28 }
 0x152   :  { %p5347_p2 = por %p5346_p1, %p5345_p0 }
 0x154   :  { %p5348_p3 = pnand %p5347_p2, %p5341_p13 }
 0x156   :  { %5351 = shalt.err (!%p5348_p3)
}
 0x157   :  { %441 = dma.hbm_to_vmem [thread:$0]  %s6122_s12, 16, %s439_s27, [#allocation36]  }
 0x158   :  { %s5352_s3 = scalar_lea.hbm %s6162_s14, 16 }
 0x159   :  { %p5353_p4 = scmp.ne.s32.totalorder %s6162_s14, %s5352_s3  ;;  %p5356_p5 = scmp.lt.u32.totalorder %s5352_s3, %s6162_s14 }
 0x15b   :  { %p5358_p6 = pnand %p5356_p5, %p5353_p4 }
 0x15d   :  { %5361 = shalt.err (!%p5358_p6)
}
 0x15e   :  { %s5362_s19 = scalar_lea.vmem %s471_s29, 16  ;;  %s5366_s2 = scalar_lea.vmem %s471_s29, 32 }
 0x15f   :  { %p5363_p7 = scmp.ne.s32.totalorder %s471_s29, %s5362_s19  ;;  %p5367_p8 = scmp.lt.s32.totalorder %s471_s29, %s471_s29 }
 0x160   :  { %p5368_p9 = scmp.lt.s32.totalorder %s5366_s2, %s5362_s19 }
 0x162   :  { %p5369_p10 = por %p5368_p9, %p5367_p8 }
 0x164   :  { %p5370_p11 = pnand %p5369_p10, %p5363_p7 }
 0x166   :  { %5373 = shalt.err (!%p5370_p11)
}
 0x167   :  { %473 = dma.hbm_to_vmem [thread:$0]  %s6162_s14, 16, %s471_s29, [#allocation39]  }
 0x168   :  { %s5868_s25 = smov [#allocation41]   ;;  %s5869_s7 = smov [#allocation2]  }
 0x169   :  { %s490_s12 = sshll.u32 %s5868_s25, 4  ;;  %s210_s10 = sshll.u32 %s5869_s7, 4  ;;  %s491_s12 = int_to_ptr.vmem [resolvable:$true] %s490_s12  ;;  %s211_s10 = int_to_ptr.vmem [resolvable:$true] %s210_s10 }
 0x16a   :  { %s5374_s17 = scalar_lea.hbm %s6172_s8, 16 }
 0x16b   :  { %p5375_p12 = scmp.ne.s32.totalorder %s6172_s8, %s5374_s17  ;;  %p5378_p13 = scmp.lt.u32.totalorder %s5374_s17, %s6172_s8 }
 0x16d   :  { %p5380_p0 = pnand %p5378_p13, %p5375_p12 }
 0x16f   :  { %5383 = shalt.err (!%p5380_p0)
}
 0x170   :  { %s5384_s5 = scalar_lea.vmem %s491_s12, 16  ;;  %s5388_s11 = scalar_lea.vmem %s491_s12, 32 }
 0x171   :  { %p5385_p1 = scmp.ne.s32.totalorder %s491_s12, %s5384_s5  ;;  %p5389_p2 = scmp.lt.s32.totalorder %s491_s12, %s491_s12 }
 0x172   :  { %p5390_p3 = scmp.lt.s32.totalorder %s5388_s11, %s5384_s5 }
 0x174   :  { %p5391_p4 = por %p5390_p3, %p5389_p2 }
 0x176   :  { %p5392_p5 = pnand %p5391_p4, %p5385_p1 }
 0x178   :  { %5395 = shalt.err (!%p5392_p5)
}
 0x179   :  { %493 = dma.hbm_to_vmem [thread:$0]  %s6172_s8, 16, %s491_s12, [#allocation42]  }
 0x17a   :  { %s5396_s14 = scalar_lea.hbm %s5972_s20, 16 }
 0x17b   :  { %p5397_p6 = scmp.ne.s32.totalorder %s5972_s20, %s5396_s14  ;;  %p5400_p7 = scmp.lt.u32.totalorder %s5396_s14, %s5972_s20 }
 0x17d   :  { %p5402_p8 = pnand %p5400_p7, %p5397_p6 }
 0x17f   :  { %5405 = shalt.err (!%p5402_p8)
}
 0x180   :  { %s5406_s15 = scalar_lea.vmem %s211_s10, 16  ;;  %s5410_s16 = scalar_lea.vmem %s211_s10, 32 }
 0x181   :  { %p5407_p9 = scmp.ne.s32.totalorder %s211_s10, %s5406_s15  ;;  %p5411_p10 = scmp.lt.s32.totalorder %s211_s10, %s211_s10 }
 0x182   :  { %p5412_p11 = scmp.lt.s32.totalorder %s5410_s16, %s5406_s15 }
 0x184   :  { %p5413_p12 = por %p5412_p11, %p5411_p10 }
 0x186   :  { %p5414_p13 = pnand %p5413_p12, %p5407_p9 }
 0x188   :  { %5417 = shalt.err (!%p5414_p13)
}
 0x189   :  { %s7292_s18 = sld [smem:[#allocation82_spill]]  ;;  %s5870_s22 = smov [#allocation7]  }
 0x18a   :  { %213 = dma.hbm_to_vmem [thread:$0]  %s5972_s20, 16, %s211_s10, [#allocation3]  }
 0x18b   :  { %s238_s8 = sshll.u32 %s5870_s22, 4  ;;  %s5871_s9 = smov [#allocation10]   ;;  %s239_s8 = int_to_ptr.vmem [resolvable:$true] %s238_s8 }
 0x18c   :  { %s258_s13 = sshll.u32 %s5871_s9, 4  ;;  %s259_s13 = int_to_ptr.vmem [resolvable:$true] %s258_s13 }
 0x18f   :  { %s5418_s30 = scalar_lea.hbm %s7292_s18, 16 }
 0x190   :  { %p5419_p0 = scmp.ne.s32.totalorder %s7292_s18, %s5418_s30  ;;  %p5422_p1 = scmp.lt.u32.totalorder %s5418_s30, %s7292_s18 }
 0x192   :  { %p5424_p2 = pnand %p5422_p1, %p5419_p0 }
 0x194   :  { %5427 = shalt.err (!%p5424_p2)
}
 0x195   :  { %s5428_s23 = scalar_lea.vmem %s239_s8, 16  ;;  %s5432_s27 = scalar_lea.vmem %s239_s8, 32 }
 0x196   :  { %p5429_p3 = scmp.ne.s32.totalorder %s239_s8, %s5428_s23  ;;  %p5433_p4 = scmp.lt.s32.totalorder %s239_s8, %s239_s8 }
 0x197   :  { %p5434_p5 = scmp.lt.s32.totalorder %s5432_s27, %s5428_s23 }
 0x199   :  { %p5435_p6 = por %p5434_p5, %p5433_p4 }
 0x19b   :  { %p5436_p7 = pnand %p5435_p6, %p5429_p3 }
 0x19d   :  { %5439 = shalt.err (!%p5436_p7)
}
 0x19e   :  { %s7293_s20 = sld [smem:[#allocation83_spill]] }
 0x19f   :  { %241 = dma.hbm_to_vmem [thread:$0]  %s7292_s18, 16, %s239_s8, [#allocation6]  }
 0x1a4   :  { %s5440_s26 = scalar_lea.hbm %s7293_s20, 16 }
 0x1a5   :  { %p5441_p8 = scmp.ne.s32.totalorder %s7293_s20, %s5440_s26  ;;  %p5444_p9 = scmp.lt.u32.totalorder %s5440_s26, %s7293_s20 }
 0x1a7   :  { %p5446_p10 = pnand %p5444_p9, %p5441_p8 }
 0x1a9   :  { %5449 = shalt.err (!%p5446_p10)
}
 0x1aa   :  { %s5450_s29 = scalar_lea.vmem %s259_s13, 16  ;;  %s5454_s0 = scalar_lea.vmem %s259_s13, 32 }
 0x1ab   :  { %p5451_p11 = scmp.ne.s32.totalorder %s259_s13, %s5450_s29  ;;  %p5455_p12 = scmp.lt.s32.totalorder %s259_s13, %s259_s13 }
 0x1ac   :  { %p5456_p13 = scmp.lt.s32.totalorder %s5454_s0, %s5450_s29 }
 0x1ae   :  { %p5457_p0 = por %p5456_p13, %p5455_p12 }
 0x1b0   :  { %p5458_p1 = pnand %p5457_p0, %p5451_p11 }
 0x1b2   :  { %5461 = shalt.err (!%p5458_p1)
}
 0x1b3   :  { %s7294_s28 = sld [smem:[#allocation84_spill]]  ;;  %s5872_s1 = smov [#allocation13]  }
 0x1b4   :  { %261 = dma.hbm_to_vmem [thread:$0]  %s7293_s20, 16, %s259_s13, [#allocation9]  }
 0x1b5   :  { %s278_s3 = sshll.u32 %s5872_s1, 4  ;;  %s5873_s19 = smov [#allocation16]   ;;  %s279_s3 = int_to_ptr.vmem [resolvable:$true] %s278_s3 }
 0x1b6   :  { %s298_s2 = sshll.u32 %s5873_s19, 4  ;;  %s299_s2 = int_to_ptr.vmem [resolvable:$true] %s298_s2 }
 0x1b9   :  { %s5462_s25 = scalar_lea.hbm %s7294_s28, 16 }
 0x1ba   :  { %p5463_p2 = scmp.ne.s32.totalorder %s7294_s28, %s5462_s25  ;;  %p5466_p3 = scmp.lt.u32.totalorder %s5462_s25, %s7294_s28 }
 0x1bc   :  { %p5468_p4 = pnand %p5466_p3, %p5463_p2 }
 0x1be   :  { %5471 = shalt.err (!%p5468_p4)
}
 0x1bf   :  { %s5472_s12 = scalar_lea.vmem %s279_s3, 16  ;;  %s5476_s7 = scalar_lea.vmem %s279_s3, 32 }
 0x1c0   :  { %p5473_p5 = scmp.ne.s32.totalorder %s279_s3, %s5472_s12  ;;  %p5477_p6 = scmp.lt.s32.totalorder %s279_s3, %s279_s3 }
 0x1c1   :  { %p5478_p7 = scmp.lt.s32.totalorder %s5476_s7, %s5472_s12 }
 0x1c3   :  { %p5479_p8 = por %p5478_p7, %p5477_p6 }
 0x1c5   :  { %p5480_p9 = pnand %p5479_p8, %p5473_p5 }
 0x1c7   :  { %5483 = shalt.err (!%p5480_p9)
}
 0x1c8   :  { %s7295_s10 = sld [smem:[#allocation85_spill]] }
 0x1c9   :  { %281 = dma.hbm_to_vmem [thread:$0]  %s7294_s28, 16, %s279_s3, [#allocation12]  }
 0x1ce   :  { %s5484_s17 = scalar_lea.hbm %s7295_s10, 16 }
 0x1cf   :  { %p5485_p10 = scmp.ne.s32.totalorder %s7295_s10, %s5484_s17  ;;  %p5488_p11 = scmp.lt.u32.totalorder %s5484_s17, %s7295_s10 }
 0x1d1   :  { %p5490_p12 = pnand %p5488_p11, %p5485_p10 }
 0x1d3   :  { %5493 = shalt.err (!%p5490_p12)
}
 0x1d4   :  { %s5494_s5 = scalar_lea.vmem %s299_s2, 16  ;;  %s5498_s11 = scalar_lea.vmem %s299_s2, 32 }
 0x1d5   :  { %p5495_p13 = scmp.ne.s32.totalorder %s299_s2, %s5494_s5  ;;  %p5499_p0 = scmp.lt.s32.totalorder %s299_s2, %s299_s2 }
 0x1d6   :  { %p5500_p1 = scmp.lt.s32.totalorder %s5498_s11, %s5494_s5 }
 0x1d8   :  { %p5501_p2 = por %p5500_p1, %p5499_p0 }
 0x1da   :  { %p5502_p3 = pnand %p5501_p2, %p5495_p13 }
 0x1dc   :  { %5505 = shalt.err (!%p5502_p3)
}
 0x1dd   :  { %s7296_s14 = sld [smem:[#allocation88_spill]]  ;;  %s5874_s15 = smov [#allocation19]  }
 0x1de   :  { %301 = dma.hbm_to_vmem [thread:$0]  %s7295_s10, 16, %s299_s2, [#allocation15]  }
 0x1df   :  { %s322_s16 = sshll.u32 %s5874_s15, 4  ;;  %s5875_s18 = smov [#allocation22]   ;;  %s323_s16 = int_to_ptr.vmem [resolvable:$true] %s322_s16 }
 0x1e0   :  { %s342_s22 = sshll.u32 %s5875_s18, 4  ;;  %s343_s22 = int_to_ptr.vmem [resolvable:$true] %s342_s22 }
 0x1e3   :  { %s5506_s8 = scalar_lea.hbm %s7296_s14, 16 }
 0x1e4   :  { %p5507_p4 = scmp.ne.s32.totalorder %s7296_s14, %s5506_s8  ;;  %p5510_p5 = scmp.lt.u32.totalorder %s5506_s8, %s7296_s14 }
 0x1e6   :  { %p5512_p6 = pnand %p5510_p5, %p5507_p4 }
 0x1e8   :  { %5515 = shalt.err (!%p5512_p6)
}
 0x1e9   :  { %s5516_s9 = scalar_lea.vmem %s323_s16, 16  ;;  %s5520_s13 = scalar_lea.vmem %s323_s16, 32 }
 0x1ea   :  { %p5517_p7 = scmp.ne.s32.totalorder %s323_s16, %s5516_s9  ;;  %p5521_p8 = scmp.lt.s32.totalorder %s323_s16, %s323_s16 }
 0x1eb   :  { %p5522_p9 = scmp.lt.s32.totalorder %s5520_s13, %s5516_s9 }
 0x1ed   :  { %p5523_p10 = por %p5522_p9, %p5521_p8 }
 0x1ef   :  { %p5524_p11 = pnand %p5523_p10, %p5517_p7 }
 0x1f1   :  { %5527 = shalt.err (!%p5524_p11)
}
 0x1f2   :  { %s7297_s30 = sld [smem:[#allocation89_spill]] }
 0x1f3   :  { %325 = dma.hbm_to_vmem [thread:$0]  %s7296_s14, 16, %s323_s16, [#allocation18]  }
 0x1f8   :  { %s5528_s23 = scalar_lea.hbm %s7297_s30, 16 }
 0x1f9   :  { %p5529_p12 = scmp.ne.s32.totalorder %s7297_s30, %s5528_s23  ;;  %p5532_p13 = scmp.lt.u32.totalorder %s5528_s23, %s7297_s30 }
 0x1fb   :  { %p5534_p0 = pnand %p5532_p13, %p5529_p12 }
 0x1fd   :  { %5537 = shalt.err (!%p5534_p0)
}
 0x1fe   :  { %s5538_s27 = scalar_lea.vmem %s343_s22, 16  ;;  %s5542_s20 = scalar_lea.vmem %s343_s22, 32 }
 0x1ff   :  { %p5539_p1 = scmp.ne.s32.totalorder %s343_s22, %s5538_s27  ;;  %p5543_p2 = scmp.lt.s32.totalorder %s343_s22, %s343_s22 }
 0x200   :  { %p5544_p3 = scmp.lt.s32.totalorder %s5542_s20, %s5538_s27 }
 0x202   :  { %p5545_p4 = por %p5544_p3, %p5543_p2 }
 0x204   :  { %p5546_p5 = pnand %p5545_p4, %p5539_p1 }
 0x206   :  { %5549 = shalt.err (!%p5546_p5)
}
 0x207   :  { %s7298_s26 = sld [smem:[#allocation91_spill]]  ;;  %s5876_s29 = smov [#allocation25]  }
 0x208   :  { %345 = dma.hbm_to_vmem [thread:$0]  %s7297_s30, 16, %s343_s22, [#allocation21]  }
 0x209   :  { %s364_s0 = sshll.u32 %s5876_s29, 4  ;;  %s5877_s28 = smov [#allocation28]   ;;  %s365_s0 = int_to_ptr.vmem [resolvable:$true] %s364_s0 }
 0x20a   :  { %s386_s1 = sshll.u32 %s5877_s28, 4  ;;  %s387_s1 = int_to_ptr.vmem [resolvable:$true] %s386_s1 }
 0x20d   :  { %s5550_s3 = scalar_lea.hbm %s7298_s26, 16 }
 0x20e   :  { %p5551_p6 = scmp.ne.s32.totalorder %s7298_s26, %s5550_s3  ;;  %p5554_p7 = scmp.lt.u32.totalorder %s5550_s3, %s7298_s26 }
 0x210   :  { %p5556_p8 = pnand %p5554_p7, %p5551_p6 }
 0x212   :  { %5559 = shalt.err (!%p5556_p8)
}
 0x213   :  { %s5560_s19 = scalar_lea.vmem %s365_s0, 16  ;;  %s5564_s2 = scalar_lea.vmem %s365_s0, 32 }
 0x214   :  { %p5561_p9 = scmp.ne.s32.totalorder %s365_s0, %s5560_s19  ;;  %p5565_p10 = scmp.lt.s32.totalorder %s365_s0, %s365_s0 }
 0x215   :  { %p5566_p11 = scmp.lt.s32.totalorder %s5564_s2, %s5560_s19 }
 0x217   :  { %p5567_p12 = por %p5566_p11, %p5565_p10 }
 0x219   :  { %p5568_p13 = pnand %p5567_p12, %p5561_p9 }
 0x21b   :  { %5571 = shalt.err (!%p5568_p13)
}
 0x21c   :  { %s7299_s25 = sld [smem:[#allocation93_spill]] }
 0x21d   :  { %367 = dma.hbm_to_vmem [thread:$0]  %s7298_s26, 16, %s365_s0, [#allocation24]  }
 0x222   :  { %s5572_s12 = scalar_lea.hbm %s7299_s25, 16 }
 0x223   :  { %p5573_p0 = scmp.ne.s32.totalorder %s7299_s25, %s5572_s12  ;;  %p5576_p1 = scmp.lt.u32.totalorder %s5572_s12, %s7299_s25 }
 0x225   :  { %p5578_p2 = pnand %p5576_p1, %p5573_p0 }
 0x227   :  { %5581 = shalt.err (!%p5578_p2)
}
 0x228   :  { %s5582_s7 = scalar_lea.vmem %s387_s1, 16  ;;  %s5586_s10 = scalar_lea.vmem %s387_s1, 32 }
 0x229   :  { %p5583_p3 = scmp.ne.s32.totalorder %s387_s1, %s5582_s7  ;;  %p5587_p4 = scmp.lt.s32.totalorder %s387_s1, %s387_s1 }
 0x22a   :  { %p5588_p5 = scmp.lt.s32.totalorder %s5586_s10, %s5582_s7 }
 0x22c   :  { %p5589_p6 = por %p5588_p5, %p5587_p4 }
 0x22e   :  { %p5590_p7 = pnand %p5589_p6, %p5583_p3 }
 0x230   :  { %5593 = shalt.err (!%p5590_p7)
}
 0x231   :  { %s7300_s17 = sld [smem:[#allocation94_spill]]  ;;  %s5878_s5 = smov [#allocation31]  }
 0x232   :  { %389 = dma.hbm_to_vmem [thread:$0]  %s7299_s25, 16, %s387_s1, [#allocation27]  }
 0x233   :  { %s406_s11 = sshll.u32 %s5878_s5, 4  ;;  %s5879_s14 = smov [#allocation34]   ;;  %s407_s11 = int_to_ptr.vmem [resolvable:$true] %s406_s11 }
 0x234   :  { %s428_s15 = sshll.u32 %s5879_s14, 4  ;;  %s429_s15 = int_to_ptr.vmem [resolvable:$true] %s428_s15 }
 0x237   :  { %s5594_s16 = scalar_lea.hbm %s7300_s17, 16 }
 0x238   :  { %p5595_p8 = scmp.ne.s32.totalorder %s7300_s17, %s5594_s16  ;;  %p5598_p9 = scmp.lt.u32.totalorder %s5594_s16, %s7300_s17 }
 0x23a   :  { %p5600_p10 = pnand %p5598_p9, %p5595_p8 }
 0x23c   :  { %5603 = shalt.err (!%p5600_p10)
}
 0x23d   :  { %s5604_s18 = scalar_lea.vmem %s407_s11, 16  ;;  %s5608_s22 = scalar_lea.vmem %s407_s11, 32 }
 0x23e   :  { %p5605_p11 = scmp.ne.s32.totalorder %s407_s11, %s5604_s18  ;;  %p5609_p12 = scmp.lt.s32.totalorder %s407_s11, %s407_s11 }
 0x23f   :  { %p5610_p13 = scmp.lt.s32.totalorder %s5608_s22, %s5604_s18 }
 0x241   :  { %p5611_p0 = por %p5610_p13, %p5609_p12 }
 0x243   :  { %p5612_p1 = pnand %p5611_p0, %p5605_p11 }
 0x245   :  { %5615 = shalt.err (!%p5612_p1)
}
 0x246   :  { %s7301_s8 = sld [smem:[#allocation96_spill]] }
 0x247   :  { %409 = dma.hbm_to_vmem [thread:$0]  %s7300_s17, 16, %s407_s11, [#allocation30]  }
 0x24c   :  { %s5616_s9 = scalar_lea.hbm %s7301_s8, 16 }
 0x24d   :  { %p5617_p2 = scmp.ne.s32.totalorder %s7301_s8, %s5616_s9  ;;  %p5620_p3 = scmp.lt.u32.totalorder %s5616_s9, %s7301_s8 }
 0x24f   :  { %p5622_p4 = pnand %p5620_p3, %p5617_p2 }
 0x251   :  { %5625 = shalt.err (!%p5622_p4)
}
 0x252   :  { %s5626_s13 = scalar_lea.vmem %s429_s15, 16  ;;  %s5630_s30 = scalar_lea.vmem %s429_s15, 32 }
 0x253   :  { %p5627_p5 = scmp.ne.s32.totalorder %s429_s15, %s5626_s13  ;;  %p5631_p6 = scmp.lt.s32.totalorder %s429_s15, %s429_s15 }
 0x254   :  { %p5632_p7 = scmp.lt.s32.totalorder %s5630_s30, %s5626_s13 }
 0x256   :  { %p5633_p8 = por %p5632_p7, %p5631_p6 }
 0x258   :  { %p5634_p9 = pnand %p5633_p8, %p5627_p5 }
 0x25a   :  { %5637 = shalt.err (!%p5634_p9)
}
 0x25b   :  { %s7302_s23 = sld [smem:[#allocation102_spill]]  ;;  %s5880_s27 = smov [#allocation37]  }
 0x25c   :  { %431 = dma.hbm_to_vmem [thread:$0]  %s7301_s8, 16, %s429_s15, [#allocation33]  }
 0x25d   :  { %s458_s20 = sshll.u32 %s5880_s27, 4  ;;  %s5881_s26 = smov [#allocation40]   ;;  %s459_s20 = int_to_ptr.vmem [resolvable:$true] %s458_s20 }
 0x25e   :  { %s480_s29 = sshll.u32 %s5881_s26, 4  ;;  %s481_s29 = int_to_ptr.vmem [resolvable:$true] %s480_s29 }
 0x261   :  { %s5638_s0 = scalar_lea.hbm %s7302_s23, 16 }
 0x262   :  { %p5639_p10 = scmp.ne.s32.totalorder %s7302_s23, %s5638_s0  ;;  %p5642_p11 = scmp.lt.u32.totalorder %s5638_s0, %s7302_s23 }
 0x264   :  { %p5644_p12 = pnand %p5642_p11, %p5639_p10 }
 0x266   :  { %5647 = shalt.err (!%p5644_p12)
}
 0x267   :  { %s5648_s28 = scalar_lea.vmem %s459_s20, 16  ;;  %s5652_s1 = scalar_lea.vmem %s459_s20, 32 }
 0x268   :  { %p5649_p13 = scmp.ne.s32.totalorder %s459_s20, %s5648_s28  ;;  %p5653_p0 = scmp.lt.s32.totalorder %s459_s20, %s459_s20 }
 0x269   :  { %p5654_p1 = scmp.lt.s32.totalorder %s5652_s1, %s5648_s28 }
 0x26b   :  { %p5655_p2 = por %p5654_p1, %p5653_p0 }
 0x26d   :  { %p5656_p3 = pnand %p5655_p2, %p5649_p13 }
 0x26f   :  { %5659 = shalt.err (!%p5656_p3)
}
 0x270   :  { %s7303_s3 = sld [smem:[#allocation104_spill]] }
 0x271   :  { %461 = dma.hbm_to_vmem [thread:$0]  %s7302_s23, 16, %s459_s20, [#allocation36]  }
 0x276   :  { %s5660_s19 = scalar_lea.hbm %s7303_s3, 16 }
 0x277   :  { %p5661_p4 = scmp.ne.s32.totalorder %s7303_s3, %s5660_s19  ;;  %p5664_p5 = scmp.lt.u32.totalorder %s5660_s19, %s7303_s3 }
 0x279   :  { %p5666_p6 = pnand %p5664_p5, %p5661_p4 }
 0x27b   :  { %5669 = shalt.err (!%p5666_p6)
}
 0x27c   :  { %s5670_s2 = scalar_lea.vmem %s481_s29, 16  ;;  %s5674_s25 = scalar_lea.vmem %s481_s29, 32 }
 0x27d   :  { %p5671_p7 = scmp.ne.s32.totalorder %s481_s29, %s5670_s2  ;;  %p5675_p8 = scmp.lt.s32.totalorder %s481_s29, %s481_s29 }
 0x27e   :  { %p5676_p9 = scmp.lt.s32.totalorder %s5674_s25, %s5670_s2 }
 0x280   :  { %p5677_p10 = por %p5676_p9, %p5675_p8 }
 0x282   :  { %p5678_p11 = pnand %p5677_p10, %p5671_p7 }
 0x284   :  { %5681 = shalt.err (!%p5678_p11)
}
 0x285   :  { %s7304_s12 = sld [smem:[#allocation114_spill]]  ;;  %s5882_s7 = smov [#allocation43]  }
 0x286   :  { %483 = dma.hbm_to_vmem [thread:$0]  %s7303_s3, 16, %s481_s29, [#allocation39]  }
 0x287   :  { %s518_s10 = sshll.u32 %s5882_s7, 4  ;;  %s5883_s17 = smov [#allocation44]   ;;  %s519_s10 = int_to_ptr.vmem [resolvable:$true] %s518_s10 }
 0x288   :  { %s546_s5 = sshll.u32 %s5883_s17, 4  ;;  %s547_s5 = int_to_ptr.vmem [resolvable:$true] %s546_s5 }
 0x28b   :  { %s5682_s11 = scalar_lea.hbm %s7304_s12, 16 }
 0x28c   :  { %p5683_p12 = scmp.ne.s32.totalorder %s7304_s12, %s5682_s11  ;;  %p5686_p13 = scmp.lt.u32.totalorder %s5682_s11, %s7304_s12 }
 0x28e   :  { %p5688_p0 = pnand %p5686_p13, %p5683_p12 }
 0x290   :  { %5691 = shalt.err (!%p5688_p0)
}
 0x291   :  { %s5692_s14 = scalar_lea.vmem %s519_s10, 16  ;;  %s5696_s15 = scalar_lea.vmem %s519_s10, 32 }
 0x292   :  { %p5693_p1 = scmp.ne.s32.totalorder %s519_s10, %s5692_s14  ;;  %p5697_p2 = scmp.lt.s32.totalorder %s519_s10, %s519_s10 }
 0x293   :  { %p5698_p3 = scmp.lt.s32.totalorder %s5696_s15, %s5692_s14 }
 0x295   :  { %p5699_p4 = por %p5698_p3, %p5697_p2 }
 0x297   :  { %p5700_p5 = pnand %p5699_p4, %p5693_p1 }
 0x299   :  { %5703 = shalt.err (!%p5700_p5)
}
 0x29a   :  { %521 = dma.hbm_to_vmem [thread:$0]  %s7304_s12, 16, %s519_s10, [#allocation42]  }
 0x29b   :  { %s5704_s16 = scalar_lea.hbm %s6272_s6, 16 }
 0x29c   :  { %p5705_p6 = scmp.ne.s32.totalorder %s6272_s6, %s5704_s16  ;;  %p5708_p7 = scmp.lt.u32.totalorder %s5704_s16, %s6272_s6 }
 0x29e   :  { %p5710_p8 = pnand %p5708_p7, %p5705_p6 }
 0x2a0   :  { %5713 = shalt.err (!%p5710_p8)
}
 0x2a1   :  { %s5714_s18 = scalar_lea.vmem %s547_s5, 16  ;;  %s5718_s22 = scalar_lea.vmem %s547_s5, 32 }
 0x2a2   :  { %p5715_p9 = scmp.ne.s32.totalorder %s547_s5, %s5714_s18  ;;  %p5719_p10 = scmp.lt.s32.totalorder %s547_s5, %s547_s5 }
 0x2a3   :  { %p5720_p11 = scmp.lt.s32.totalorder %s5718_s22, %s5714_s18 }
 0x2a5   :  { %p5721_p12 = por %p5720_p11, %p5719_p10 }
 0x2a7   :  { %p5722_p13 = pnand %p5721_p12, %p5715_p9 }
 0x2a9   :  { %5725 = shalt.err (!%p5722_p13)
}
 0x2aa   :  { %549 = dma.hbm_to_vmem [thread:$0]  %s6272_s6, 16, %s547_s5, [#allocation45]  }
 0x2ab   :  { %5748 = dma.done.wait [#allocation3], 16  }
 0x2ac   :  { %5749 = vsyncadd [#allocation3], 4294967280 }
 0x2ad   :  { %5750 = dma.done.wait [#allocation6], 32  }
 0x2ae   :  { %5751 = vsyncadd [#allocation6], 4294967264 }
 0x2af   :  { %5752 = dma.done.wait [#allocation9], 32  }
 0x2b0   :  { %5753 = vsyncadd [#allocation9], 4294967264 }
 0x2b1   :  { %5754 = dma.done.wait [#allocation12], 32  }
 0x2b2   :  { %5755 = vsyncadd [#allocation12], 4294967264 }
 0x2b3   :  { %5756 = dma.done.wait [#allocation15], 32  }
 0x2b4   :  { %5757 = vsyncadd [#allocation15], 4294967264 }
 0x2b5   :  { %5758 = dma.done.wait [#allocation18], 32  }
 0x2b6   :  { %5759 = vsyncadd [#allocation18], 4294967264 }
 0x2b7   :  { %5760 = dma.done.wait [#allocation21], 32  }
 0x2b8   :  { %5761 = vsyncadd [#allocation21], 4294967264 }
 0x2b9   :  { %5762 = dma.done.wait [#allocation24], 32  }
 0x2ba   :  { %5763 = vsyncadd [#allocation24], 4294967264 }
 0x2bb   :  { %5764 = dma.done.wait [#allocation27], 32  }
 0x2bc   :  { %5765 = vsyncadd [#allocation27], 4294967264 }
 0x2bd   :  { %5766 = dma.done.wait [#allocation30], 32  }
 0x2be   :  { %5767 = vsyncadd [#allocation30], 4294967264 }
 0x2bf   :  { %5768 = dma.done.wait [#allocation33], 32  }
 0x2c0   :  { %5769 = vsyncadd [#allocation33], 4294967264 }
 0x2c1   :  { %5770 = dma.done.wait [#allocation36], 32  }
 0x2c2   :  { %5771 = vsyncadd [#allocation36], 4294967264 }
 0x2c3   :  { %5772 = dma.done.wait [#allocation39], 32  }
 0x2c4   :  { %5773 = vsyncadd [#allocation39], 4294967264 }
 0x2c5   :  { %5774 = dma.done.wait [#allocation42], 32  }
 0x2c6   :  { %5775 = vsyncadd [#allocation42], 4294967264 }
 0x2c7   :  { %5776 = dma.done.wait [#allocation45], 16  }
 0x2c8   :  { %5777 = vsyncadd [#allocation45], 4294967280  ;;  %s7305_s6 = sld [smem:[#allocation87_spill]]  ;;  %s7306_s8 = sld [smem:[#allocation64_spill]]  ;;  %v5884_v0 = vmov 0.0   ;;  %vm5885_vm0 = vmmov 0  }
 0x2c9   :  { %4338 = vmatprep.subr.mxu1 %v5884_v0  ;;  %4340 = vmatprep.mubr.msk.f32.mxu1 %vm5885_vm0, %v5884_v0  ;;  %vm730_vm1 = vcmask 1043456   ;;  %vm726_vm2 = vcmask 31744   ;;  %s7307_s9 = sld [smem:[#allocation78_spill]]  ;;  %v4197_v3 = vld [vmem:[#allocation19] ss:$0 sm:$0xff]  ;;  %s7308_s13 = sld [smem:[#allocation63_spill]] }
 0x2ca   :  { %4333 = vmatprep.subr.mxu0 %v5884_v0  ;;  %4335 = vmatprep.mubr.msk.f32.mxu0 %vm5885_vm0, %v5884_v0  ;;  %s7309_s30 = sld [smem:[#allocation90_spill]]  ;;  %vm805_vm3 = vcmask 58368   ;;  %vm643_vm4 = vcmask 64512   ;;  %v4200_v21 = vld [vmem:[#allocation20] ss:$0 sm:$0xff]  ;;  %s7310_s23 = sld [smem:[#allocation79_spill]] }
 0x2cb   :  { %v4201_v23 = vld [vmem:[#allocation22] ss:$0 sm:$0xff]  ;;  %v4202_v26 = vld [vmem:[#allocation23] ss:$0 sm:$0xff]  ;;  %vm918_vm5 = vcmask 25600   ;;  %s7311_s27 = sld [smem:[#allocation80_spill]] }
 0x2cc   :  { %v4204_v42 = vld [vmem:[#allocation25] ss:$0 sm:$0xff]  ;;  %v4205_v44 = vld [vmem:[#allocation26] ss:$0 sm:$0xff]  ;;  %v4195_v47 = vld [vmem:[#allocation2] ss:$0 sm:$0xff] }
 0x2cd   :  { %vm1027_vm6 = vcmask 254976   ;;  %v5886_v62 = vmov 0.0|0.0   ;;  %vm1072_vm8 = vcmask 261120   ;;  %s7312_s20 = sld [smem:[#allocation81_spill]]  ;;  %vm1146_vm9 = vcmask 517120   ;;  %s7313_s26 = sld [smem:[#allocation92_spill]] }
 0x2ce   :  { %v718_v1 = vld [vmem:[%s7305_s6] sm:$0xf]  ;;  %vm1195_vm11 = vcmask 523264   ;;  %s7314_s29 = sld [smem:[#allocation86_spill]]  ;;  %vm1497_vm14 = vcmask 516096   ;;  %vm1269_vm15 = vcmask 1041408  }
 0x2cf   :  { %v717_v2 = vld [vmem:[%s7306_s8] sm:$0x3]  ;;  %4339 = vmatpush3.msk.msra.mxu1 %vm730_vm1, %v718_v1  ;;  %s7315_s0 = sld [smem:[#allocation95_spill]]  ;;  %s7316_s28 = sld [smem:[#allocation97_spill]] }
 0x2d0   :  { %4341 = vmatmul.mubr.msk.f32.vlgmr.msra.gmra.mrb[0].mxu1 %vm726_vm2, %v717_v2  ;;  %v635_v14 = vld [vmem:[%s7307_s9] sm:$0xff]  ;;  %4487 = vmatprep.subr.bf16.mxu1 %v5886_v62  ;;  %s7317_s1 = sld [smem:[#allocation98_spill]]  ;;  %s7318_s3 = sld [smem:[#allocation101_spill]] }
 0x2d1   :  { %4361 = vmatprep.mubr.msk.f32.mxu1 %vm5885_vm0, %v5884_v0  ;;  %v634_v15 = vld [vmem:[%s7308_s13] sm:$0x3]  ;;  %4334 = vmatpush3.msra.mxu0 %v635_v14  ;;  %v1062_v58 = vld [vmem:[%s7311_s27 + $0x8] sm:$0xff]  ;;  %v1063_v60 = vld [vmem:[%s7311_s27 + $0x10] sm:$0xff]  ;;  %s7319_s19 = sld [smem:[#allocation99_spill]]  ;;  %s7320_s2 = sld [smem:[#allocation100_spill]] }
 0x2d2   :  { %v836_v16 = vld [vmem:[%s7309_s30] sm:$0xff]  ;;  %4336 = vmatmul.mubr.msk.f32.vlgmr.msra.gmra.mrb[0].mxu0 %vm643_vm4, %v634_v15  ;;  %4343 = vmatprep.subr.mxu0 %v5884_v0  ;;  %v1064_v61 = vld [vmem:[%s7311_s27 + $0x18] sm:$0xff]  ;;  %s7321_s25 = sld [smem:[#allocation103_spill]]  ;;  %s7322_s12 = sld [smem:[#allocation105_spill]] }
 0x2d3   :  { %4344 = vmatpush3.msra.mxu0 %v836_v16  ;;  %4345 = vmatprep.mubr.msk.f32.mxu0 %vm5885_vm0, %v5884_v0  ;;  %v949_v37 = vld [vmem:[%s7310_s23] sm:$0xf]  ;;  %v4491_v63 = vpack.c.bf16 %v1064_v61, %v1063_v60  ;;  %s7323_s7 = sld [smem:[#allocation106_spill]]  ;;  %s7324_s10 = sld [smem:[#allocation109_spill]] }
 0x2d4   :  { %4348 = vmatprep.subr.mxu0 %v5884_v0  ;;  %v1061_v57 = vld [vmem:[%s7311_s27] sm:$0xff]  ;;  %s7325_s17 = sld [smem:[#allocation115_spill]]  ;;  %s7327_s11 = sld [smem:[#allocation108_spill]] }
 0x2d5   :  { %v4488_v59 = vpack.c.bf16 %v1062_v58, %v1061_v57  ;;  %v1416_v57 = vld [vmem:[%s7313_s26] sm:$0xff]  ;;  %v1417_v58 = vld [vmem:[%s7313_s26 + $0x8] sm:$0xff]  ;;  %s7326_s5 = sld [smem:[#allocation107_spill]]  ;;  %s7328_s14 = sld [smem:[#allocation110_spill]] }
 0x2d6   :  { %s7329_s15 = sld [smem:[#allocation116_spill]]  ;;  %s7330_s16 = sld [smem:[#allocation113_spill]] }
 0x2d7   :  { %4489 = vmatpush3.bf16.msra.mxu1 %v4488_v59  ;;  %s7331_s18 = sld [smem:[#allocation119_spill]]  ;;  %s7332_s22 = sld [smem:[#allocation117_spill]] }
 0x2d8   :  { %4490 = vmatprep.subr.bf16.mxu1 %v5886_v62  ;;  %s7333_s6 = sld [smem:[#allocation118_spill]]  ;;  %s7336_s8 = sld [smem:[#allocation111_spill]] }
 0x2d9   :  { %s7337_s9 = sld [smem:[#allocation112_spill]]  ;;  %s7338_s13 = sld [smem:[#allocation70_spill]] }
 0x2da   :  { %s7339_s30 = sld [smem:[#allocation120_spill]]  ;;  %s7340_s23 = sld [smem:[#allocation69_spill]] }
 0x2db   :  { %4492 = vmatpush3.bf16.msra.mxu1 %v4491_v63  ;;  %v4530_v63 = vpack.c.bf16 %v1417_v58, %v1416_v57  ;;  %v1522_v57 = vld [vmem:[%s7315_s0 + $0x38] sm:$0xff]  ;;  %v1315_v58 = vld [vmem:[%s7314_s29 + $0x60] sm:$0xff]  ;;  %s7341_s27 = sld [smem:[#allocation68_spill]] }
 0x2dc   :  { %4505 = vmatprep.subr.bf16.mxu1 %v5886_v62 }
 0x3a3   :  { %v800_v4 = vpop.f32.mrb[0].mxu1 }
 0x3a4   :  { %v801_v5 = vadd.f32 %v4197_v3, %v800_v4  ;;  %v4342_v6 = vpop.f32.mrb[1].mxu1 }
 0x3a6   :  { %5074 = vtanh.f32 %v801_v5  ;;  %v4208_v5 = vld [vmem:[#allocation8] ss:$0 sm:$0xff] }
 0x3b0   :  { %v5075_v7 = vpop.eup %5074 }
 0x3b1   :  { %v806_v8 = vsel %vm805_vm3, %v5075_v7, 0.0 }
 0x3b2   :  { %807 = vadd.xlane.f32.xlu0 %v806_v8 }
 0x43f   :  { %v808_v9 = vpop.xlane.xlu0 %807 }
 0x440   :  { %v810_v10 = vmul.f32 0.125, %v808_v9 }
 0x442   :  { %v811_v11 = vsub.f32 %v5075_v7, %v810_v10  ;;  %v4209_v7 = vld [vmem:[#allocation10] ss:$0 sm:$0xff] }
 0x444   :  { %v812_v12 = vmul.f32 %v811_v11, %v811_v11 }
 0x446   :  { %v813_v13 = vsel %vm805_vm3, %v812_v12, 0.0  ;;  %v4210_v12 = vld [vmem:[#allocation5] ss:$0 sm:$0xff] }
 0x447   :  { %814 = vadd.xlane.f32.xlu0 %v813_v13 }
 0x4d4   :  { %v815_v17 = vpop.xlane.xlu0 %814 }
 0x4d5   :  { %v816_v18 = vmul.f32 0.125, %v815_v17 }
 0x4d7   :  { %v817_v19 = vadd.f32 1e-05, %v816_v18 }
 0x4d9   :  { %5076 = vrsqrt.f32 %v817_v19 }
 0x4e3   :  { %v5077_v20 = vpop.eup %5076 }
 0x4e4   :  { %v819_v22 = vmul.f32 %v5077_v20, %v811_v11 }
 0x4e6   :  { %v827_v24 = vmul.f32 %v4200_v21, %v819_v22  ;;  %v1180_v22 = vld [vmem:[%s7312_s20] sm:$0xff] }
 0x4e8   :  { %v835_v25 = vadd.f32 %v4201_v23, %v827_v24  ;;  %v1181_v23 = vld [vmem:[%s7312_s20 + $0x8] sm:$0xff] }
 0x4e9   :  { %v4494_v24 = vpack.c.bf16 %v1181_v23, %v1180_v22 }
 0x4ea   :  { %4346 = vmatmul.mubr.msk.f32.vlgmr.msra.gmra.mrb[2].mxu0 %vm643_vm4, %v835_v25  ;;  %v1182_v25 = vld [vmem:[%s7312_s20 + $0x10] sm:$0xff] }
 0x4eb   :  { %4350 = vmatprep.mubr.msk.f32.mxu0 %vm5885_vm0, %v5884_v0  ;;  %4349 = vmatpush3.msk.msra.mxu0 %vm730_vm1, %v949_v37 }
 0x4ec   :  { %4493 = vmatprep.subr.bf16.mxu0 %v5886_v62 }
 0x5bd   :  { %v913_v27 = vpop.f32.mrb[2].mxu0 }
 0x5be   :  { %v914_v28 = vadd.f32 %v4202_v26, %v913_v27  ;;  %v4347_v29 = vpop.f32.mrb[3].mxu0  ;;  %v1183_v26 = vld [vmem:[%s7312_s20 + $0x18] sm:$0xff] }
 0x5bf   :  { %v4497_v27 = vpack.c.bf16 %v1183_v26, %v1182_v25  ;;  %v1185_v29 = vld [vmem:[%s7312_s20 + $0x28] sm:$0xff] }
 0x5c0   :  { %5078 = vtanh.f32 %v914_v28  ;;  %v1184_v28 = vld [vmem:[%s7312_s20 + $0x20] sm:$0xff] }
 0x5ca   :  { %v5079_v30 = vpop.eup %5078 }
 0x5cb   :  { %v919_v31 = vsel %vm918_vm5, %v5079_v30, 0.0 }
 0x5cc   :  { %920 = vadd.xlane.f32.xlu1 %v919_v31  ;;  %v1186_v31 = vld [vmem:[%s7312_s20 + $0x30] sm:$0xff] }
 0x659   :  { %v921_v32 = vpop.xlane.xlu1 %920 }
 0x65a   :  { %v923_v33 = vmul.f32 0.25, %v921_v32  ;;  %v1187_v32 = vld [vmem:[%s7312_s20 + $0x38] sm:$0xff]  ;;  %s7342_s20 = sld [smem:[#allocation71_spill]] }
 0x65c   :  { %v924_v34 = vsub.f32 %v5079_v30, %v923_v33  ;;  %v4500_v30 = vpack.c.bf16 %v1185_v29, %v1184_v28  ;;  %v4503_v33 = vpack.c.bf16 %v1187_v32, %v1186_v31  ;;  %v1305_v32 = vld [vmem:[%s7314_s29 + $0x10] sm:$0xff] }
 0x65e   :  { %v925_v35 = vmul.f32 %v924_v34, %v924_v34 }
 0x660   :  { %v926_v36 = vsel %vm918_vm5, %v925_v35, 0.0 }
 0x661   :  { %927 = vadd.xlane.f32.xlu1 %v926_v36 }
 0x6ee   :  { %v928_v38 = vpop.xlane.xlu1 %927 }
 0x6ef   :  { %v929_v39 = vmul.f32 0.25, %v928_v38 }
 0x6f1   :  { %v930_v40 = vadd.f32 1e-05, %v929_v39 }
 0x6f3   :  { %5080 = vrsqrt.f32 %v930_v40 }
 0x6fd   :  { %v5081_v41 = vpop.eup %5080 }
 0x6fe   :  { %v932_v43 = vmul.f32 %v5081_v41, %v924_v34 }
 0x700   :  { %v940_v45 = vmul.f32 %v4204_v42, %v932_v43 }
 0x702   :  { %v948_v46 = vadd.f32 %v4205_v44, %v940_v45 }
 0x704   :  { %4351 = vmatmul.mubr.msk.f32.vlgmr.msra.gmra.mrb[0].mxu0 %vm726_vm2, %v948_v46 }
 0x705   :  { %4380 = vmatprep.mubr.msk.f32.mxu0 %vm5885_vm0, %v5884_v0  ;;  %4495 = vmatpush3.bf16.msra.mxu0 %v4494_v24 }
 0x706   :  { %4496 = vmatprep.subr.bf16.mxu0 %v5886_v62 }
 0x709   :  { %4498 = vmatpush3.bf16.msra.mxu0 %v4497_v27 }
 0x70a   :  { %4499 = vmatprep.subr.bf16.mxu0 %v5886_v62 }
 0x70d   :  { %4501 = vmatpush3.bf16.msra.mxu0 %v4500_v30 }
 0x70e   :  { %4502 = vmatprep.subr.bf16.mxu0 %v5886_v62 }
 0x711   :  { %4504 = vmatpush3.bf16.msra.mxu0 %v4503_v33  ;;  %v1306_v33 = vld [vmem:[%s7314_s29 + $0x18] sm:$0xff] }
 0x712   :  { %4529 = vmatprep.subr.bf16.mxu0 %v5886_v62 }
 0x7d7   :  { %v1022_v48 = vpop.f32.mrb[0].mxu0 }
 0x7d8   :  { %v4946_v49 = vadd.f32 %v4195_v47, %v1022_v48  ;;  %v4352_v50 = vpop.f32.mrb[1].mxu0 }
 0x7da   :  { %v1028_v51 = vsel %vm1027_vm6, %v4946_v49, 0.0 }
 0x7db   :  { %1029 = vadd.xlane.f32.xlu0 %v1028_v51 }
 0x868   :  { %v1030_v52 = vpop.xlane.xlu0 %1029 }
 0x869   :  { %v1032_v53 = vmul.f32 0.03125, %v1030_v52  ;;  %v4212_v52 = vld [vmem:[#allocation11] ss:$0 sm:$0xff] }
 0x86b   :  { %v1033_v54 = vsub.f32 %v4946_v49, %v1032_v53 }
 0x86d   :  { %v1034_v55 = vmul.f32 %v1033_v54, %v1033_v54 }
 0x86f   :  { %v1035_v56 = vsel %vm1027_vm6, %v1034_v55, 0.0 }
 0x870   :  { %1036 = vadd.xlane.f32.xlu1 %v1035_v56 }
 0x8fd   :  { %v1037_v1 = vpop.xlane.xlu1 %1036 }
 0x8fe   :  { %v1038_v2 = vmul.f32 0.03125, %v1037_v1  ;;  %v1418_v1 = vld [vmem:[%s7313_s26 + $0x10] sm:$0xff] }
 0x900   :  { %v1039_v3 = vadd.f32 1e-05, %v1038_v2  ;;  %v1419_v2 = vld [vmem:[%s7313_s26 + $0x18] sm:$0xff]  ;;  %s7343_s26 = sld [smem:[#allocation121_spill]] }
 0x902   :  { %5082 = vrsqrt.f32 %v1039_v3 }
 0x90c   :  { %v5083_v4 = vpop.eup %5082 }
 0x90d   :  { %v1041_v6 = vmul.f32 %v5083_v4, %v1033_v54  ;;  %v4213_v54 = vld [vmem:[#allocation13] ss:$0 sm:$0xff] }
 0x90f   :  { %v1049_v8 = vmul.f32 %v4208_v5, %v1041_v6  ;;  %v4533_v5 = vpack.c.bf16 %v1419_v2, %v1418_v1  ;;  %v1318_v1 = vld [vmem:[%s7314_s29 + $0x78] sm:$0xff] }
 0x911   :  { %v1057_v9 = vadd.f32 %v4209_v7, %v1049_v8 }
 0x913   :  { %vm1058_vm7 = vcmp.ge.f32.partialorder %v1057_v9, 0.0  ;;  %v1059_v10 = vmul.f32 0.01, %v1057_v9 }
 0x915   :  { %v1060_v11 = vsel %vm1058_vm7, %v1057_v9, %v1059_v10  ;;  %v1420_v9 = vld [vmem:[#allocation28] sm:$0x1] }
 0x916   :  { %4362 = vmatmul.mubr.msk.f32.vlgmr.msra.gmra.mrb[2].mxu1 %vm1072_vm8, %v1060_v11  ;;  %v1396_v34 = vsel %vm1027_vm6, %v1060_v11, 0.0 }
 0x917   :  { %4415 = vmatprep.mubr.msk.f32.mxu1 %vm5885_vm0, %v5884_v0  ;;  %v1397_v35 = vrot.slane %v1396_v34, 4 }
 0x919   :  { %v1398_v36 = vadd.f32 %v1397_v35, %v1396_v34  ;;  %v4509_v34 = vpack.c.bf16 %v1306_v33, %v1305_v32  ;;  %v1307_v35 = vld [vmem:[%s7314_s29 + $0x20] sm:$0xff]  ;;  %v1619_v33 = vld [vmem:[%s7316_s28 + $0x8] sm:$0xff] }
 0x91b   :  { %v1399_v37 = vrot.slane %v1398_v36, 2 }
 0x91d   :  { %v1400_v38 = vadd.f32 %v1399_v37, %v1398_v36  ;;  %v1308_v36 = vld [vmem:[%s7314_s29 + $0x28] sm:$0xff] }
 0x91e   :  { %v4512_v37 = vpack.c.bf16 %v1308_v36, %v1307_v35  ;;  %v1618_v35 = vld [vmem:[%s7316_s28] sm:$0xff] }
 0x91f   :  { %v1401_v39 = vrot.slane %v1400_v38, 1 }
 0x921   :  { %v1402_v40 = vadd.f32 %v1401_v39, %v1400_v38  ;;  %v1515_v38 = vld [vmem:[%s7315_s0] sm:$0xff]  ;;  %v1516_v39 = vld [vmem:[%s7315_s0 + $0x8] sm:$0xff] }
 0x923   :  { %v1404_v41 = vmul.f32 0.5, %v1402_v40  ;;  %v4536_v40 = vpack.c.bf16 %v1516_v39, %v1515_v38  ;;  %v1623_v38 = vld [vmem:[%s7316_s28 + $0x28] sm:$0xff]  ;;  %v1625_v39 = vld [vmem:[%s7316_s28 + $0x38] sm:$0xff] }
 0x925   :  { %v1405_v42 = vsub.f32 %v1060_v11, %v1404_v41  ;;  %v1309_v41 = vld [vmem:[%s7314_s29 + $0x30] sm:$0xff] }
 0x927   :  { %v1406_v43 = vmul.f32 %v1405_v42, %v1405_v42  ;;  %v1310_v42 = vld [vmem:[%s7314_s29 + $0x38] sm:$0xff] }
 0x929   :  { %v1407_v46 = vsel %vm1027_vm6, %v1406_v43, 0.0  ;;  %v4515_v43 = vpack.c.bf16 %v1310_v42, %v1309_v41  ;;  %vm1600_vm6 = vcmask 1040384   ;;  %v4551_v41 = vpack.c.bf16 %v1625_v39, %v1623_v38  ;;  %v1622_v42 = vld [vmem:[%s7316_s28 + $0x20] sm:$0xff] }
 0x92a   :  { %v1408_v48 = vrot.slane %v1407_v46, 4  ;;  %v1650_v39 = vld [vmem:[%s7317_s1] sm:$0x3]  ;;  %s7349_s1 = sld [smem:[#allocation76_spill]] }
 0x92c   :  { %v1409_v49 = vadd.f32 %v1408_v48, %v1407_v46  ;;  %v1312_v48 = vld [vmem:[%s7314_s29 + $0x48] sm:$0xff] }
 0x92e   :  { %v1410_v50 = vrot.slane %v1409_v49, 2 }
 0x930   :  { %v1411_v55 = vadd.f32 %v1410_v50, %v1409_v49  ;;  %v1519_v50 = vld [vmem:[%s7315_s0 + $0x20] sm:$0xff] }
 0x932   :  { %v1412_v60 = vrot.slane %v1411_v55, 1 }
 0x934   :  { %v1413_v4 = vadd.f32 %v1412_v60, %v1411_v55  ;;  %v1316_v60 = vld [vmem:[%s7314_s29 + $0x68] sm:$0xff] }
 0x936   :  { %vm1414_vm12 = vcmp.ne.f32.partialorder %v1413_v4, %v1413_v4 }
 0x937   :  { %v1415_v6 = vsel %vm1414_vm12, 0.0, %v1413_v4 }
 0x9e9   :  { %v1142_v13 = vpop.f32.mrb[2].mxu1 }
 0x9ea   :  { %v1143_v14 = vadd.f32 %v4210_v12, %v1142_v13  ;;  %v4363_v15 = vpop.f32.mrb[3].mxu1  ;;  %v4214_v13 = vld [vmem:[#allocation7] ss:$0 sm:$0xff] }
 0x9ec   :  { %v1147_v16 = vsel %vm1146_vm9, %v1143_v14, 0.0 }
 0x9ed   :  { %1148 = vadd.xlane.f32.xlu0 %v1147_v16 }
 0xa7a   :  { %v1149_v17 = vpop.xlane.xlu0 %1148 }
 0xa7b   :  { %v1151_v18 = vmul.f32 0.015625, %v1149_v17 }
 0xa7d   :  { %v1152_v19 = vsub.f32 %v1143_v14, %v1151_v18 }
 0xa7f   :  { %v1153_v20 = vmul.f32 %v1152_v19, %v1152_v19 }
 0xa81   :  { %v1154_v21 = vsel %vm1146_vm9, %v1153_v20, 0.0  ;;  %v1304_v20 = vld [vmem:[%s7314_s29 + $0x8] sm:$0xff] }
 0xa82   :  { %1155 = vadd.xlane.f32.xlu1 %v1154_v21 }
 0xb0f   :  { %v1156_v44 = vpop.xlane.xlu1 %1155 }
 0xb10   :  { %v1157_v45 = vmul.f32 0.015625, %v1156_v44  ;;  %v1517_v44 = vld [vmem:[%s7315_s0 + $0x10] sm:$0xff] }
 0xb12   :  { %v1158_v47 = vadd.f32 1e-05, %v1157_v45  ;;  %v1518_v45 = vld [vmem:[%s7315_s0 + $0x18] sm:$0xff] }
 0xb13   :  { %v4539_v46 = vpack.c.bf16 %v1518_v45, %v1517_v44  ;;  %v1627_v44 = vld [vmem:[%s7316_s28 + $0x48] sm:$0xff]  ;;  %v1629_v45 = vld [vmem:[%s7316_s28 + $0x58] sm:$0xff] }
 0xb14   :  { %5084 = vrsqrt.f32 %v1158_v47  ;;  %v1311_v47 = vld [vmem:[%s7314_s29 + $0x40] sm:$0xff] }
 0xb15   :  { %v4518_v49 = vpack.c.bf16 %v1312_v48, %v1311_v47  ;;  %v4555_v47 = vpack.c.bf16 %v1629_v45, %v1627_v44  ;;  %v1626_v48 = vld [vmem:[%s7316_s28 + $0x40] sm:$0xff] }
 0xb1e   :  { %v5085_v51 = vpop.eup %5084 }
 0xb1f   :  { %v1160_v53 = vmul.f32 %v5085_v51, %v1152_v19  ;;  %v1303_v19 = vld [vmem:[%s7314_s29] sm:$0xff]  ;;  %v1520_v51 = vld [vmem:[%s7315_s0 + $0x28] sm:$0xff] }
 0xb20   :  { %v4506_v21 = vpack.c.bf16 %v1304_v20, %v1303_v19  ;;  %v4217_v19 = vld [vmem:[#allocation16] ss:$0 sm:$0xff] }
 0xb21   :  { %v1168_v56 = vmul.f32 %v4212_v52, %v1160_v53  ;;  %v4542_v52 = vpack.c.bf16 %v1520_v51, %v1519_v50  ;;  %v1313_v53 = vld [vmem:[%s7314_s29 + $0x50] sm:$0xff] }
 0xb22   :  { %4507 = vmatpush3.bf16.msra.mxu1 %v4506_v21 }
 0xb23   :  { %v1176_v59 = vadd.f32 %v4213_v54, %v1168_v56  ;;  %4508 = vmatprep.subr.bf16.mxu1 %v5886_v62  ;;  %v1314_v54 = vld [vmem:[%s7314_s29 + $0x58] sm:$0xff]  ;;  %v1521_v56 = vld [vmem:[%s7315_s0 + $0x30] sm:$0xff]  ;;  %s7347_s0 = sld [smem:[#allocation67_spill]] }
 0xb24   :  { %v4521_v55 = vpack.c.bf16 %v1314_v54, %v1313_v53 }
 0xb25   :  { %vm1177_vm10 = vcmp.ge.f32.partialorder %v1176_v59, 0.0  ;;  %v1178_v61 = vmul.f32 0.01, %v1176_v59 }
 0xb26   :  { %4510 = vmatpush3.bf16.msra.mxu1 %v4509_v34  ;;  %v1621_v34 = vld [vmem:[%s7316_s28 + $0x18] sm:$0xff] }
 0xb27   :  { %v6454_v3 = vsel %vm1177_vm10, %v1176_v59, %v1178_v61  ;;  %4511 = vmatprep.subr.bf16.mxu1 %v5886_v62  ;;  %v4545_v59 = vpack.c.bf16 %v1522_v57, %v1521_v56  ;;  %v4524_v61 = vpack.c.bf16 %v1316_v60, %v1315_v58  ;;  %v4547_v36 = vpack.c.bf16 %v1621_v34, %v1619_v33  ;;  %v1631_v56 = vld [vmem:[%s7316_s28 + $0x68] sm:$0xff]  ;;  %v1633_v57 = vld [vmem:[%s7316_s28 + $0x78] sm:$0xff]  ;;  %v1632_v60 = vld [vmem:[%s7316_s28 + $0x70] sm:$0xff] }
 0xb28   :  { %4381 = vmatmul.mubr.msk.f32.vlgmr.msra.gmra.mrb[4].mxu0 %vm1195_vm11, %v6454_v3  ;;  %v4559_v58 = vpack.c.bf16 %v1633_v57, %v1631_v56  ;;  %v1616_v33 = vld [vmem:[#allocation35] sm:$0x1]  ;;  %vm1740_vm10 = vcmask 286720   ;;  %v1791_v56 = vld [vmem:[%s7318_s3 + $0x10] sm:$0xff] }
 0xb29   :  { %4531 = vmatpush3.bf16.msra.mxu0 %v4530_v63  ;;  %4426 = vmatprep.mubr.msk.f32.mxu0 %vm5885_vm0, %v5884_v0  ;;  %v1317_v63 = vld [vmem:[%s7314_s29 + $0x70] sm:$0xff]  ;;  %s7346_s29 = sld [smem:[#allocation66_spill]] }
 0xb2a   :  { %4532 = vmatprep.subr.bf16.mxu0 %v5886_v62  ;;  %4513 = vmatpush3.bf16.msra.mxu1 %v4512_v37  ;;  %v4527_v2 = vpack.c.bf16 %v1318_v1, %v1317_v63  ;;  %v1620_v37 = vld [vmem:[%s7316_s28 + $0x10] sm:$0xff]  ;;  %v1635_v63 = vld [vmem:[%s7316_s28 + $0x88] sm:$0xff]  ;;  %v1637_v1 = vld [vmem:[%s7316_s28 + $0x98] sm:$0xff] }
 0xb2b   :  { %4514 = vmatprep.subr.bf16.mxu1 %v5886_v62 }
 0xb2d   :  { %4534 = vmatpush3.bf16.msra.mxu0 %v4533_v5 }
 0xb2e   :  { %4535 = vmatprep.subr.bf16.mxu0 %v5886_v62  ;;  %4516 = vmatpush3.bf16.msra.mxu1 %v4515_v43  ;;  %v1624_v43 = vld [vmem:[%s7316_s28 + $0x30] sm:$0xff] }
 0xb2f   :  { %4517 = vmatprep.subr.bf16.mxu1 %v5886_v62 }
 0xb30   :  { %4427 = vmatmul.mubr.msk.f32.vlgmr.msra.gmra.mrb[6].mxu0 %vm1072_vm8, %v1415_v6 }
 0xb31   :  { %4445 = vmatprep.mubr.msk.f32.mxu0 %vm5885_vm0, %v5884_v0  ;;  %4537 = vmatpush3.bf16.msra.mxu0 %v4536_v40  ;;  %v4549_v40 = vpack.c.bf16 %v1620_v37, %v1618_v35 }
 0xb32   :  { %4538 = vmatprep.subr.bf16.mxu0 %v5886_v62  ;;  %4519 = vmatpush3.bf16.msra.mxu1 %v4518_v49  ;;  %v1628_v49 = vld [vmem:[%s7316_s28 + $0x50] sm:$0xff] }
 0xb33   :  { %4520 = vmatprep.subr.bf16.mxu1 %v5886_v62  ;;  %v4557_v50 = vpack.c.bf16 %v1628_v49, %v1626_v48 }
 0xb35   :  { %4540 = vmatpush3.bf16.msra.mxu0 %v4539_v46  ;;  %v4553_v46 = vpack.c.bf16 %v1624_v43, %v1622_v42 }
 0xb36   :  { %4541 = vmatprep.subr.bf16.mxu0 %v5886_v62  ;;  %4522 = vmatpush3.bf16.msra.mxu1 %v4521_v55 }
 0xb37   :  { %4523 = vmatprep.subr.bf16.mxu1 %v5886_v62 }
 0xb39   :  { %4543 = vmatpush3.bf16.msra.mxu0 %v4542_v52 }
 0xb3a   :  { %4544 = vmatprep.subr.bf16.mxu0 %v5886_v62  ;;  %4525 = vmatpush3.bf16.msra.mxu1 %v4524_v61 }
 0xb3b   :  { %4526 = vmatprep.subr.bf16.mxu1 %v5886_v62 }
 0xb3d   :  { %4546 = vmatpush3.bf16.msra.mxu0 %v4545_v59  ;;  %v1630_v59 = vld [vmem:[%s7316_s28 + $0x60] sm:$0xff] }
 0xb3e   :  { %4579 = vmatprep.subr.bf16.mxu0 %v5886_v62  ;;  %4528 = vmatpush3.bf16.msra.mxu1 %v4527_v2  ;;  %v4561_v61 = vpack.c.bf16 %v1632_v60, %v1630_v59  ;;  %v4563_v2 = vpack.c.bf16 %v1637_v1, %v1635_v63  ;;  %v1793_v60 = vld [vmem:[%s7318_s3 + $0x20] sm:$0xff]  ;;  %v1795_v1 = vld [vmem:[%s7318_s3 + $0x30] sm:$0xff] }
 0xb3f   :  { %4548 = vmatprep.subr.bf16.mxu1 %v4547_v36  ;;  %v1652_v36 = vlaneseq }
 0xb41   :  { %v6556_v37 = vshrl.u32 %v1652_v36, 7 }
 0xb43   :  { %v6559_v38 = vsub.s32 0, %v6556_v37 }
 0xbfb   :  { %v1265_v7 = vpop.f32.mrb[4].mxu0 }
 0xbfc   :  { %v4382_v8 = vpop.f32.mrb[5].mxu0  ;;  %v1266_v16 = vadd.f32 %v4214_v13, %v1265_v7  ;;  %v1513_v13 = vld [vmem:[#allocation31] sm:$0x1] }
 0xbfe   :  { %v1270_v18 = vsel %vm1269_vm15, %v1266_v16, 0.0 }
 0xc03   :  { %v1490_v10 = vpop.f32.mrb[6].mxu0 }
 0xc04   :  { %v1491_v11 = vadd.f32 %v1490_v10, %v1420_v9  ;;  %v4428_v12 = vpop.f32.mrb[7].mxu0 }
 0xc06   :  { %v1495_v14 = vmul.f32 0.01, %v1491_v11  ;;  %vm1494_vm13 = vcmp.ge.f32.partialorder %v1491_v11, 0.0 }
 0xc08   :  { %v1496_v15 = vsel %vm1494_vm13, %v1491_v11, %v1495_v14  ;;  %v1511_v11 = vld [vmem:[#allocation29] sm:$0x1] }
 0xc09   :  { %v1498_v17 = vsel %vm1497_vm14, %v1496_v15, 0.0 }
 0xc0a   :  { %1499 = vadd.xlane.f32.xlu0 %v1498_v17 }
 0xc0e   :  { %1271 = vadd.xlane.f32.xlu0 %v1270_v18 }
 0xc97   :  { %v1500_v22 = vpop.xlane.xlu0 %1499 }
 0xc98   :  { %v1501_v23 = vmul.f32 0.015625, %v1500_v22 }
 0xc9a   :  { %v6470_v24 = vsub.f32 %v1496_v15, %v1501_v23 }
 0xc9b   :  { %v1272_v25 = vpop.xlane.xlu0 %1271 }
 0xc9c   :  { %v1274_v26 = vmul.f32 0.0078125, %v1272_v25  ;;  %v1503_v27 = vmul.f32 %v6470_v24, %v6470_v24 }
 0xc9e   :  { %v6474_v28 = vsub.f32 %v1266_v16, %v1274_v26  ;;  %v1504_v29 = vsel %vm1497_vm14, %v1503_v27, 0.0  ;;  %v4216_v16 = vld [vmem:[#allocation14] ss:$0 sm:$0xff] }
 0xc9f   :  { %1505 = vadd.xlane.f32.xlu1 %v1504_v29 }
 0xca0   :  { %v1276_v30 = vmul.f32 %v6474_v28, %v6474_v28 }
 0xca2   :  { %v1277_v31 = vsel %vm1269_vm15, %v1276_v30, 0.0 }
 0xca3   :  { %1278 = vadd.xlane.f32.xlu0 %v1277_v31 }
 0xd2c   :  { %v1506_v4 = vpop.xlane.xlu1 %1505 }
 0xd2d   :  { %v1507_v5 = vmul.f32 0.015625, %v1506_v4  ;;  %v1634_v4 = vld [vmem:[%s7316_s28 + $0x80] sm:$0xff] }
 0xd2f   :  { %v1508_v6 = vadd.f32 1e-05, %v1507_v5  ;;  %v1636_v5 = vld [vmem:[%s7316_s28 + $0x90] sm:$0xff] }
 0xd30   :  { %v1279_v7 = vpop.xlane.xlu0 %1278 }
 0xd31   :  { %5086 = vrsqrt.f32 %v1508_v6  ;;  %v1280_v8 = vmul.f32 0.0078125, %v1279_v7  ;;  %v4565_v6 = vpack.c.bf16 %v1636_v5, %v1634_v4  ;;  %v1639_v7 = vld [vmem:[%s7316_s28 + $0xa8] sm:$0xff]  ;;  %v1797_v5 = vld [vmem:[%s7318_s3 + $0x40] sm:$0xff] }
 0xd33   :  { %v1281_v9 = vadd.f32 1e-05, %v1280_v8  ;;  %v1641_v8 = vld [vmem:[%s7316_s28 + $0xb8] sm:$0xff] }
 0xd35   :  { %5088 = vrsqrt.f32 %v1281_v9  ;;  %v1638_v9 = vld [vmem:[%s7316_s28 + $0xa0] sm:$0xff] }
 0xd3b   :  { %v5087_v10 = vpop.eup %5086 }
 0xd3c   :  { %v1510_v12 = vmul.f32 %v5087_v10, %v6470_v24  ;;  %v1523_v24 = vld [vmem:[#allocation32] sm:$0x1]  ;;  %v4567_v10 = vpack.c.bf16 %v1641_v8, %v1639_v7 }
 0xd3e   :  { %v1512_v14 = vmul.f32 %v1511_v11, %v1510_v12  ;;  %v1640_v11 = vld [vmem:[%s7316_s28 + $0xb0] sm:$0xff]  ;;  %v1643_v12 = vld [vmem:[%s7316_s28 + $0xc8] sm:$0xff] }
 0xd3f   :  { %v5089_v15 = vpop.eup %5088 }
 0xd40   :  { %v1514_v17 = vadd.f32 %v1513_v13, %v1512_v14  ;;  %v1283_v18 = vmul.f32 %v5089_v15, %v6474_v28  ;;  %v1645_v13 = vld [vmem:[%s7316_s28 + $0xd8] sm:$0xff]  ;;  %v4569_v14 = vpack.c.bf16 %v1640_v11, %v1638_v9 }
 0xd41   :  { %v4571_v15 = vpack.c.bf16 %v1645_v13, %v1643_v12 }
 0xd42   :  { %4446 = vmatmul.mubr.msk.f32.vlgmr.msra.gmra.mrb[8].mxu0 %vm1195_vm11, %v1514_v17  ;;  %v1291_v20 = vmul.f32 %v4216_v16, %v1283_v18  ;;  %v1642_v16 = vld [vmem:[%s7316_s28 + $0xc0] sm:$0xff]  ;;  %v1644_v17 = vld [vmem:[%s7316_s28 + $0xd0] sm:$0xff]  ;;  %v1647_v18 = vld [vmem:[%s7316_s28 + $0xe8] sm:$0xff] }
 0xd44   :  { %v1299_v21 = vadd.f32 %v4217_v19, %v1291_v20  ;;  %v1649_v19 = vld [vmem:[%s7316_s28 + $0xf8] sm:$0xff]  ;;  %v4573_v20 = vpack.c.bf16 %v1644_v17, %v1642_v16  ;;  %v1799_v17 = vld [vmem:[%s7318_s3 + $0x50] sm:$0xff] }
 0xd46   :  { %vm1300_vm3 = vcmp.ge.f32.partialorder %v1299_v21, 0.0  ;;  %v1301_v22 = vmul.f32 0.01, %v1299_v21 }
 0xd48   :  { %v6515_v23 = vsel %vm1300_vm3, %v1299_v21, %v1301_v22  ;;  %v4575_v21 = vpack.c.bf16 %v1649_v19, %v1647_v18  ;;  %v1646_v22 = vld [vmem:[%s7316_s28 + $0xe0] sm:$0xff]  ;;  %v1800_v18 = vld [vmem:[%s7318_s3 + $0x58] sm:$0xff] }
 0xd49   :  { %4416 = vmatmul.mubr.f32.vlgmr.msra.gmra.mrb[4].mxu1 %v6515_v23  ;;  %v4595_v19 = vpack.c.bf16 %v1800_v18, %v1799_v17  ;;  %v1913_v17 = vld [vmem:[%s7321_s25 + $0x30] sm:$0xff]  ;;  %v1914_v18 = vld [vmem:[%s7321_s25 + $0x38] sm:$0xff] }
 0xd4a   :  { %1726 = vmatprep.mubr.f32.mxu1 %v5884_v0  ;;  %4550 = vmatpush1.bf16.msra.mxu1 %v4549_v40  ;;  %v6563_v40 = vsub.s32 1, %v6556_v37 }
 0xd4b   :  { %4552 = vmatprep.subr.bf16.mxu1 %v4551_v41  ;;  %v1655_v41 = vrot.slane %v1650_v39, %v6559_v38 }
 0xd4c   :  { %v1659_v42 = vrot.slane %v1650_v39, %v6563_v40 }
 0xd4e   :  { %4554 = vmatpush1.bf16.msra.mxu1 %v4553_v46 }
 0xd4f   :  { %4556 = vmatprep.subr.bf16.mxu1 %v4555_v47 }
 0xd52   :  { %4558 = vmatpush1.bf16.msra.mxu1 %v4557_v50 }
 0xd53   :  { %4560 = vmatprep.subr.bf16.mxu1 %v4559_v58  ;;  %v1792_v58 = vld [vmem:[%s7318_s3 + $0x18] sm:$0xff] }
 0xd54   :  { %v4583_v59 = vpack.c.bf16 %v1792_v58, %v1791_v56 }
 0xd56   :  { %4562 = vmatpush1.bf16.msra.mxu1 %v4561_v61  ;;  %v1794_v61 = vld [vmem:[%s7318_s3 + $0x28] sm:$0xff] }
 0xd57   :  { %4564 = vmatprep.subr.bf16.mxu1 %v4563_v2  ;;  %v4586_v63 = vpack.c.bf16 %v1794_v61, %v1793_v60  ;;  %v1796_v2 = vld [vmem:[%s7318_s3 + $0x38] sm:$0xff] }
 0xd58   :  { %v4589_v4 = vpack.c.bf16 %v1796_v2, %v1795_v1  ;;  %v1908_v1 = vld [vmem:[%s7321_s25 + $0x8] sm:$0xff] }
 0xd5a   :  { %4566 = vmatpush1.bf16.msra.mxu1 %v4565_v6  ;;  %v1798_v6 = vld [vmem:[%s7318_s3 + $0x48] sm:$0xff] }
 0xd5b   :  { %4568 = vmatprep.subr.bf16.mxu1 %v4567_v10  ;;  %v4592_v7 = vpack.c.bf16 %v1798_v6, %v1797_v5 }
 0xd5e   :  { %4570 = vmatpush1.bf16.msra.mxu1 %v4569_v14 }
 0xd5f   :  { %4572 = vmatprep.subr.bf16.mxu1 %v4571_v15 }
 0xd62   :  { %4574 = vmatpush1.bf16.msra.mxu1 %v4573_v20  ;;  %v1801_v20 = vld [vmem:[%s7318_s3 + $0x60] sm:$0xff] }
 0xd63   :  { %4576 = vmatprep.subr.bf16.mxu1 %v4575_v21  ;;  %v1802_v21 = vld [vmem:[%s7318_s3 + $0x68] sm:$0xff] }
 0xe15   :  { %v1593_v25 = vpop.f32.mrb[8].mxu0 }
 0xe16   :  { %v1594_v26 = vadd.f32 %v1593_v25, %v1523_v24  ;;  %v4447_v27 = vpop.f32.mrb[9].mxu0  ;;  %v1648_v24 = vld [vmem:[%s7316_s28 + $0xf0] sm:$0xff]  ;;  %s7348_s28 = sld [smem:[#allocation73_spill]] }
 0xe17   :  { %v4577_v25 = vpack.c.bf16 %v1648_v24, %v1646_v22  ;;  %v4598_v22 = vpack.c.bf16 %v1802_v21, %v1801_v20  ;;  %v1803_v24 = vld [vmem:[%s7318_s3 + $0x70] sm:$0xff]  ;;  %v4619_v20 = vpack.c.bf16 %v1914_v18, %v1913_v17  ;;  %v2033_v18 = vld [vmem:[%s7322_s12 + $0xc0] sm:$0xff] }
 0xe18   :  { %v1598_v28 = vmul.f32 0.01, %v1594_v26  ;;  %vm1597_vm4 = vcmp.ge.f32.partialorder %v1594_v26, 0.0 }
 0xe19   :  { %4578 = vmatpush1.bf16.msra.mxu1 %v4577_v25  ;;  %v1804_v25 = vld [vmem:[%s7318_s3 + $0x78] sm:$0xff] }
 0xe1a   :  { %v1599_v29 = vsel %vm1597_vm4, %v1594_v26, %v1598_v28 }
 0xe1b   :  { %v1601_v30 = vsel %vm1600_vm6, %v1599_v29, 0.0 }
 0xe1c   :  { %v6520_v31 = vpop.f32.mrb[4].mxu1  ;;  %1602 = vadd.xlane.f32.xlu1 %v1601_v30  ;;  %v1614_v30 = vld [vmem:[#allocation34] sm:$0x1] }
 0xe1d   :  { %v4417_v32 = vpop.f32.mrb[5].mxu1 }
 0xea9   :  { %v1603_v51 = vpop.xlane.xlu1 %1602 }
 0xeaa   :  { %v1604_v52 = vmul.f32 0.0078125, %v1603_v51 }
 0xeac   :  { %v1605_v53 = vsub.f32 %v1599_v29, %v1604_v52 }
 0xeae   :  { %v1606_v54 = vmul.f32 %v1605_v53, %v1605_v53 }
 0xeb0   :  { %v1607_v55 = vsel %vm1600_vm6, %v1606_v54, 0.0  ;;  %v1789_v54 = vld [vmem:[%s7318_s3] sm:$0xff] }
 0xeb1   :  { %1608 = vadd.xlane.f32.xlu1 %v1607_v55  ;;  %v1790_v55 = vld [vmem:[%s7318_s3 + $0x8] sm:$0xff] }
 0xeb2   :  { %v4580_v57 = vpack.c.bf16 %v1790_v55, %v1789_v54  ;;  %v1775_v54 = vld [vmem:[%s7320_s2] sm:$0x3]  ;;  %s7352_s2 = sld [smem:[#allocation77_spill]] }
 0xeb3   :  { %v1780_v61 = vrot.slane %v1775_v54, %v6559_v38 }
 0xeb4   :  { %4581 = vmatpush1.bf16.msra.mxu0 %v4580_v57 }
 0xeb5   :  { %4582 = vmatprep.subr.bf16.mxu0 %v5886_v62 }
 0xeb8   :  { %4584 = vmatpush1.bf16.msra.mxu0 %v4583_v59  ;;  %v1784_v59 = vrot.slane %v1775_v54, %v6563_v40 }
 0xeb9   :  { %4585 = vmatprep.subr.bf16.mxu0 %v5886_v62 }
 0xebc   :  { %4587 = vmatpush1.bf16.msra.mxu0 %v4586_v63  ;;  %v1907_v63 = vld [vmem:[%s7321_s25] sm:$0xff] }
 0xebd   :  { %4588 = vmatprep.subr.bf16.mxu0 %v5886_v62 }
 0xec0   :  { %4590 = vmatpush1.bf16.msra.mxu0 %v4589_v4 }
 0xec1   :  { %4591 = vmatprep.subr.bf16.mxu0 %v5886_v62 }
 0xec4   :  { %4593 = vmatpush1.bf16.msra.mxu0 %v4592_v7 }
 0xec5   :  { %4594 = vmatprep.subr.bf16.mxu0 %v5886_v62 }
 0xec8   :  { %4596 = vmatpush1.bf16.msra.mxu0 %v4595_v19 }
 0xec9   :  { %4597 = vmatprep.subr.bf16.mxu0 %v5886_v62 }
 0xecc   :  { %4599 = vmatpush1.bf16.msra.mxu0 %v4598_v22 }
 0xecd   :  { %4600 = vmatprep.subr.bf16.mxu0 %v5886_v62 }
 0xf3e   :  { %v1609_v26 = vpop.xlane.xlu1 %1608 }
 0xf3f   :  { %v1610_v27 = vmul.f32 0.0078125, %v1609_v26  ;;  %v4601_v26 = vpack.c.bf16 %v1804_v25, %v1803_v24  ;;  %v1915_v25 = vld [vmem:[#allocation38] sm:$0x1] }
 0xf41   :  { %v1611_v28 = vadd.f32 1e-05, %v1610_v27  ;;  %v1805_v27 = vld [vmem:[%s7318_s3 + $0x80] sm:$0xff]  ;;  %4602 = vmatpush1.bf16.msra.mxu0 %v4601_v26 }
 0xf42   :  { %4603 = vmatprep.subr.bf16.mxu0 %v5886_v62 }
 0xf43   :  { %5090 = vrsqrt.f32 %v1611_v28  ;;  %v1806_v28 = vld [vmem:[%s7318_s3 + $0x88] sm:$0xff] }
 0xf4d   :  { %v5091_v29 = vpop.eup %5090 }
 0xf4e   :  { %v1613_v32 = vmul.f32 %v5091_v29, %v1605_v53  ;;  %v4604_v29 = vpack.c.bf16 %v1806_v28, %v1805_v27 }
 0xf50   :  { %v1615_v34 = vmul.f32 %v1614_v30, %v1613_v32  ;;  %v1807_v30 = vld [vmem:[%s7318_s3 + $0x90] sm:$0xff]  ;;  %v1808_v32 = vld [vmem:[%s7318_s3 + $0x98] sm:$0xff]  ;;  %4605 = vmatpush1.bf16.msra.mxu0 %v4604_v29 }
 0xf51   :  { %4606 = vmatprep.subr.bf16.mxu0 %v5886_v62 }
 0xf52   :  { %v1617_v35 = vadd.f32 %v1616_v33, %v1615_v34  ;;  %v4607_v33 = vpack.c.bf16 %v1808_v32, %v1807_v30  ;;  %v1809_v34 = vld [vmem:[%s7318_s3 + $0xa0] sm:$0xf]  ;;  %s7350_s3 = sld [smem:[#allocation74_spill]] }
 0xf54   :  { %1727 = vmatmul.mubr.f32.vlgmr.msra.gmra.mrb[6].mxu1 %v1617_v35  ;;  %4608 = vmatpush1.bf16.msra.mxu0 %v4607_v33  ;;  %v1888_v35 = vsel %vm1146_vm9, %v6454_v3, 0.0  ;;  %v2010_v33 = vld [vmem:[%s7322_s12 + $0x8] sm:$0xff] }
 0xf55   :  { %2117 = vmatprep.mubr.f32.mxu1 %v5884_v0  ;;  %1858 = vmatprep.subr.mxu0 %v5884_v0  ;;  %v1889_v36 = vrot.slane %v1888_v35, 4 }
 0xf57   :  { %v1890_v39 = vadd.f32 %v1889_v36, %v1888_v35  ;;  %v2009_v35 = vld [vmem:[%s7322_s12] sm:$0xff] }
 0xf58   :  { %4221 = vmatpush1.msk.msra.mxu0 %vm730_vm1, %v1809_v34  ;;  %v2012_v34 = vld [vmem:[%s7322_s12 + $0x18] sm:$0xff] }
 0xf59   :  { %4609 = vmatprep.subr.bf16.mxu0 %v5886_v62  ;;  %v4621_v36 = vpack.c.bf16 %v2012_v34, %v2010_v33  ;;  %v2005_v34 = vld [vmem:[#allocation40] sm:$0x1] }
 0xf5b   :  { %4622 = vmatprep.subr.bf16.mxu1 %v4621_v36  ;;  %v2007_v36 = vld [vmem:[#allocation41] sm:$0x1] }
0x1027   :  { %v1728_v43 = vpop.f32.mrb[6].mxu1 }
0x1028   :  { %v1729_v44 = vadd.f32 %v1728_v43, %v1655_v41  ;;  %v1730_v45 = vpop.f32.mrb[7].mxu1  ;;  %v1891_v41 = vrot.slane %v1890_v39, 2 }
0x1029   :  { %v1731_v46 = vadd.f32 %v1730_v45, %v1659_v42 }
0x102a   :  { %vm1733_vm7 = vcmp.ge.f32.partialorder %v1729_v44, 0.0  ;;  %v1735_v47 = vmul.f32 0.01, %v1729_v44  ;;  %v1892_v42 = vadd.f32 %v1891_v41, %v1890_v39  ;;  %v2011_v39 = vld [vmem:[%s7322_s12 + $0x10] sm:$0xff]  ;;  %v2014_v41 = vld [vmem:[%s7322_s12 + $0x28] sm:$0xff] }
0x102b   :  { %vm1734_vm8 = vcmp.ge.f32.partialorder %v1731_v46, 0.0  ;;  %v1736_v48 = vmul.f32 0.01, %v1731_v46 }
0x102c   :  { %v1737_v49 = vsel %vm1733_vm7, %v1729_v44, %v1735_v47  ;;  %v1893_v43 = vrot.slane %v1892_v42, 1 }
0x102d   :  { %v1738_v50 = vsel %vm1734_vm8, %v1731_v46, %v1736_v48  ;;  %v1739_v51 = vsel %vm1600_vm6, %v1737_v49, 0.0 }
0x102e   :  { %v1741_v52 = vsel %vm1740_vm10, %v1738_v50, 0.0  ;;  %v1894_v44 = vadd.f32 %v1893_v43, %v1892_v42  ;;  %v2016_v42 = vld [vmem:[%s7322_s12 + $0x38] sm:$0xff]  ;;  %v4623_v43 = vpack.c.bf16 %v2011_v39, %v2009_v35 }
0x102f   :  { %v1742_v53 = vadd.f32 %v1741_v52, %v1739_v51 }
0x1030   :  { %v1895_v45 = vmul.f32 0.5, %v1894_v44  ;;  %v4625_v44 = vpack.c.bf16 %v2016_v42, %v2014_v41  ;;  %4624 = vmatpush1.bf16.msra.mxu1 %v4623_v43  ;;  %v2041_v42 = vld [vmem:[%s7323_s7] sm:$0x3] }
0x1031   :  { %1743 = vadd.xlane.f32.xlu0 %v1742_v53  ;;  %v1761_v53 = vld [vmem:[%s7319_s19] sm:$0x3]  ;;  %v2046_v43 = vrot.slane %v2041_v42, %v6559_v38  ;;  %s7351_s19 = sld [smem:[#allocation75_spill]] }
0x1032   :  { %v1896_v46 = vsub.f32 %v6454_v3, %v1895_v45  ;;  %v1770_v55 = vrot.slane %v1761_v53, %v6563_v40  ;;  %v1766_v56 = vrot.slane %v1761_v53, %v6559_v38  ;;  %v2013_v45 = vld [vmem:[%s7322_s12 + $0x20] sm:$0xff]  ;;  %4626 = vmatprep.subr.bf16.mxu1 %v4625_v44  ;;  %v2050_v44 = vrot.slane %v2041_v42, %v6563_v40 }
0x1033   :  { %v2198_v42 = vld [vmem:[%s7324_s10 + $0xa0] sm:$0xff] }
0x10be   :  { %v1744_v8 = vpop.xlane.xlu0 %1743 }
0x10bf   :  { %v1746_v9 = vmul.f32 0.0060975607, %v1744_v8  ;;  %v4610_v8 = vpack.c.bf16 %v1908_v1, %v1907_v63  ;;  %v2023_v63 = vld [vmem:[%s7322_s12 + $0x70] sm:$0xff] }
0x10c1   :  { %v1747_v10 = vsub.f32 %v1737_v49, %v1746_v9  ;;  %v1748_v11 = vsub.f32 %v1738_v50, %v1746_v9  ;;  %v1897_v50 = vmul.f32 %v1896_v46, %v1896_v46  ;;  %v1909_v9 = vld [vmem:[%s7321_s25 + $0x10] sm:$0xff] }
0x10c2   :  { %v2015_v46 = vld [vmem:[%s7322_s12 + $0x30] sm:$0xff] }
0x10c3   :  { %v1749_v12 = vmul.f32 %v1747_v10, %v1747_v10  ;;  %v1750_v13 = vmul.f32 %v1748_v11, %v1748_v11  ;;  %v1898_v51 = vsel %vm1146_vm9, %v1897_v50, 0.0  ;;  %vm1811_vm9 = vcmask 293888  }
0x10c4   :  { %v1899_v52 = vrot.slane %v1898_v51, 4 }
0x10c5   :  { %v1751_v14 = vsel %vm1600_vm6, %v1749_v12, 0.0  ;;  %v1752_v15 = vsel %vm1740_vm10, %v1750_v13, 0.0  ;;  %v1911_v13 = vld [vmem:[%s7321_s25 + $0x20] sm:$0xff] }
0x10c6   :  { %v1753_v16 = vadd.f32 %v1752_v15, %v1751_v14  ;;  %v1900_v3 = vadd.f32 %v1899_v52, %v1898_v51  ;;  %v1912_v14 = vld [vmem:[%s7321_s25 + $0x28] sm:$0xff]  ;;  %v2017_v51 = vld [vmem:[%s7322_s12 + $0x40] sm:$0xff]  ;;  %v2019_v52 = vld [vmem:[%s7322_s12 + $0x50] sm:$0xff] }
0x10c7   :  { %v4631_v53 = vpack.c.bf16 %v2019_v52, %v2017_v51 }
0x10c8   :  { %1754 = vadd.xlane.f32.xlu1 %v1753_v16  ;;  %v1901_v5 = vrot.slane %v1900_v3, 2  ;;  %v4616_v16 = vpack.c.bf16 %v1912_v14, %v1911_v13  ;;  %v2031_v13 = vld [vmem:[%s7322_s12 + $0xb0] sm:$0xff]  ;;  %v2034_v14 = vld [vmem:[%s7322_s12 + $0xc8] sm:$0xff] }
0x1155   :  { %v1755_v47 = vpop.xlane.xlu1 %1754 }
0x1156   :  { %v1756_v48 = vmul.f32 0.0060975607, %v1755_v47  ;;  %v2018_v47 = vld [vmem:[%s7322_s12 + $0x48] sm:$0xff] }
0x1158   :  { %v1757_v49 = vadd.f32 1e-05, %v1756_v48  ;;  %v2020_v48 = vld [vmem:[%s7322_s12 + $0x58] sm:$0xff] }
0x1159   :  { %v4629_v50 = vpack.c.bf16 %v2020_v48, %v2018_v47 }
0x115a   :  { %5092 = vrsqrt.f32 %v1757_v49  ;;  %v4627_v49 = vpack.c.bf16 %v2015_v46, %v2013_v45 }
0x115c   :  { %4628 = vmatpush1.bf16.msra.mxu1 %v4627_v49 }
0x115d   :  { %4630 = vmatprep.subr.bf16.mxu1 %v4629_v50 }
0x1160   :  { %4632 = vmatpush1.bf16.msra.mxu1 %v4631_v53 }
0x1164   :  { %v5093_v57 = vpop.eup %5092 }
0x1165   :  { %v1760_v58 = vmul.f32 %v5093_v57, %v1748_v11  ;;  %v1759_v60 = vmul.f32 %v5093_v57, %v1747_v10  ;;  %v1910_v11 = vld [vmem:[%s7321_s25 + $0x18] sm:$0xff]  ;;  %v1902_v10 = vadd.f32 %v1901_v5, %v1900_v3  ;;  %s5888_s25 = smov [#allocation46]  }
0x1166   :  { %v4613_v12 = vpack.c.bf16 %v1910_v11, %v1909_v9  ;;  %v2030_v9 = vld [vmem:[%s7322_s12 + $0xa8] sm:$0xff]  ;;  %v2032_v11 = vld [vmem:[%s7322_s12 + $0xb8] sm:$0xff] }
0x1167   :  { %v1774_v2 = vmul.f32 %v1770_v55, %v1760_v58  ;;  %v1773_v4 = vmul.f32 %v1766_v56, %v1759_v60  ;;  %v1903_v15 = vrot.slane %v1902_v10, 1  ;;  %v2022_v58 = vld [vmem:[%s7322_s12 + $0x68] sm:$0xff] }
0x1169   :  { %v1788_v6 = vadd.f32 %v1784_v59, %v1774_v2  ;;  %v1787_v7 = vadd.f32 %v1780_v61, %v1773_v4  ;;  %v1904_v19 = vadd.f32 %v1903_v15, %v1902_v10  ;;  %v2024_v59 = vld [vmem:[%s7322_s12 + $0x78] sm:$0xff]  ;;  %v2021_v61 = vld [vmem:[%s7322_s12 + $0x60] sm:$0xff]  ;;  %v2026_v2 = vld [vmem:[%s7322_s12 + $0x88] sm:$0xff] }
0x116a   :  { %v4633_v60 = vpack.c.bf16 %v2024_v59, %v2022_v58  ;;  %v4635_v1 = vpack.c.bf16 %v2023_v63, %v2021_v61  ;;  %v2028_v4 = vld [vmem:[%s7322_s12 + $0x98] sm:$0xff]  ;;  %v2029_v10 = vld [vmem:[%s7322_s12 + $0xa0] sm:$0xff]  ;;  %v2180_v59 = vld [vmem:[%s7324_s10 + $0x10] sm:$0xff] }
0x116b   :  { %4222 = vmatprep.mubr.msk.f32.mxu0 %vm1811_vm9, %v1788_v6  ;;  %vm1905_vm12 = vcmp.ne.f32.partialorder %v1904_v19, %v1904_v19  ;;  %v4637_v5 = vpack.c.bf16 %v2028_v4, %v2026_v2  ;;  %v2025_v6 = vld [vmem:[%s7322_s12 + $0x80] sm:$0xff]  ;;  %v2036_v15 = vld [vmem:[%s7322_s12 + $0xd8] sm:$0xff]  ;;  %v2184_v4 = vld [vmem:[%s7324_s10 + $0x30] sm:$0xff] }
0x116c   :  { %1883 = vmatmul.mubr.f32.vlgmr.msra.gmra.mrb[10].mxu0 %v1787_v7  ;;  %v1906_v21 = vsel %vm1905_vm12, 0.0, %v1904_v19  ;;  %4634 = vmatprep.subr.bf16.mxu1 %v4633_v60  ;;  %v2027_v7 = vld [vmem:[%s7322_s12 + $0x90] sm:$0xff]  ;;  %v4645_v17 = vpack.c.bf16 %v2036_v15, %v2034_v14  ;;  %v2183_v60 = vld [vmem:[%s7324_s10 + $0x28] sm:$0xff]  ;;  %v2185_v61 = vld [vmem:[%s7324_s10 + $0x38] sm:$0xff] }
0x116d   :  { %4611 = vmatpush3.bf16.msra.mxu0 %v4610_v8  ;;  %4464 = vmatprep.mubr.msk.f32.mxu0 %vm5885_vm0, %v5884_v0  ;;  %v4639_v8 = vpack.c.bf16 %v2027_v7, %v2025_v6  ;;  %v2035_v19 = vld [vmem:[%s7322_s12 + $0xd0] sm:$0xff]  ;;  %v2182_v2 = vld [vmem:[%s7324_s10 + $0x20] sm:$0xff]  ;;  %v2189_v6 = vld [vmem:[%s7324_s10 + $0x58] sm:$0xff] }
0x116e   :  { %4612 = vmatprep.subr.bf16.mxu0 %v5886_v62  ;;  %4636 = vmatpush1.bf16.msra.mxu1 %v4635_v1  ;;  %v4657_v1 = vpack.c.bf16 %v2185_v61, %v2183_v60  ;;  %v4659_v7 = vpack.c.bf16 %v2184_v4, %v2182_v2  ;;  %v2190_v15 = vld [vmem:[%s7324_s10 + $0x60] sm:$0xff]  ;;  %v2212_v60 = vld [vmem:[%s7324_s10 + $0x110] sm:$0xff]  ;;  %v2215_v61 = vld [vmem:[%s7324_s10 + $0x128] sm:$0xff] }
0x116f   :  { %4638 = vmatprep.subr.bf16.mxu1 %v4637_v5  ;;  %v2187_v5 = vld [vmem:[%s7324_s10 + $0x48] sm:$0xff]  ;;  %v2214_v4 = vld [vmem:[%s7324_s10 + $0x120] sm:$0xff] }
0x1171   :  { %4614 = vmatpush3.bf16.msra.mxu0 %v4613_v12  ;;  %v4641_v12 = vpack.c.bf16 %v2032_v11, %v2030_v9  ;;  %v2186_v9 = vld [vmem:[%s7324_s10 + $0x40] sm:$0xff]  ;;  %v2188_v11 = vld [vmem:[%s7324_s10 + $0x50] sm:$0xff] }
0x1172   :  { %4615 = vmatprep.subr.bf16.mxu0 %v5886_v62  ;;  %4640 = vmatpush1.bf16.msra.mxu1 %v4639_v8  ;;  %v4661_v8 = vpack.c.bf16 %v2189_v6, %v2187_v5  ;;  %v2216_v5 = vld [vmem:[%s7324_s10 + $0x130] sm:$0xff] }
0x1173   :  { %4642 = vmatprep.subr.bf16.mxu1 %v4641_v12  ;;  %v2193_v12 = vld [vmem:[%s7324_s10 + $0x78] sm:$0xff]  ;;  %v4691_v6 = vpack.c.bf16 %v2216_v5, %v2214_v4 }
0x1174   :  { %v2508_v4 = vld [vmem:[%s7325_s17 + $0x98] sm:$0xff] }
0x1175   :  { %4617 = vmatpush3.bf16.msra.mxu0 %v4616_v16  ;;  %v4643_v16 = vpack.c.bf16 %v2031_v13, %v2029_v10  ;;  %v2191_v10 = vld [vmem:[%s7324_s10 + $0x68] sm:$0xff]  ;;  %v4663_v13 = vpack.c.bf16 %v2188_v11, %v2186_v9  ;;  %v2492_v11 = vld [vmem:[%s7325_s17 + $0x18] sm:$0xff] }
0x1176   :  { %4618 = vmatprep.subr.bf16.mxu0 %v5886_v62  ;;  %v4665_v14 = vpack.c.bf16 %v2193_v12, %v2191_v10  ;;  %v2490_v9 = vld [vmem:[%s7325_s17 + $0x8] sm:$0xff]  ;;  %v2470_v12 = vsel %vm1269_vm15, %v6515_v23, 0.0 }
0x1177   :  { %4644 = vmatpush1.bf16.msra.mxu1 %v4643_v16  ;;  %v2192_v16 = vld [vmem:[%s7324_s10 + $0x70] sm:$0xff]  ;;  %v4730_v10 = vpack.c.bf16 %v2492_v11, %v2490_v9  ;;  %v2510_v11 = vld [vmem:[%s7325_s17 + $0xa8] sm:$0xff] }
0x1178   :  { %4646 = vmatprep.subr.bf16.mxu1 %v4645_v17  ;;  %v2195_v17 = vld [vmem:[%s7324_s10 + $0x88] sm:$0xff]  ;;  %v2507_v9 = vld [vmem:[%s7325_s17 + $0x90] sm:$0xff] }
0x1179   :  { %4620 = vmatpush3.bf16.msra.mxu0 %v4619_v20  ;;  %v2038_v20 = vld [vmem:[%s7322_s12 + $0xe8] sm:$0xff] }
0x117c   :  { %4465 = vmatmul.mubr.msk.f32.vlgmr.msra.gmra.mrb[12].mxu0 %vm1195_vm11, %v1906_v21  ;;  %v2040_v21 = vld [vmem:[%s7322_s12 + $0xf8] sm:$0xff] }
0x123f   :  { %v6629_v22 = vpop.f32.mrb[10].mxu0 }
0x1240   :  { %v1886_v24 = vpop.f32.mrb[11].mxu0 }
0x1241   :  { %v4647_v24 = vpack.c.bf16 %v2035_v19, %v2033_v18  ;;  %v2197_v18 = vld [vmem:[%s7324_s10 + $0x98] sm:$0xff]  ;;  %v4667_v19 = vpack.c.bf16 %v2192_v16, %v2190_v15 }
0x1243   :  { %4648 = vmatpush1.bf16.msra.mxu1 %v4647_v24  ;;  %v2196_v24 = vld [vmem:[%s7324_s10 + $0x90] sm:$0xff] }
0x124f   :  { %v1985_v26 = vpop.f32.mrb[12].mxu0 }
0x1250   :  { %v1986_v27 = vadd.f32 %v1985_v26, %v1915_v25  ;;  %v4466_v28 = vpop.f32.mrb[13].mxu0  ;;  %v4649_v25 = vpack.c.bf16 %v2040_v21, %v2038_v20  ;;  %v2037_v26 = vld [vmem:[%s7322_s12 + $0xe0] sm:$0xff]  ;;  %v4669_v20 = vpack.c.bf16 %v2197_v18, %v2195_v17 }
0x1251   :  { %v2194_v21 = vld [vmem:[%s7324_s10 + $0x80] sm:$0xff] }
0x1252   :  { %v1990_v29 = vmul.f32 0.01, %v1986_v27  ;;  %vm1989_vm13 = vcmp.ge.f32.partialorder %v1986_v27, 0.0  ;;  %4650 = vmatprep.subr.bf16.mxu1 %v4649_v25  ;;  %v2199_v25 = vld [vmem:[%s7324_s10 + $0xa8] sm:$0xff] }
0x1254   :  { %v1991_v30 = vsel %vm1989_vm13, %v1986_v27, %v1990_v29  ;;  %v2039_v27 = vld [vmem:[%s7322_s12 + $0xf0] sm:$0xff]  ;;  %s4096_s12 = sshll.u32 %s5888_s25, 4  ;;  %s4097_s12 = int_to_ptr.vmem [resolvable:$true] %s4096_s12 }
0x1255   :  { %v1992_v32 = vsel %vm1600_vm6, %v1991_v30, 0.0  ;;  %v4651_v28 = vpack.c.bf16 %v2039_v27, %v2037_v26  ;;  %v2201_v26 = vld [vmem:[%s7324_s10 + $0xb8] sm:$0xff]  ;;  %v4671_v27 = vpack.c.bf16 %v2196_v24, %v2194_v21  ;;  %s5726_s7 = scalar_lea.vmem %s4097_s12, 32  ;;  %p5731_p1 = scmp.lt.s32.totalorder %s4097_s12, %s4097_s12 }
0x1256   :  { %1993 = vadd.xlane.f32.xlu0 %v1992_v32  ;;  %p5727_p0 = scmp.ne.s32.totalorder %s4097_s12, %s5726_s7  ;;  %p5732_p2 = scmp.lt.s32.totalorder %s5726_s7, %s5726_s7 }
0x1257   :  { %4652 = vmatpush1.bf16.msra.mxu1 %v4651_v28  ;;  %v4673_v28 = vpack.c.bf16 %v2201_v26, %v2199_v25  ;;  %v2150_v25 = vld [vmem:[%s7326_s5] sm:$0x3] }
0x1258   :  { %4693 = vmatprep.subr.bf16.mxu1 %v5886_v62  ;;  %v2164_v26 = vld [vmem:[%s7327_s11] sm:$0x3]  ;;  %p5733_p3 = por %p5732_p2, %p5731_p1 }
0x125a   :  { %p5734_p4 = pnand %p5733_p3, %p5727_p0 }
0x12e3   :  { %v1994_v54 = vpop.xlane.xlu0 %1993 }
0x12e4   :  { %v1995_v55 = vmul.f32 0.0078125, %v1994_v54 }
0x12e6   :  { %v1996_v56 = vsub.f32 %v1991_v30, %v1995_v55 }
0x12e8   :  { %v1997_v57 = vmul.f32 %v1996_v56, %v1996_v56 }
0x12ea   :  { %v1998_v3 = vsel %vm1600_vm6, %v1997_v57, 0.0  ;;  %v2181_v57 = vld [vmem:[%s7324_s10 + $0x18] sm:$0xff] }
0x12eb   :  { %1999 = vadd.xlane.f32.xlu1 %v1998_v3  ;;  %v2178_v3 = vld [vmem:[%s7324_s10] sm:$0xff] }
0x12ec   :  { %v4655_v63 = vpack.c.bf16 %v2180_v59, %v2178_v3  ;;  %v2210_v59 = vld [vmem:[%s7324_s10 + $0x100] sm:$0xff] }
0x1378   :  { %v2000_v29 = vpop.xlane.xlu1 %1999 }
0x1379   :  { %v2001_v30 = vmul.f32 0.0078125, %v2000_v29 }
0x137b   :  { %v2002_v32 = vadd.f32 1e-05, %v2001_v30 }
0x137d   :  { %5094 = vrsqrt.f32 %v2002_v32 }
0x1387   :  { %v5095_v33 = vpop.eup %5094 }
0x1388   :  { %v2004_v35 = vmul.f32 %v5095_v33, %v1996_v56  ;;  %v2179_v56 = vld [vmem:[%s7324_s10 + $0x8] sm:$0xff] }
0x1389   :  { %v4653_v58 = vpack.c.bf16 %v2181_v57, %v2179_v56  ;;  %v2211_v56 = vld [vmem:[%s7324_s10 + $0x108] sm:$0xff]  ;;  %v2213_v57 = vld [vmem:[%s7324_s10 + $0x118] sm:$0xff] }
0x138a   :  { %v2006_v39 = vmul.f32 %v2005_v34, %v2004_v35 }
0x138b   :  { %4654 = vmatprep.subr.bf16.mxu0 %v4653_v58  ;;  %v4685_v58 = vpack.c.bf16 %v2213_v57, %v2211_v56  ;;  %v2497_v56 = vld [vmem:[%s7325_s17 + $0x40] sm:$0xff]  ;;  %v2499_v57 = vld [vmem:[%s7325_s17 + $0x50] sm:$0xff] }
0x138c   :  { %v2008_v41 = vadd.f32 %v2007_v36, %v2006_v39  ;;  %4656 = vmatpush1.bf16.msra.mxu0 %v4655_v63  ;;  %v2217_v63 = vld [vmem:[%s7324_s10 + $0x138] sm:$0xff] }
0x138d   :  { %4658 = vmatprep.subr.bf16.mxu0 %v4657_v1  ;;  %v4687_v1 = vpack.c.bf16 %v2212_v60, %v2210_v59  ;;  %v4689_v2 = vpack.c.bf16 %v2217_v63, %v2215_v61  ;;  %v4740_v60 = vpack.c.bf16 %v2499_v57, %v2497_v56  ;;  %v2501_v63 = vld [vmem:[%s7325_s17 + $0x60] sm:$0xff] }
0x138e   :  { %2118 = vmatmul.mubr.f32.vlgmr.msra.gmra.mrb[8].mxu1 %v2008_v41 }
0x1390   :  { %4660 = vmatpush1.bf16.msra.mxu0 %v4659_v7  ;;  %v2219_v7 = vld [vmem:[%s7324_s10 + $0x148] sm:$0xf] }
0x1391   :  { %4662 = vmatprep.subr.bf16.mxu0 %v4661_v8  ;;  %v2218_v8 = vld [vmem:[%s7324_s10 + $0x140] sm:$0xf] }
0x1394   :  { %4664 = vmatpush1.bf16.msra.mxu0 %v4663_v13  ;;  %v2471_v13 = vrot.slane %v2470_v12, 4 }
0x1395   :  { %4666 = vmatprep.subr.bf16.mxu0 %v4665_v14 }
0x1396   :  { %v2472_v14 = vadd.f32 %v2471_v13, %v2470_v12 }
0x1398   :  { %4668 = vmatpush1.bf16.msra.mxu0 %v4667_v19  ;;  %v2473_v15 = vrot.slane %v2472_v14, 2 }
0x1399   :  { %4670 = vmatprep.subr.bf16.mxu0 %v4669_v20 }
0x139a   :  { %v2474_v16 = vadd.f32 %v2473_v15, %v2472_v14  ;;  %v2509_v15 = vld [vmem:[%s7325_s17 + $0xa0] sm:$0xff] }
0x139c   :  { %4672 = vmatpush1.bf16.msra.mxu0 %v4671_v27  ;;  %v2475_v19 = vrot.slane %v2474_v16, 1  ;;  %v2159_v27 = vrot.slane %v2150_v25, %v6563_v40 }
0x139d   :  { %4674 = vmatprep.subr.bf16.mxu0 %v4673_v28  ;;  %v2155_v28 = vrot.slane %v2150_v25, %v6559_v38  ;;  %v2515_v25 = vld [vmem:[%s7325_s17 + $0xd0] sm:$0xff] }
0x139e   :  { %v2476_v21 = vadd.f32 %v2475_v19, %v2474_v16  ;;  %v2511_v16 = vld [vmem:[%s7325_s17 + $0xb0] sm:$0xff] }
0x13a0   :  { %v2477_v24 = vmul.f32 0.5, %v2476_v21 }
0x1461   :  { %v2119_v45 = vpop.f32.mrb[8].mxu1 }
0x1462   :  { %v2120_v46 = vadd.f32 %v2119_v45, %v2046_v43  ;;  %v2121_v47 = vpop.f32.mrb[9].mxu1  ;;  %v2200_v43 = vld [vmem:[%s7324_s10 + $0xb0] sm:$0xff]  ;;  %v2203_v45 = vld [vmem:[%s7324_s10 + $0xc8] sm:$0xff] }
0x1463   :  { %v2122_v48 = vadd.f32 %v2121_v47, %v2050_v44  ;;  %v4675_v44 = vpack.c.bf16 %v2200_v43, %v2198_v42  ;;  %v2491_v42 = vld [vmem:[%s7325_s17 + $0x10] sm:$0xff] }
0x1464   :  { %vm2124_vm11 = vcmp.ge.f32.partialorder %v2120_v46, 0.0  ;;  %v2126_v49 = vmul.f32 0.01, %v2120_v46 }
0x1465   :  { %vm2125_vm14 = vcmp.ge.f32.partialorder %v2122_v48, 0.0  ;;  %v2127_v50 = vmul.f32 0.01, %v2122_v48  ;;  %4676 = vmatpush1.bf16.msra.mxu0 %v4675_v44 }
0x1466   :  { %v2128_v51 = vsel %vm2124_vm11, %v2120_v46, %v2126_v49  ;;  %v2205_v46 = vld [vmem:[%s7324_s10 + $0xd8] sm:$0xff]  ;;  %v2204_v49 = vld [vmem:[%s7324_s10 + $0xd0] sm:$0xff]  ;;  %vm2319_vm11 = vcmask 466944  }
0x1467   :  { %v2129_v52 = vsel %vm2125_vm14, %v2122_v48, %v2127_v50  ;;  %v2130_v53 = vsel %vm1600_vm6, %v2128_v51, 0.0  ;;  %v4677_v47 = vpack.c.bf16 %v2205_v46, %v2203_v45  ;;  %v2202_v48 = vld [vmem:[%s7324_s10 + $0xc0] sm:$0xff]  ;;  %v2494_v45 = vld [vmem:[%s7325_s17 + $0x28] sm:$0xff]  ;;  %v2496_v46 = vld [vmem:[%s7325_s17 + $0x38] sm:$0xff] }
0x1468   :  { %v2131_v54 = vsel %vm1740_vm10, %v2129_v52, 0.0  ;;  %v4679_v50 = vpack.c.bf16 %v2204_v49, %v2202_v48  ;;  %v4734_v49 = vpack.c.bf16 %v2496_v46, %v2494_v45  ;;  %v2521_v46 = vld [vmem:[%s7329_s15] sm:$0x3] }
0x1469   :  { %v2132_v55 = vadd.f32 %v2131_v54, %v2130_v53  ;;  %4678 = vmatprep.subr.bf16.mxu0 %v4677_v47  ;;  %v2206_v53 = vld [vmem:[%s7324_s10 + $0xe0] sm:$0xff] }
0x146a   :  { %4680 = vmatpush1.bf16.msra.mxu0 %v4679_v50  ;;  %v2495_v50 = vld [vmem:[%s7325_s17 + $0x30] sm:$0xff] }
0x146b   :  { %2133 = vadd.xlane.f32.xlu0 %v2132_v55  ;;  %v2208_v55 = vld [vmem:[%s7324_s10 + $0xf0] sm:$0xff] }
0x146c   :  { %v4683_v3 = vpack.c.bf16 %v2208_v55, %v2206_v53 }
0x14f8   :  { %v2134_v29 = vpop.xlane.xlu0 %2133 }
0x14f9   :  { %v2135_v30 = vmul.f32 0.0060975607, %v2134_v29 }
0x14fb   :  { %v6693_v32 = vsub.f32 %v2128_v51, %v2135_v30  ;;  %v6695_v33 = vsub.f32 %v2129_v52, %v2135_v30  ;;  %v2207_v51 = vld [vmem:[%s7324_s10 + $0xe8] sm:$0xff]  ;;  %v2209_v52 = vld [vmem:[%s7324_s10 + $0xf8] sm:$0xff]  ;;  %v2478_v30 = vsub.f32 %v6515_v23, %v2477_v24  ;;  %v2513_v24 = vld [vmem:[%s7325_s17 + $0xc0] sm:$0xff] }
0x14fc   :  { %v4681_v54 = vpack.c.bf16 %v2209_v52, %v2207_v51  ;;  %v2498_v51 = vld [vmem:[%s7325_s17 + $0x48] sm:$0xff]  ;;  %v2500_v52 = vld [vmem:[%s7325_s17 + $0x58] sm:$0xff] }
0x14fd   :  { %v2138_v34 = vmul.f32 %v6693_v32, %v6693_v32  ;;  %v2139_v35 = vmul.f32 %v6695_v33, %v6695_v33  ;;  %v2479_v47 = vmul.f32 %v2478_v30, %v2478_v30  ;;  %v4738_v55 = vpack.c.bf16 %v2500_v52, %v2498_v51 }
0x14fe   :  { %4682 = vmatprep.subr.bf16.mxu0 %v4681_v54 }
0x14ff   :  { %v2140_v36 = vsel %vm1600_vm6, %v2138_v34, 0.0  ;;  %v2141_v39 = vsel %vm1740_vm10, %v2139_v35, 0.0  ;;  %4684 = vmatpush1.bf16.msra.mxu0 %v4683_v3  ;;  %v2173_v35 = vrot.slane %v2164_v26, %v6563_v40  ;;  %v2480_v53 = vsel %vm1269_vm15, %v2479_v47, 0.0  ;;  %v2502_v3 = vld [vmem:[%s7325_s17 + $0x68] sm:$0xff] }
0x1500   :  { %v2142_v41 = vadd.f32 %v2141_v39, %v2140_v36  ;;  %4686 = vmatprep.subr.bf16.mxu0 %v4685_v58  ;;  %v2169_v39 = vrot.slane %v2164_v26, %v6559_v38  ;;  %v2504_v58 = vld [vmem:[%s7325_s17 + $0x78] sm:$0xff]  ;;  %v2481_v59 = vrot.slane %v2480_v53, 4  ;;  %v2518_v26 = vld [vmem:[%s7325_s17 + $0xe8] sm:$0xff]  ;;  %v2526_v47 = vrot.slane %v2521_v46, %v6559_v38 }
0x1501   :  { %v4742_v61 = vpack.c.bf16 %v2504_v58, %v2502_v3 }
0x1502   :  { %2143 = vadd.xlane.f32.xlu1 %v2142_v41  ;;  %v2489_v41 = vld [vmem:[%s7325_s17] sm:$0xff]  ;;  %v2482_v5 = vadd.f32 %v2481_v59, %v2480_v53 }
0x1503   :  { %4688 = vmatpush1.bf16.msra.mxu0 %v4687_v1  ;;  %v2503_v1 = vld [vmem:[%s7325_s17 + $0x70] sm:$0xff] }
0x1504   :  { %4690 = vmatprep.subr.bf16.mxu0 %v4689_v2  ;;  %v2506_v2 = vld [vmem:[%s7325_s17 + $0x88] sm:$0xff]  ;;  %v2483_v12 = vrot.slane %v2482_v5, 2 }
0x1506   :  { %v2484_v19 = vadd.f32 %v2483_v12, %v2482_v5  ;;  %v2369_v5 = vld [vmem:[%s7330_s16 + $0x8] sm:$0xff] }
0x1507   :  { %4692 = vmatpush1.bf16.msra.mxu0 %v4691_v6  ;;  %v4744_v6 = vpack.c.bf16 %v2503_v1, %v2501_v63 }
0x1508   :  { %4224 = vmatprep.subr.msk.mxu0 %vm730_vm1, %v2219_v7  ;;  %v4746_v7 = vpack.c.bf16 %v2508_v4, %v2506_v2  ;;  %v2368_v4 = vld [vmem:[%s7330_s16] sm:$0xff] }
0x150b   :  { %4225 = vmatpush1.msk.msra.mxu0 %vm730_vm1, %v2218_v8  ;;  %v2505_v8 = vld [vmem:[%s7325_s17 + $0x80] sm:$0xff] }
0x150c   :  { %4731 = vmatprep.subr.bf16.mxu0 %v4730_v10  ;;  %v2512_v10 = vld [vmem:[%s7325_s17 + $0xb8] sm:$0xff]  ;;  %v4748_v13 = vpack.c.bf16 %v2507_v9, %v2505_v8  ;;  %v2658_v9 = vld [vmem:[%s7331_s18] sm:$0xff] }
0x150d   :  { %v4750_v14 = vpack.c.bf16 %v2512_v10, %v2510_v11  ;;  %v2661_v8 = vld [vmem:[%s7331_s18 + $0x18] sm:$0xff]  ;;  %v2660_v11 = vld [vmem:[%s7331_s18 + $0x10] sm:$0xff] }
0x150e   :  { %v4764_v12 = vpack.c.bf16 %v2660_v11, %v2658_v9 }
0x158f   :  { %v2144_v17 = vpop.xlane.xlu1 %2143 }
0x1590   :  { %v2145_v18 = vmul.f32 0.0060975607, %v2144_v17  ;;  %v2514_v17 = vld [vmem:[%s7325_s17 + $0xc8] sm:$0xff] }
0x1592   :  { %v2146_v20 = vadd.f32 1e-05, %v2145_v18  ;;  %v2516_v18 = vld [vmem:[%s7325_s17 + $0xd8] sm:$0xff] }
0x1593   :  { %v4754_v21 = vpack.c.bf16 %v2516_v18, %v2514_v17  ;;  %v2665_v17 = vld [vmem:[%s7331_s18 + $0x38] sm:$0xff]  ;;  %v2662_v18 = vld [vmem:[%s7331_s18 + $0x20] sm:$0xff] }
0x1594   :  { %5096 = vrsqrt.f32 %v2146_v20  ;;  %v4752_v20 = vpack.c.bf16 %v2511_v16, %v2509_v15  ;;  %v2663_v15 = vld [vmem:[%s7331_s18 + $0x28] sm:$0xff] }
0x159e   :  { %v5097_v29 = vpop.eup %5096 }
0x159f   :  { %v2149_v34 = vmul.f32 %v5097_v29, %v6695_v33  ;;  %v2148_v36 = vmul.f32 %v5097_v29, %v6693_v32  ;;  %v4732_v33 = vpack.c.bf16 %v2491_v42, %v2489_v41  ;;  %v2493_v32 = vld [vmem:[%s7325_s17 + $0x20] sm:$0xff]  ;;  %v4756_v29 = vpack.c.bf16 %v2515_v25, %v2513_v24  ;;  %v2373_v24 = vld [vmem:[%s7330_s16 + $0x28] sm:$0xff] }
0x15a0   :  { %v4736_v54 = vpack.c.bf16 %v2495_v50, %v2493_v32  ;;  %v2667_v25 = vld [vmem:[%s7331_s18 + $0x48] sm:$0xff] }
0x15a1   :  { %v2163_v43 = vmul.f32 %v2159_v27, %v2149_v34  ;;  %v2162_v44 = vmul.f32 %v2155_v28, %v2148_v36  ;;  %v2520_v27 = vld [vmem:[%s7325_s17 + $0xf8] sm:$0xff]  ;;  %v2485_v28 = vrot.slane %v2484_v19, 1  ;;  %v2517_v34 = vld [vmem:[%s7325_s17 + $0xe0] sm:$0xff] }
0x15a2   :  { %v4758_v30 = vpack.c.bf16 %v2520_v27, %v2518_v26  ;;  %v2669_v27 = vld [vmem:[%s7331_s18 + $0x58] sm:$0xff] }
0x15a3   :  { %v2177_v23 = vadd.f32 %v2173_v35, %v2163_v43  ;;  %v2176_v48 = vadd.f32 %v2169_v39, %v2162_v44  ;;  %v2519_v35 = vld [vmem:[%s7325_s17 + $0xf0] sm:$0xff]  ;;  %v2486_v36 = vadd.f32 %v2485_v28, %v2484_v19  ;;  %v2220_v43 = vld [vmem:[%s7328_s14] sm:$0x3]  ;;  %v4770_v28 = vpack.c.bf16 %v2669_v27, %v2667_v25  ;;  %v2685_v25 = vld [vmem:[%s7331_s18 + $0xd8] sm:$0xff] }
0x15a4   :  { %v4760_v39 = vpack.c.bf16 %v2519_v35, %v2517_v34  ;;  %v2225_v44 = vrot.slane %v2220_v43, %v6559_v38  ;;  %v2229_v45 = vrot.slane %v2220_v43, %v6563_v40  ;;  %v2664_v19 = vld [vmem:[%s7331_s18 + $0x30] sm:$0xff]  ;;  %v2671_v35 = vld [vmem:[%s7331_s18 + $0x68] sm:$0xff]  ;;  %v2682_v27 = vld [vmem:[%s7331_s18 + $0xc0] sm:$0xff] }
0x15a5   :  { %4226 = vmatprep.mubr.msk.f32.mxu0 %vm1811_vm9, %v2177_v23  ;;  %vm2487_vm3 = vcmp.ne.f32.partialorder %v2486_v36, %v2486_v36  ;;  %v4768_v26 = vpack.c.bf16 %v2664_v19, %v2662_v18  ;;  %v2380_v19 = vld [vmem:[%s7330_s16 + $0x60] sm:$0xff] }
0x15a6   :  { %2306 = vmatmul.mubr.f32.vlgmr.msra.gmra.mrb[14].mxu0 %v2176_v48  ;;  %vm4229_vm4 = vmneg %vm2487_vm3  ;;  %vm2393_vm3 = vcmask 474112  }
0x15a7   :  { %4733 = vmatpush1.bf16.msra.mxu0 %v4732_v33  ;;  %2597 = vmatprep.mubr.f32.mxu0 %v5884_v0  ;;  %v2530_v33 = vrot.slane %v2521_v46, %v6563_v40 }
0x15a8   :  { %4735 = vmatprep.subr.bf16.mxu0 %v4734_v49 }
0x15ab   :  { %4737 = vmatpush1.bf16.msra.mxu0 %v4736_v54 }
0x15ac   :  { %4739 = vmatprep.subr.bf16.mxu0 %v4738_v55 }
0x15af   :  { %4741 = vmatpush1.bf16.msra.mxu0 %v4740_v60 }
0x15b0   :  { %4743 = vmatprep.subr.bf16.mxu0 %v4742_v61 }
0x15b3   :  { %4745 = vmatpush1.bf16.msra.mxu0 %v4744_v6  ;;  %v2659_v6 = vld [vmem:[%s7331_s18 + $0x8] sm:$0xff] }
0x15b4   :  { %4747 = vmatprep.subr.bf16.mxu0 %v4746_v7  ;;  %v4694_v7 = vpack.c.bf16 %v2369_v5, %v2368_v4  ;;  %v4762_v10 = vpack.c.bf16 %v2661_v8, %v2659_v6 }
0x15b6   :  { %4695 = vmatpush1.bf16.msra.mxu1 %v4694_v7 }
0x15b7   :  { %4749 = vmatpush1.bf16.msra.mxu0 %v4748_v13  ;;  %v2370_v13 = vld [vmem:[%s7330_s16 + $0x10] sm:$0xff]  ;;  %4696 = vmatprep.subr.bf16.mxu1 %v5886_v62 }
0x15b8   :  { %4751 = vmatprep.subr.bf16.mxu0 %v4750_v14  ;;  %v2371_v14 = vld [vmem:[%s7330_s16 + $0x18] sm:$0xff] }
0x15b9   :  { %v4697_v16 = vpack.c.bf16 %v2371_v14, %v2370_v13  ;;  %v2679_v13 = vld [vmem:[%s7331_s18 + $0xa8] sm:$0xff]  ;;  %v2681_v14 = vld [vmem:[%s7331_s18 + $0xb8] sm:$0xff] }
0x15bb   :  { %4753 = vmatpush1.bf16.msra.mxu0 %v4752_v20  ;;  %v4766_v20 = vpack.c.bf16 %v2665_v17, %v2663_v15  ;;  %4698 = vmatpush1.bf16.msra.mxu1 %v4697_v16  ;;  %v4782_v15 = vpack.c.bf16 %v2681_v14, %v2679_v13  ;;  %v2678_v16 = vld [vmem:[%s7331_s18 + $0xa0] sm:$0xff]  ;;  %v2680_v17 = vld [vmem:[%s7331_s18 + $0xb0] sm:$0xff] }
0x15bc   :  { %4755 = vmatprep.subr.bf16.mxu0 %v4754_v21  ;;  %v2372_v21 = vld [vmem:[%s7330_s16 + $0x20] sm:$0xff]  ;;  %4699 = vmatprep.subr.bf16.mxu1 %v5886_v62  ;;  %v4784_v18 = vpack.c.bf16 %v2680_v17, %v2678_v16 }
0x15bd   :  { %v4700_v34 = vpack.c.bf16 %v2373_v24, %v2372_v21  ;;  %v2683_v24 = vld [vmem:[%s7331_s18 + $0xc8] sm:$0xff]  ;;  %v2630_v17 = vld [vmem:[%s7332_s22] sm:$0x3] }
0x15bf   :  { %4757 = vmatpush1.bf16.msra.mxu0 %v4756_v29  ;;  %v2666_v29 = vld [vmem:[%s7331_s18 + $0x40] sm:$0xff]  ;;  %4701 = vmatpush1.bf16.msra.mxu1 %v4700_v34  ;;  %v2383_v34 = vld [vmem:[%s7330_s16 + $0x78] sm:$0xff] }
0x15c0   :  { %4759 = vmatprep.subr.bf16.mxu0 %v4758_v30  ;;  %v2668_v30 = vld [vmem:[%s7331_s18 + $0x50] sm:$0xff]  ;;  %4702 = vmatprep.subr.bf16.mxu1 %v5886_v62 }
0x15c3   :  { %4761 = vmatpush1.bf16.msra.mxu0 %v4760_v39  ;;  %v2374_v39 = vld [vmem:[%s7330_s16 + $0x30] sm:$0xff] }
0x15c4   :  { %4763 = vmatprep.subr.bf16.mxu0 %v4762_v10 }
0x15c6   :  { %4230 = vmatmul.mubr.msk.f32.vlgmr.msra.gmra.mrb[16].mxu0 %vm4229_vm4, %v2486_v36  ;;  %v2673_v36 = vld [vmem:[%s7331_s18 + $0x78] sm:$0xff] }
0x15c7   :  { %4765 = vmatpush1.bf16.msra.mxu0 %v4764_v12  ;;  %v4774_v43 = vpack.c.bf16 %v2673_v36, %v2671_v35  ;;  %v2687_v36 = vld [vmem:[%s7331_s18 + $0xe8] sm:$0xff] }
0x15c8   :  { %4767 = vmatprep.subr.bf16.mxu0 %v4766_v20  ;;  %v2381_v20 = vld [vmem:[%s7330_s16 + $0x68] sm:$0xff] }
0x15c9   :  { %v4712_v21 = vpack.c.bf16 %v2381_v20, %v2380_v19  ;;  %v2639_v19 = vrot.slane %v2630_v17, %v6563_v40  ;;  %v2635_v20 = vrot.slane %v2630_v17, %v6559_v38 }
0x15cb   :  { %4769 = vmatpush1.bf16.msra.mxu0 %v4768_v26  ;;  %v4786_v26 = vpack.c.bf16 %v2685_v25, %v2683_v24  ;;  %v2340_v24 = vld [vmem:[%s7336_s8] sm:$0x3] }
0x15cc   :  { %4771 = vmatprep.subr.bf16.mxu0 %v4770_v28  ;;  %v2684_v28 = vld [vmem:[%s7331_s18 + $0xd0] sm:$0xff] }
0x1679   :  { %v2307_v41 = vpop.f32.mrb[14].mxu0 }
0x167a   :  { %v2309_v42 = vpop.f32.mrb[15].mxu0  ;;  %v2308_v23 = vadd.f32 %v2307_v41, %v2225_v44  ;;  %v2375_v41 = vld [vmem:[%s7330_s16 + $0x38] sm:$0xff]  ;;  %v2670_v44 = vld [vmem:[%s7331_s18 + $0x60] sm:$0xff] }
0x167b   :  { %v2310_v48 = vadd.f32 %v2309_v42, %v2229_v45  ;;  %v4772_v42 = vpack.c.bf16 %v2668_v30, %v2666_v29  ;;  %v2672_v45 = vld [vmem:[%s7331_s18 + $0x70] sm:$0xff]  ;;  %v4703_v46 = vpack.c.bf16 %v2375_v41, %v2374_v39  ;;  %v4788_v29 = vpack.c.bf16 %v2684_v28, %v2682_v27  ;;  %v2689_v39 = vld [vmem:[%s7331_s18 + $0xf8] sm:$0xff] }
0x167c   :  { %v2314_v51 = vmul.f32 0.01, %v2308_v23  ;;  %vm2312_vm7 = vcmp.ge.f32.partialorder %v2308_v23, 0.0  ;;  %v2382_v30 = vld [vmem:[%s7330_s16 + $0x70] sm:$0xff]  ;;  %v4790_v41 = vpack.c.bf16 %v2689_v39, %v2687_v36  ;;  %v2345_v36 = vrot.slane %v2340_v24, %v6559_v38 }
0x167d   :  { %v2315_v52 = vmul.f32 0.01, %v2310_v48  ;;  %vm2313_vm8 = vcmp.ge.f32.partialorder %v2310_v48, 0.0  ;;  %4773 = vmatpush1.bf16.msra.mxu0 %v4772_v42  ;;  %4704 = vmatpush1.bf16.msra.mxu1 %v4703_v46  ;;  %v4715_v35 = vpack.c.bf16 %v2383_v34, %v2382_v30  ;;  %v2686_v42 = vld [vmem:[%s7331_s18 + $0xe0] sm:$0xff]  ;;  %v2385_v46 = vld [vmem:[%s7330_s16 + $0x88] sm:$0xff] }
0x167e   :  { %v6783_v58 = vsel %vm2312_vm7, %v2308_v23, %v2314_v51  ;;  %v2677_v23 = vld [vmem:[%s7331_s18 + $0x98] sm:$0xff]  ;;  %4775 = vmatprep.subr.bf16.mxu0 %v4774_v43  ;;  %v2676_v51 = vld [vmem:[%s7331_s18 + $0x90] sm:$0xff]  ;;  %4705 = vmatprep.subr.bf16.mxu1 %v5886_v62 }
0x167f   :  { %v6785_v59 = vsel %vm2313_vm8, %v2310_v48, %v2315_v52  ;;  %v2318_v63 = vsel %vm1600_vm6, %v6783_v58, 0.0  ;;  %v2376_v48 = vld [vmem:[%s7330_s16 + $0x40] sm:$0xff]  ;;  %v2688_v43 = vld [vmem:[%s7331_s18 + $0xf0] sm:$0xff]  ;;  %vm3770_vm8 = vcmask 441344  }
0x1680   :  { %v2320_v1 = vsel %vm2319_vm11, %v6785_v59, 0.0 }
0x1681   :  { %v2321_v2 = vadd.f32 %v2320_v1, %v2318_v63 }
0x1699   :  { %v2599_v49 = vpop.f32.mrb[16].mxu0 }
0x169a   :  { %v2600_v32 = vadd.f32 %v2599_v49, %v2526_v47  ;;  %v2601_v50 = vpop.f32.mrb[17].mxu0  ;;  %v2675_v47 = vld [vmem:[%s7331_s18 + $0x88] sm:$0xff]  ;;  %v4776_v49 = vpack.c.bf16 %v2672_v45, %v2670_v44  ;;  %v4792_v44 = vpack.c.bf16 %v2688_v43, %v2686_v42  ;;  %v2384_v45 = vld [vmem:[%s7330_s16 + $0x80] sm:$0xff] }
0x169b   :  { %v2602_v53 = vadd.f32 %v2601_v50, %v2530_v33  ;;  %v2377_v33 = vld [vmem:[%s7330_s16 + $0x48] sm:$0xff]  ;;  %v2674_v50 = vld [vmem:[%s7331_s18 + $0x80] sm:$0xff] }
0x169c   :  { %vm2604_vm12 = vcmp.ge.f32.partialorder %v2600_v32, 0.0  ;;  %v2606_v54 = vmul.f32 0.01, %v2600_v32  ;;  %v4706_v52 = vpack.c.bf16 %v2377_v33, %v2376_v48  ;;  %4777 = vmatpush1.bf16.msra.mxu0 %v4776_v49  ;;  %v2693_v48 = vld [vmem:[%s7331_s18 + $0x118] sm:$0xff]  ;;  %v2690_v33 = vld [vmem:[%s7331_s18 + $0x100] sm:$0xff]  ;;  %v2692_v49 = vld [vmem:[%s7331_s18 + $0x110] sm:$0xff] }
0x169d   :  { %vm2605_vm13 = vcmp.ge.f32.partialorder %v2602_v53, 0.0  ;;  %v2607_v55 = vmul.f32 0.01, %v2602_v53 }
0x169e   :  { %v6777_v56 = vsel %vm2604_vm12, %v2600_v32, %v2606_v54  ;;  %v4778_v32 = vpack.c.bf16 %v2677_v23, %v2675_v47  ;;  %v2379_v54 = vld [vmem:[%s7330_s16 + $0x58] sm:$0xff]  ;;  %4707 = vmatpush1.bf16.msra.mxu1 %v4706_v52  ;;  %v2691_v47 = vld [vmem:[%s7331_s18 + $0x108] sm:$0xff]  ;;  %v4718_v23 = vpack.c.bf16 %v2385_v46, %v2384_v45  ;;  %vm3924_vm12 = vcmask 214016  }
0x169f   :  { %v6779_v57 = vsel %vm2605_vm13, %v2602_v53, %v2607_v55  ;;  %v2610_v3 = vsel %vm1600_vm6, %v6777_v56, 0.0  ;;  %v2378_v53 = vld [vmem:[%s7330_s16 + $0x50] sm:$0xff]  ;;  %v4780_v55 = vpack.c.bf16 %v2676_v51, %v2674_v50  ;;  %4708 = vmatprep.subr.bf16.mxu1 %v5886_v62  ;;  %v4796_v50 = vpack.c.bf16 %v2692_v49, %v2690_v33  ;;  %v2387_v52 = vld [vmem:[%s7330_s16 + $0x98] sm:$0xff] }
0x16a0   :  { %v2611_v60 = vsel %vm1740_vm10, %v6779_v57, 0.0  ;;  %4779 = vmatprep.subr.bf16.mxu0 %v4778_v32  ;;  %v4794_v32 = vpack.c.bf16 %v2693_v48, %v2691_v47  ;;  %v2386_v51 = vld [vmem:[%s7330_s16 + $0x90] sm:$0xff]  ;;  %v2949_v48 = vld [vmem:[%s7338_s13] sm:$0xff] }
0x16a1   :  { %v2612_v61 = vadd.f32 %v2611_v60, %v2610_v3  ;;  %v4709_v3 = vpack.c.bf16 %v2379_v54, %v2378_v53  ;;  %4781 = vmatpush1.bf16.msra.mxu0 %v4780_v55  ;;  %v2695_v53 = vld [vmem:[%s7331_s18 + $0x128] sm:$0xff]  ;;  %v4721_v54 = vpack.c.bf16 %v2387_v52, %v2386_v51  ;;  %v2697_v55 = vld [vmem:[%s7331_s18 + $0x138] sm:$0xff]  ;;  %v2953_v33 = vcombine.high %v2949_v48, %v2949_v48 }
0x16a2   :  { %4783 = vmatprep.subr.bf16.mxu0 %v4782_v15 }
0x16a3   :  { %2613 = vadd.xlane.f32.xlu0 %v2612_v61  ;;  %4710 = vmatpush1.bf16.msra.mxu1 %v4709_v3  ;;  %v2694_v3 = vld [vmem:[%s7331_s18 + $0x120] sm:$0xff] }
0x16a4   :  { %4711 = vmatprep.subr.bf16.mxu1 %v5886_v62 }
0x16a5   :  { %4785 = vmatpush1.bf16.msra.mxu0 %v4784_v18  ;;  %v2644_v18 = vld [vmem:[%s7333_s6] sm:$0x3] }
0x16a6   :  { %4787 = vmatprep.subr.bf16.mxu0 %v4786_v26  ;;  %v2653_v26 = vrot.slane %v2644_v18, %v6563_v40  ;;  %v2649_v28 = vrot.slane %v2644_v18, %v6559_v38  ;;  %v2850_v18 = vld [vmem:[%s6267_s4 + $0x20] sm:$0xff] }
0x16a7   :  { %2322 = vadd.xlane.f32.xlu0 %v2321_v2  ;;  %4713 = vmatpush1.bf16.msra.mxu1 %v4712_v21 }
0x16a8   :  { %4714 = vmatprep.subr.bf16.mxu1 %v5886_v62 }
0x16a9   :  { %4789 = vmatpush1.bf16.msra.mxu0 %v4788_v29  ;;  %v2354_v29 = vld [vmem:[%s7337_s9] sm:$0x3] }
0x16aa   :  { %4791 = vmatprep.subr.bf16.mxu0 %v4790_v41  ;;  %v2363_v41 = vrot.slane %v2354_v29, %v6563_v40  ;;  %v2359_v42 = vrot.slane %v2354_v29, %v6559_v38  ;;  %v2856_v29 = vld [vmem:[%s6267_s4 + $0x50] sm:$0xff] }
0x16ab   :  { %4716 = vmatpush1.bf16.msra.mxu1 %v4715_v35  ;;  %v2349_v35 = vrot.slane %v2340_v24, %v6563_v40  ;;  %v2853_v24 = vld [vmem:[%s6267_s4 + $0x38] sm:$0xff] }
0x16ac   :  { %4717 = vmatprep.subr.bf16.mxu1 %v5886_v62 }
0x16ad   :  { %4793 = vmatpush1.bf16.msra.mxu0 %v4792_v44 }
0x16ae   :  { %4795 = vmatprep.subr.bf16.mxu0 %v4794_v32 }
0x16af   :  { %4719 = vmatpush1.bf16.msra.mxu1 %v4718_v23 }
0x16b0   :  { %4720 = vmatprep.subr.bf16.mxu1 %v5886_v62 }
0x16b1   :  { %4797 = vmatpush1.bf16.msra.mxu0 %v4796_v50 }
0x16b3   :  { %4722 = vmatpush1.bf16.msra.mxu1 %v4721_v54  ;;  %v2947_v54 = vld [vmem:[%s7340_s23] sm:$0xff] }
0x16b4   :  { %4723 = vmatprep.subr.bf16.mxu1 %v5886_v62 }
0x1730   :  { %v2614_v60 = vpop.xlane.xlu0 %2613 }
0x1731   :  { %v2615_v61 = vmul.f32 0.0060975607, %v2614_v60  ;;  %v2696_v60 = vld [vmem:[%s7331_s18 + $0x130] sm:$0xff] }
0x1733   :  { %v6832_v63 = vsub.f32 %v6777_v56, %v2615_v61  ;;  %v6835_v1 = vsub.f32 %v6779_v57, %v2615_v61  ;;  %v4798_v61 = vpack.c.bf16 %v2697_v55, %v2695_v53  ;;  %v2392_v53 = vld [vmem:[#allocation43] sm:$0x1] }
0x1734   :  { %v2323_v2 = vpop.xlane.xlu0 %2322 }
0x1735   :  { %v2325_v4 = vmul.f32 0.005376344, %v2323_v2  ;;  %v2618_v5 = vmul.f32 %v6832_v63, %v6832_v63  ;;  %v2619_v6 = vmul.f32 %v6835_v1, %v6835_v1  ;;  %v2388_v2 = vld [vmem:[%s7330_s16 + $0xa0] sm:$0xff]  ;;  %4799 = vmatprep.subr.bf16.mxu0 %v4798_v61 }
0x1737   :  { %v6842_v7 = vsub.f32 %v6783_v58, %v2325_v4  ;;  %v6845_v56 = vsub.f32 %v6785_v59, %v2325_v4  ;;  %v2620_v57 = vsel %vm1600_vm6, %v2618_v5, 0.0  ;;  %v2621_v8 = vsel %vm1740_vm10, %v2619_v6, 0.0  ;;  %v2389_v4 = vld [vmem:[%s7330_s16 + $0xa8] sm:$0xff] }
0x1738   :  { %v2622_v9 = vadd.f32 %v2621_v8, %v2620_v57  ;;  %v4800_v5 = vpack.c.bf16 %v2696_v60, %v2694_v3  ;;  %v4724_v6 = vpack.c.bf16 %v2389_v4, %v2388_v2  ;;  %v2699_v57 = vld [vmem:[%s7331_s18 + $0x148] sm:$0xf]  ;;  %v2698_v8 = vld [vmem:[%s7331_s18 + $0x140] sm:$0xf]  ;;  %vm5887_vm10 = vmmov 1  }
0x1739   :  { %v2328_v11 = vmul.f32 %v6842_v7, %v6842_v7  ;;  %v2329_v10 = vmul.f32 %v6845_v56, %v6845_v56  ;;  %vm6898_vm14 = vmpackc.low %vm1269_vm15, %vm5887_vm10 }
0x173a   :  { %2623 = vadd.xlane.f32.xlu1 %v2622_v9  ;;  %4801 = vmatpush1.bf16.msra.mxu0 %v4800_v5  ;;  %v2390_v9 = vld [vmem:[%s7330_s16 + $0xb0] sm:$0xff]  ;;  %v2950_v5 = vld [vmem:[%s7338_s13 + $0x8] sm:$0xf] }
0x173b   :  { %v2330_v58 = vsel %vm1600_vm6, %v2328_v11, 0.0  ;;  %v2331_v59 = vsel %vm2319_vm11, %v2329_v10, 0.0  ;;  %4231 = vmatprep.subr.msk.mxu0 %vm730_vm1, %v2699_v57  ;;  %4725 = vmatpush1.bf16.msra.mxu1 %v4724_v6  ;;  %v2391_v11 = vld [vmem:[%s7330_s16 + $0xb8] sm:$0x3]  ;;  %v3106_v6 = vcombine.high %v2947_v54, %v2947_v54 }
0x173c   :  { %v2332_v12 = vadd.f32 %v2331_v59, %v2330_v58  ;;  %4726 = vmatprep.subr.bf16.mxu1 %v5886_v62  ;;  %v4727_v10 = vpack.c.bf16 %v2391_v11, %v2390_v9 }
0x173e   :  { %2333 = vadd.xlane.f32.xlu0 %v2332_v12  ;;  %4232 = vmatpush1.msk.msra.mxu0 %vm730_vm1, %v2698_v8 }
0x173f   :  { %4729 = vmatpush1.bf16.msk.msra.mxu1 %vm6898_vm14, %v4727_v10  ;;  %4236 = vmatprep.subr.msk.mxu0 %vm730_vm1, %v2953_v33  ;;  %v1810_v10 = vld [vmem:[#allocation37] sm:$0x1] }
0x1740   :  { %4802 = vmatprep.subr.bf16.mxu1 %v5886_v62 }
0x17c7   :  { %v2624_v59 = vpop.xlane.xlu1 %2623 }
0x17c8   :  { %v2625_v12 = vmul.f32 0.0060975607, %v2624_v59  ;;  %v1885_v59 = vadd.f32 %v6629_v22, %v1810_v10  ;;  %v2847_v22 = vld [vmem:[%s6267_s4 + $0x8] sm:$0xff] }
0x17ca   :  { %v2626_v13 = vadd.f32 1e-05, %v2625_v12  ;;  %v2948_v12 = vld [vmem:[%s7340_s23 + $0x8] sm:$0xf] }
0x17cb   :  { %v2334_v14 = vpop.xlane.xlu0 %2333 }
0x17cc   :  { %5098 = vrsqrt.f32 %v2626_v13  ;;  %v2335_v15 = vmul.f32 0.005376344, %v2334_v14  ;;  %v2846_v13 = vld [vmem:[%s6267_s4] sm:$0xff]  ;;  %v2848_v14 = vld [vmem:[%s6267_s4 + $0x10] sm:$0xff] }
0x17ce   :  { %v2336_v16 = vadd.f32 1e-05, %v2335_v15  ;;  %v4803_v15 = vpack.c.bf16 %v2847_v22, %v2846_v13 }
0x17d0   :  { %5100 = vrsqrt.f32 %v2336_v16  ;;  %v2849_v16 = vld [vmem:[%s6267_s4 + $0x18] sm:$0xff] }
0x17d1   :  { %v4806_v17 = vpack.c.bf16 %v2849_v16, %v2848_v14 }
0x17d6   :  { %v5099_v21 = vpop.eup %5098 }
0x17d7   :  { %v2629_v25 = vmul.f32 %v5099_v21, %v6835_v1  ;;  %v2628_v27 = vmul.f32 %v5099_v21, %v6832_v63  ;;  %v2852_v21 = vld [vmem:[%s6267_s4 + $0x30] sm:$0xff] }
0x17d9   :  { %v2643_v30 = vmul.f32 %v2639_v19, %v2629_v25  ;;  %v2642_v34 = vmul.f32 %v2635_v20, %v2628_v27  ;;  %v2851_v19 = vld [vmem:[%s6267_s4 + $0x28] sm:$0xff]  ;;  %v4812_v25 = vpack.c.bf16 %v2853_v24, %v2852_v21  ;;  %v2870_v24 = vld [vmem:[#allocation44] sm:$0x1] }
0x17da   :  { %v5101_v39 = vpop.eup %5100  ;;  %v4809_v20 = vpack.c.bf16 %v2851_v19, %v2850_v18  ;;  %v2855_v27 = vld [vmem:[%s6267_s4 + $0x48] sm:$0xff]  ;;  %v4218_v19 = vld [vmem:[#allocation17] ss:$0 sm:$0xff] }
0x17db   :  { %v2657_v1 = vadd.f32 %v2653_v26, %v2643_v30  ;;  %v2656_v43 = vadd.f32 %v2649_v28, %v2642_v34  ;;  %v2339_v44 = vmul.f32 %v5101_v39, %v6845_v56  ;;  %v2338_v63 = vmul.f32 %v5101_v39, %v6842_v7  ;;  %v2700_v7 = vld [vmem:[%s7339_s30] sm:$0x3]  ;;  %v2857_v30 = vld [vmem:[%s6267_s4 + $0x58] sm:$0xff]  ;;  %v3416_v21 = vld [vmem:[%s7341_s27 + $0x8] sm:$0xf] }
0x17dc   :  { %v2705_v56 = vrot.slane %v2700_v7, %v6559_v38  ;;  %v2709_v49 = vrot.slane %v2700_v7, %v6563_v40  ;;  %v2854_v26 = vld [vmem:[%s6267_s4 + $0x40] sm:$0xff]  ;;  %v4818_v34 = vpack.c.bf16 %v2857_v30, %v2856_v29 }
0x17dd   :  { %4233 = vmatprep.mubr.msk.f32.mxu0 %vm1811_vm9, %v2657_v1  ;;  %v2353_v45 = vmul.f32 %v2349_v35, %v2339_v44  ;;  %v2352_v46 = vmul.f32 %v2345_v36, %v2338_v63  ;;  %v4815_v28 = vpack.c.bf16 %v2855_v27, %v2854_v26  ;;  %v2862_v7 = vld [vmem:[%s6267_s4 + $0x80] sm:$0xff] }
0x17de   :  { %2786 = vmatmul.mubr.f32.vlgmr.msra.gmra.mrb[18].mxu0 %v2656_v43 }
0x17df   :  { %v2367_v47 = vadd.f32 %v2363_v41, %v2353_v45  ;;  %v2366_v23 = vadd.f32 %v2359_v42, %v2352_v46  ;;  %3027 = vmatprep.mubr.f32.mxu0 %v5884_v0  ;;  %4237 = vmatpush1.msk.msra.mxu0 %vm730_vm1, %v2949_v48  ;;  %v2858_v45 = vld [vmem:[%s6267_s4 + $0x60] sm:$0xff]  ;;  %v2859_v46 = vld [vmem:[%s6267_s4 + $0x68] sm:$0xff]  ;;  %v2861_v48 = vld [vmem:[%s6267_s4 + $0x78] sm:$0xff] }
0x17e0   :  { %4467 = vmatprep.subr.mxu0 %v5884_v0 }
0x17e1   :  { %4228 = vmatprep.mubr.msk.f32.mxu1 %vm2393_vm3, %v2367_v47  ;;  %v4821_v47 = vpack.c.bf16 %v2859_v46, %v2858_v45 }
0x17e2   :  { %2465 = vmatmul.mubr.f32.vlgmr.msra.gmra.mrb[10].mxu1 %v2366_v23  ;;  %v2860_v23 = vld [vmem:[%s6267_s4 + $0x70] sm:$0xff] }
0x17e3   :  { %4804 = vmatpush1.bf16.msra.mxu1 %v4803_v15  ;;  %v4824_v33 = vpack.c.bf16 %v2861_v48, %v2860_v23 }
0x17e4   :  { %4805 = vmatprep.subr.bf16.mxu1 %v5886_v62 }
0x17e7   :  { %4807 = vmatpush1.bf16.msra.mxu1 %v4806_v17 }
0x17e8   :  { %4808 = vmatprep.subr.bf16.mxu1 %v5886_v62 }
0x17eb   :  { %4810 = vmatpush1.bf16.msra.mxu1 %v4809_v20  ;;  %v1393_v20 = vadd.f32 %v4218_v19, %v6520_v31 }
0x17ec   :  { %4811 = vmatprep.subr.bf16.mxu1 %v5886_v62 }
0x17ef   :  { %4813 = vmatpush1.bf16.msra.mxu1 %v4812_v25 }
0x17f0   :  { %4814 = vmatprep.subr.bf16.mxu1 %v5886_v62 }
0x17f3   :  { %4816 = vmatpush1.bf16.msra.mxu1 %v4815_v28  ;;  %v3258_v28 = vld [vmem:[%s7342_s20 + $0x8] sm:$0xf] }
0x17f4   :  { %4817 = vmatprep.subr.bf16.mxu1 %v5886_v62 }
0x17f7   :  { %4819 = vmatpush1.bf16.msra.mxu1 %v4818_v34 }
0x17f8   :  { %4820 = vmatprep.subr.bf16.mxu1 %v5886_v62 }
0x17fb   :  { %4822 = vmatpush1.bf16.msra.mxu1 %v4821_v47 }
0x17fc   :  { %4823 = vmatprep.subr.bf16.mxu1 %v5886_v62 }
0x17ff   :  { %4825 = vmatpush1.bf16.msra.mxu1 %v4824_v33 }
0x1800   :  { %4826 = vmatprep.subr.bf16.mxu1 %v5886_v62 }
0x18b1   :  { %v2787_v32 = vpop.f32.mrb[18].mxu0 }
0x18b2   :  { %v2788_v50 = vadd.f32 %v2787_v32, %v2705_v56  ;;  %v2789_v51 = vpop.f32.mrb[19].mxu0  ;;  %v2863_v56 = vld [vmem:[%s6267_s4 + $0x88] sm:$0xff] }
0x18b3   :  { %v2790_v52 = vadd.f32 %v2789_v51, %v2709_v49  ;;  %v2864_v49 = vld [vmem:[%s6267_s4 + $0x90] sm:$0xff]  ;;  %v4827_v32 = vpack.c.bf16 %v2863_v56, %v2862_v7 }
0x18b4   :  { %vm2792_vm9 = vcmp.ge.f32.partialorder %v2788_v50, 0.0  ;;  %v2794_v55 = vmul.f32 0.01, %v2788_v50 }
0x18b5   :  { %vm2793_vm4 = vcmp.ge.f32.partialorder %v2790_v52, 0.0  ;;  %v2795_v3 = vmul.f32 0.01, %v2790_v52  ;;  %v2466_v60 = vpop.f32.mrb[10].mxu1  ;;  %4828 = vmatpush1.bf16.msra.mxu1 %v4827_v32 }
0x18b6   :  { %v2467_v61 = vadd.f32 %v2466_v60, %v2392_v53  ;;  %v2468_v2 = vpop.f32.mrb[11].mxu1  ;;  %v2796_v4 = vsel %vm2792_vm9, %v2788_v50, %v2794_v55  ;;  %v2865_v50 = vld [vmem:[%s6267_s4 + $0x98] sm:$0xff]  ;;  %4829 = vmatprep.subr.bf16.mxu1 %v5886_v62  ;;  %v2867_v53 = vld [vmem:[%s6267_s4 + $0xa8] sm:$0xff]  ;;  %v2868_v55 = vld [vmem:[%s6267_s4 + $0xb0] sm:$0xff] }
0x18b7   :  { %v2797_v57 = vsel %vm2793_vm4, %v2790_v52, %v2795_v3  ;;  %v2798_v8 = vsel %vm1600_vm6, %v2796_v4, 0.0  ;;  %v4830_v51 = vpack.c.bf16 %v2865_v50, %v2864_v49  ;;  %v2866_v52 = vld [vmem:[%s6267_s4 + $0xa0] sm:$0xff]  ;;  %v2869_v3 = vld [vmem:[%s6267_s4 + $0xb8] sm:$0x3]  ;;  %s7345_s4 = sld [smem:[#allocation72_spill]] }
0x18b8   :  { %4238 = vmatmul.mubr.msk.f32.vlgmr.msra.gmra.mrb[20].mxu0 %vm726_vm2, %v2467_v61  ;;  %v2799_v9 = vsel %vm2319_vm11, %v2797_v57, 0.0  ;;  %v4836_v60 = vpack.c.bf16 %v2869_v3, %v2868_v55 }
0x18b9   :  { %v2800_v11 = vadd.f32 %v2799_v9, %v2798_v8  ;;  %4468 = vmatpush3.msk.msra.mxu0 %vm730_vm1, %v2950_v5  ;;  %4469 = vmatprep.mubr.msk.f32.mxu0 %vm5885_vm0, %v5884_v0  ;;  %v2818_v9 = vld [vmem:[%s7343_s26] sm:$0x3] }
0x18ba   :  { %4241 = vmatprep.subr.msk.mxu0 %vm730_vm1, %v3106_v6  ;;  %4831 = vmatpush1.bf16.msra.mxu1 %v4830_v51  ;;  %v2827_v58 = vrot.slane %v2818_v9, %v6563_v40  ;;  %v2823_v10 = vrot.slane %v2818_v9, %v6559_v38 }
0x18bb   :  { %2801 = vadd.xlane.f32.xlu1 %v2800_v11  ;;  %4832 = vmatprep.subr.bf16.mxu1 %v5886_v62  ;;  %v2832_v11 = vld [vmem:[%s6262_s21] sm:$0x3]  ;;  %s7344_s21 = sld [smem:[#allocation65_spill]] }
0x18bc   :  { %4470 = vmatmul.mubr.msk.f32.vlgmr.msra.gmra.mrb[22].mxu0 %vm726_vm2, %v2467_v61  ;;  %v3415_v61 = vld [vmem:[%s7341_s27] sm:$0xff]  ;;  %v2841_v13 = vrot.slane %v2832_v11, %v6563_v40  ;;  %v2837_v14 = vrot.slane %v2832_v11, %v6559_v38 }
0x18bd   :  { %4242 = vmatpush1.msk.msra.mxu0 %vm730_vm1, %v2947_v54  ;;  %3180 = vmatprep.mubr.f32.mxu0 %v5884_v0  ;;  %v4833_v54 = vpack.c.bf16 %v2867_v53, %v2866_v52  ;;  %v3436_v2 = vcombine.high %v3415_v61, %v3415_v61  ;;  %v3681_v53 = vld [vmem:[%s7345_s4 + $0x8] sm:$0xff]  ;;  %v3680_v55 = vld [vmem:[%s7345_s4] sm:$0xff]  ;;  %v3691_v9 = vld [vmem:[%s7345_s4 + $0x58] sm:$0xff] }
0x18be   :  { %4472 = vmatprep.subr.mxu0 %v5884_v0 }
0x18bf   :  { %4834 = vmatpush1.bf16.msra.mxu1 %v4833_v54  ;;  %v3683_v54 = vld [vmem:[%s7345_s4 + $0x18] sm:$0xff] }
0x18c0   :  { %4243 = vmatmul.mubr.msk.f32.vlgmr.msra.gmra.mrb[20].mxu0 %vm726_vm2, %v1885_v59  ;;  %4835 = vmatprep.subr.bf16.mxu1 %v5886_v62  ;;  %v4839_v3 = vpack.c.bf16 %v3683_v54, %v3681_v53  ;;  %v3716_v54 = vld [vmem:[%s7345_s4 + $0x120] sm:$0xff] }
0x18c1   :  { %4473 = vmatpush3.msk.msra.mxu0 %vm730_vm1, %v2948_v12  ;;  %4474 = vmatprep.mubr.msk.f32.mxu0 %vm5885_vm0, %v5884_v0 }
0x18c3   :  { %4838 = vmatpush1.bf16.msk.msra.mxu1 %vm6898_vm14, %v4836_v60  ;;  %v3682_v60 = vld [vmem:[%s7345_s4 + $0x10] sm:$0xff] }
0x18c4   :  { %4475 = vmatmul.mubr.msk.f32.vlgmr.msra.gmra.mrb[22].mxu0 %vm726_vm2, %v1885_v59  ;;  %4251 = vmatprep.subr.msk.mxu1 %vm730_vm1, %v3436_v2  ;;  %v3687_v2 = vld [vmem:[%s7345_s4 + $0x38] sm:$0xff] }
0x18c5   :  { %3335 = vmatprep.mubr.f32.mxu0 %v5884_v0 }
0x1948   :  { %v2802_v35 = vpop.xlane.xlu1 %2801 }
0x1949   :  { %v2803_v36 = vmul.f32 0.005376344, %v2802_v35  ;;  %v3417_v35 = vld [vmem:[%s7344_s21] sm:$0x7] }
0x194b   :  { %v2804_v39 = vsub.f32 %v2796_v4, %v2803_v36  ;;  %v2805_v41 = vsub.f32 %v2797_v57, %v2803_v36  ;;  %v3257_v4 = vld [vmem:[%s7342_s20] sm:$0xff]  ;;  %v3422_v36 = vrot.slane %v3417_v35, %v6559_v38 }
0x194c   :  { %v3261_v5 = vcombine.high %v3257_v4, %v3257_v4 }
0x194d   :  { %v2806_v42 = vmul.f32 %v2804_v39, %v2804_v39  ;;  %v2807_v1 = vmul.f32 %v2805_v41, %v2805_v41 }
0x194e   :  { %4246 = vmatprep.subr.msk.mxu0 %vm730_vm1, %v3261_v5 }
0x194f   :  { %v2808_v43 = vsel %vm1600_vm6, %v2806_v42, 0.0  ;;  %v2809_v44 = vsel %vm2319_vm11, %v2807_v1, 0.0  ;;  %4247 = vmatpush1.msk.msra.mxu0 %vm730_vm1, %v3257_v4  ;;  %v4841_v4 = vpack.c.bf16 %v3682_v60, %v3680_v55  ;;  %v3718_v55 = vld [vmem:[%s7345_s4 + $0x130] sm:$0xff]  ;;  %vm3774_vm6 = vcmask 1045504  }
0x1950   :  { %v2810_v63 = vadd.f32 %v2809_v44, %v2808_v43  ;;  %4477 = vmatprep.subr.mxu0 %v5884_v0  ;;  %vm4006_vm11 = vcmask 220160  }
0x1952   :  { %2811 = vadd.xlane.f32.xlu1 %v2810_v63 }
0x19df   :  { %v2812_v6 = vpop.xlane.xlu1 %2811 }
0x19e0   :  { %v2813_v57 = vmul.f32 0.005376344, %v2812_v6  ;;  %v3684_v6 = vld [vmem:[%s7345_s4 + $0x20] sm:$0xff] }
0x19e2   :  { %v2814_v8 = vadd.f32 1e-05, %v2813_v57  ;;  %v3686_v57 = vld [vmem:[%s7345_s4 + $0x30] sm:$0xff] }
0x19e3   :  { %v4845_v11 = vpack.c.bf16 %v3686_v57, %v3684_v6 }
0x19e4   :  { %5102 = vrsqrt.f32 %v2814_v8  ;;  %v3689_v8 = vld [vmem:[%s7345_s4 + $0x48] sm:$0xff] }
0x19ee   :  { %v5103_v59 = vpop.eup %5102 }
0x19ef   :  { %v2817_v12 = vmul.f32 %v5103_v59, %v2805_v41  ;;  %v2816_v22 = vmul.f32 %v5103_v59, %v2804_v39  ;;  %v7024_v39 = vsub.s32 2, %v6556_v37  ;;  %v3426_v41 = vrot.slane %v3417_v35, %v6563_v40  ;;  %v3690_v59 = vld [vmem:[%s7345_s4 + $0x50] sm:$0xff] }
0x19f1   :  { %v2831_v15 = vmul.f32 %v2827_v58, %v2817_v12  ;;  %v2830_v16 = vmul.f32 %v2823_v10, %v2816_v22  ;;  %v3430_v43 = vrot.slane %v3417_v35, %v7024_v39  ;;  %v4847_v58 = vpack.c.bf16 %v3691_v9, %v3689_v8  ;;  %v3688_v10 = vld [vmem:[%s7345_s4 + $0x40] sm:$0xff]  ;;  %v3693_v12 = vld [vmem:[%s7345_s4 + $0x68] sm:$0xff] }
0x19f2   :  { %v4849_v22 = vpack.c.bf16 %v3690_v59, %v3688_v10  ;;  %v3723_v10 = vld [vmem:[%s7345_s4 + $0x158] sm:$0xff] }
0x19f3   :  { %v2845_v17 = vadd.f32 %v2841_v13, %v2831_v15  ;;  %v2844_v18 = vadd.f32 %v2837_v14, %v2830_v16  ;;  %v3695_v13 = vld [vmem:[%s7345_s4 + $0x78] sm:$0xff]  ;;  %v3692_v15 = vld [vmem:[%s7345_s4 + $0x60] sm:$0xff]  ;;  %v3694_v16 = vld [vmem:[%s7345_s4 + $0x70] sm:$0xff] }
0x19f4   :  { %v4851_v14 = vpack.c.bf16 %v3695_v13, %v3693_v12  ;;  %v4853_v19 = vpack.c.bf16 %v3694_v16, %v3692_v15  ;;  %v3720_v12 = vld [vmem:[%s7345_s4 + $0x140] sm:$0xff]  ;;  %v3722_v13 = vld [vmem:[%s7345_s4 + $0x150] sm:$0xff]  ;;  %v3727_v15 = vld [vmem:[%s7345_s4 + $0x178] sm:$0xff] }
0x19f5   :  { %4235 = vmatprep.mubr.msk.f32.mxu1 %vm2393_vm3, %v2845_v17  ;;  %v3697_v17 = vld [vmem:[%s7345_s4 + $0x88] sm:$0xff] }
0x19f6   :  { %2942 = vmatmul.mubr.f32.vlgmr.msra.gmra.mrb[12].mxu1 %v2844_v18  ;;  %v3699_v18 = vld [vmem:[%s7345_s4 + $0x98] sm:$0xff] }
0x19f7   :  { %4252 = vmatpush1.msk.msra.mxu1 %vm730_vm1, %v3415_v61  ;;  %3510 = vmatprep.mubr.f32.mxu1 %v5884_v0  ;;  %v3685_v61 = vld [vmem:[%s7345_s4 + $0x28] sm:$0xff] }
0x19f8   :  { %4482 = vmatprep.subr.mxu1 %v5884_v0  ;;  %v4843_v5 = vpack.c.bf16 %v3687_v2, %v3685_v61 }
0x19fa   :  { %4253 = vmatmul.mubr.msk.f32.vlgmr.msra.gmra.mrb[14].mxu1 %vm726_vm2, %v1393_v20 }
0x19fb   :  { %4483 = vmatpush3.msk.msra.mxu1 %vm730_vm1, %v3416_v21  ;;  %4484 = vmatprep.mubr.msk.f32.mxu1 %vm5885_vm0, %v5884_v0  ;;  %v3696_v21 = vld [vmem:[%s7345_s4 + $0x80] sm:$0xff] }
0x19fc   :  { %4840 = vmatprep.subr.bf16.mxu1 %v4839_v3  ;;  %v4877_v3 = vpack.c.bf16 %v3718_v55, %v3716_v54  ;;  %v3651_v54 = vld [vmem:[%s7347_s0] sm:$0x7] }
0x19fe   :  { %4485 = vmatmul.mubr.msk.f32.vlgmr.msra.gmra.mrb[16].mxu1 %vm726_vm2, %v1393_v20  ;;  %v4855_v20 = vpack.c.bf16 %v3699_v18, %v3697_v17  ;;  %v3724_v17 = vld [vmem:[%s7345_s4 + $0x160] sm:$0xff]  ;;  %v3726_v18 = vld [vmem:[%s7345_s4 + $0x170] sm:$0xff] }
0x19ff   :  { %4842 = vmatpush1.bf16.msra.mxu1 %v4841_v4 }
0x1a00   :  { %4844 = vmatprep.subr.bf16.mxu1 %v4843_v5 }
0x1a03   :  { %4846 = vmatpush1.bf16.msra.mxu1 %v4845_v11 }
0x1a04   :  { %4848 = vmatprep.subr.bf16.mxu1 %v4847_v58  ;;  %v3721_v58 = vld [vmem:[%s7345_s4 + $0x148] sm:$0xff] }
0x1a05   :  { %v4879_v59 = vpack.c.bf16 %v3723_v10, %v3721_v58  ;;  %v3746_v58 = vld [vmem:[%s7345_s4 + $0x210] sm:$0xff]  ;;  %v3749_v10 = vld [vmem:[%s7345_s4 + $0x228] sm:$0xff] }
0x1a07   :  { %4850 = vmatpush1.bf16.msra.mxu1 %v4849_v22  ;;  %v4881_v22 = vpack.c.bf16 %v3722_v13, %v3720_v12 }
0x1a08   :  { %4852 = vmatprep.subr.bf16.mxu1 %v4851_v14  ;;  %v3725_v14 = vld [vmem:[%s7345_s4 + $0x168] sm:$0xff] }
0x1a09   :  { %v4883_v16 = vpack.c.bf16 %v3727_v15, %v3725_v14 }
0x1a0b   :  { %4854 = vmatpush1.bf16.msra.mxu1 %v4853_v19  ;;  %v4885_v19 = vpack.c.bf16 %v3726_v18, %v3724_v17  ;;  %v3748_v17 = vld [vmem:[%s7345_s4 + $0x220] sm:$0xff]  ;;  %v3750_v18 = vld [vmem:[%s7345_s4 + $0x230] sm:$0xff] }
0x1a0c   :  { %4856 = vmatprep.subr.bf16.mxu1 %v4855_v20  ;;  %v3729_v20 = vld [vmem:[%s7345_s4 + $0x188] sm:$0xff] }
0x1ac9   :  { %v2943_v25 = vpop.f32.mrb[12].mxu1 }
0x1aca   :  { %v2944_v26 = vadd.f32 %v2943_v25, %v2870_v24  ;;  %v2945_v27 = vpop.f32.mrb[13].mxu1  ;;  %v3698_v24 = vld [vmem:[%s7345_s4 + $0x90] sm:$0xff]  ;;  %v3701_v25 = vld [vmem:[%s7345_s4 + $0xa8] sm:$0xff] }
0x1acb   :  { %v4857_v27 = vpack.c.bf16 %v3698_v24, %v3696_v21  ;;  %v3731_v21 = vld [vmem:[%s7345_s4 + $0x198] sm:$0xff]  ;;  %v3728_v24 = vld [vmem:[%s7345_s4 + $0x180] sm:$0xff] }
0x1acc   :  { %4248 = vmatmul.mubr.msk.f32.vlgmr.msra.gmra.mrb[20].mxu0 %vm726_vm2, %v2944_v26 }
0x1acd   :  { %4478 = vmatpush3.msk.msra.mxu0 %vm730_vm1, %v3258_v28  ;;  %v3512_v31 = vpop.f32.mrb[14].mxu1  ;;  %4479 = vmatprep.mubr.msk.f32.mxu0 %vm5885_vm0, %v5884_v0  ;;  %vm3605_vm0 = vcmask 435200  }
0x1ace   :  { %v3514_v29 = vpop.f32.mrb[15].mxu1  ;;  %4915 = vmatprep.subr.bf16.mxu0 %v5886_v62  ;;  %v3513_v1 = vadd.f32 %v3512_v31, %v3422_v36  ;;  %v3700_v31 = vld [vmem:[%s7345_s4 + $0xa0] sm:$0xff]  ;;  %4858 = vmatpush1.bf16.msra.mxu1 %v4857_v27  ;;  %v3733_v27 = vld [vmem:[%s7345_s4 + $0x1a8] sm:$0xff] }
0x1acf   :  { %v3515_v45 = vadd.f32 %v3514_v29, %v3426_v41  ;;  %v3702_v29 = vld [vmem:[%s7345_s4 + $0xb0] sm:$0xff]  ;;  %v3704_v41 = vld [vmem:[%s7345_s4 + $0xc0] sm:$0xff] }
0x1ad0   :  { %4480 = vmatmul.mubr.msk.f32.vlgmr.msra.gmra.mrb[22].mxu0 %vm726_vm2, %v2944_v26  ;;  %v3703_v26 = vld [vmem:[%s7345_s4 + $0xb8] sm:$0xff]  ;;  %v4861_v35 = vpack.c.bf16 %v3702_v29, %v3700_v31 }
0x1ad1   :  { %v3583_v30 = vpop.f32.mrb[16].mxu1  ;;  %v4859_v28 = vpack.c.bf16 %v3703_v26, %v3701_v25  ;;  %v4887_v25 = vpack.c.bf16 %v3731_v21, %v3729_v20  ;;  %v3730_v26 = vld [vmem:[%s7345_s4 + $0x190] sm:$0xff]  ;;  %v3755_v20 = vld [vmem:[%s7345_s4 + $0x258] sm:$0xff]  ;;  %v4909_v21 = vpack.c.bf16 %v3750_v18, %v3748_v17 }
0x1ad2   :  { %v4486_v34 = vpop.f32.mrb[17].mxu1  ;;  %v3584_v48 = vadd.f32 %v3583_v30, %v3430_v43  ;;  %v3705_v30 = vld [vmem:[%s7345_s4 + $0xc8] sm:$0xff]  ;;  %v3711_v43 = vld [vmem:[%s7345_s4 + $0xf8] sm:$0xff]  ;;  %v4889_v31 = vpack.c.bf16 %v3730_v26, %v3728_v24  ;;  %v3752_v26 = vld [vmem:[%s7345_s4 + $0x240] sm:$0xff] }
0x1ad3   :  { %v3707_v34 = vld [vmem:[%s7345_s4 + $0xd8] sm:$0xff]  ;;  %4860 = vmatprep.subr.bf16.mxu1 %v4859_v28  ;;  %v3997_v17 = vld [vmem:[%s7349_s1 + $0x90] sm:$0xff] }
0x1ad4   :  { %v4863_v36 = vpack.c.bf16 %v3707_v34, %v3705_v30  ;;  %4862 = vmatpush1.bf16.msra.mxu1 %v4861_v35  ;;  %v3735_v28 = vld [vmem:[%s7345_s4 + $0x1b8] sm:$0xff]  ;;  %v3732_v30 = vld [vmem:[%s7345_s4 + $0x1a0] sm:$0xff]  ;;  %v3734_v34 = vld [vmem:[%s7345_s4 + $0x1b0] sm:$0xff] }
0x1ad5   :  { %v4891_v29 = vpack.c.bf16 %v3735_v28, %v3733_v27  ;;  %v3737_v35 = vld [vmem:[%s7345_s4 + $0x1c8] sm:$0xff]  ;;  %v3754_v27 = vld [vmem:[%s7345_s4 + $0x250] sm:$0xff] }
0x1ad6   :  { %4864 = vmatprep.subr.bf16.mxu1 %v4863_v36  ;;  %v3739_v36 = vld [vmem:[%s7345_s4 + $0x1d8] sm:$0xff]  ;;  %v4913_v28 = vpack.c.bf16 %v3754_v27, %v3752_v26  ;;  %v3959_v26 = vld [vmem:[%s7351_s19] sm:$0x3] }
0x1b9f   :  { %v3337_v42 = vpop.f32.mrb[20].mxu0 }
0x1ba0   :  { %v3590_v44 = vrot.slane %v3337_v42, %v6559_v38  ;;  %v3339_v63 = vpop.f32.mrb[21].mxu0  ;;  %v3706_v42 = vld [vmem:[%s7345_s4 + $0xd0] sm:$0xff] }
0x1ba1   :  { %v3594_v46 = vrot.slane %v3339_v63, %v6559_v38 }
0x1ba2   :  { %v7030_v47 = vadd.f32 %v3590_v44, %v3513_v1  ;;  %v3709_v1 = vld [vmem:[%s7345_s4 + $0xe8] sm:$0xff]  ;;  %v4865_v44 = vpack.c.bf16 %v3706_v42, %v3704_v41  ;;  %v4893_v41 = vpack.c.bf16 %v3734_v34, %v3732_v30  ;;  %v4895_v42 = vpack.c.bf16 %v3739_v36, %v3737_v35  ;;  %v3756_v34 = vld [vmem:[%s7345_s4 + $0x260] sm:$0x3f] }
0x1ba3   :  { %v7032_v23 = vadd.f32 %v3594_v46, %v3515_v45  ;;  %v3408_v37 = vpop.f32.mrb[22].mxu0  ;;  %v4867_v63 = vpack.c.bf16 %v3711_v43, %v3709_v1  ;;  %v3708_v45 = vld [vmem:[%s7345_s4 + $0xe0] sm:$0xff]  ;;  %v3710_v46 = vld [vmem:[%s7345_s4 + $0xf0] sm:$0xff] }
0x1ba4   :  { %v3598_v33 = vrot.slane %v3408_v37, %v6559_v38  ;;  %v4481_v7 = vpop.f32.mrb[23].mxu0  ;;  %v3602_v56 = vsel %vm1269_vm15, %v7030_v47, 0.0  ;;  %v3713_v37 = vld [vmem:[%s7345_s4 + $0x108] sm:$0xff]  ;;  %4866 = vmatpush1.bf16.msra.mxu1 %v4865_v44  ;;  %v3736_v1 = vld [vmem:[%s7345_s4 + $0x1c0] sm:$0xff]  ;;  %v3738_v43 = vld [vmem:[%s7345_s4 + $0x1d0] sm:$0xff] }
0x1ba5   :  { %v3603_v49 = vsel %vm1269_vm15, %v7032_v23, 0.0  ;;  %4868 = vmatprep.subr.bf16.mxu1 %v4867_v63  ;;  %v3741_v44 = vld [vmem:[%s7345_s4 + $0x1e8] sm:$0xff]  ;;  %v3743_v63 = vld [vmem:[%s7345_s4 + $0x1f8] sm:$0xff] }
0x1ba6   :  { %v7039_v32 = vadd.f32 %v3598_v33, %v3584_v48  ;;  %v3604_v50 = vadd.f32 %v3603_v49, %v3602_v56  ;;  %v3715_v48 = vld [vmem:[%s7345_s4 + $0x118] sm:$0xff]  ;;  %v4869_v33 = vpack.c.bf16 %v3710_v46, %v3708_v45  ;;  %v3712_v56 = vld [vmem:[%s7345_s4 + $0x100] sm:$0xff]  ;;  %v3714_v49 = vld [vmem:[%s7345_s4 + $0x110] sm:$0xff]  ;;  %v4897_v45 = vpack.c.bf16 %v3738_v43, %v3736_v1 }
0x1ba7   :  { %v4871_v7 = vpack.c.bf16 %v3715_v48, %v3713_v37  ;;  %v4899_v46 = vpack.c.bf16 %v3743_v63, %v3741_v44  ;;  %v3740_v37 = vld [vmem:[%s7345_s4 + $0x1e0] sm:$0xff]  ;;  %v3742_v48 = vld [vmem:[%s7345_s4 + $0x1f0] sm:$0xff] }
0x1ba8   :  { %v3606_v51 = vsel %vm3605_vm0, %v7039_v32, 0.0  ;;  %4870 = vmatpush1.bf16.msra.mxu1 %v4869_v33  ;;  %v4901_v33 = vpack.c.bf16 %v3742_v48, %v3740_v37  ;;  %v3980_v37 = vld [vmem:[%s7349_s1 + $0x8] sm:$0xff]  ;;  %v3981_v48 = vld [vmem:[%s7349_s1 + $0x10] sm:$0xff] }
0x1ba9   :  { %v3607_v52 = vadd.f32 %v3606_v51, %v3604_v50  ;;  %v3717_v50 = vld [vmem:[%s7345_s4 + $0x128] sm:$0xff]  ;;  %v3719_v51 = vld [vmem:[%s7345_s4 + $0x138] sm:$0xff]  ;;  %4872 = vmatprep.subr.bf16.mxu1 %v4871_v7 }
0x1baa   :  { %v4875_v53 = vpack.c.bf16 %v3719_v51, %v3717_v50  ;;  %v3745_v7 = vld [vmem:[%s7345_s4 + $0x208] sm:$0xff] }
0x1bab   :  { %3608 = vadd.xlane.f32.xlu0 %v3607_v52  ;;  %v4873_v52 = vpack.c.bf16 %v3714_v49, %v3712_v56  ;;  %v3747_v56 = vld [vmem:[%s7345_s4 + $0x218] sm:$0xff] }
0x1bac   :  { %v4903_v49 = vpack.c.bf16 %v3747_v56, %v3745_v7  ;;  %v3982_v7 = vld [vmem:[%s7349_s1 + $0x18] sm:$0xff] }
0x1bad   :  { %4874 = vmatpush1.bf16.msra.mxu1 %v4873_v52  ;;  %v4919_v56 = vpack.c.bf16 %v3982_v7, %v3981_v48 }
0x1bae   :  { %4876 = vmatprep.subr.bf16.mxu1 %v4875_v53  ;;  %v3631_v53 = vld [vmem:[%s7346_s29] sm:$0x7] }
0x1baf   :  { %v3640_v55 = vrot.slane %v3631_v53, %v6563_v40 }
0x1bb1   :  { %4878 = vmatpush1.bf16.msra.mxu1 %v4877_v3  ;;  %v3636_v3 = vrot.slane %v3631_v53, %v6559_v38 }
0x1bb2   :  { %4880 = vmatprep.subr.bf16.mxu1 %v4879_v59  ;;  %v3751_v59 = vld [vmem:[%s7345_s4 + $0x238] sm:$0xff] }
0x1bb5   :  { %4882 = vmatpush1.bf16.msra.mxu1 %v4881_v22 }
0x1bb6   :  { %4884 = vmatprep.subr.bf16.mxu1 %v4883_v16  ;;  %v4907_v16 = vpack.c.bf16 %v3751_v59, %v3749_v10  ;;  %v3990_v10 = vld [vmem:[%s7349_s1 + $0x58] sm:$0xff] }
0x1bb9   :  { %4886 = vmatpush1.bf16.msra.mxu1 %v4885_v19  ;;  %v3753_v19 = vld [vmem:[%s7345_s4 + $0x248] sm:$0xff] }
0x1bba   :  { %4888 = vmatprep.subr.bf16.mxu1 %v4887_v25  ;;  %v4911_v25 = vpack.c.bf16 %v3755_v20, %v3753_v19  ;;  %v3998_v19 = vld [vmem:[%s7349_s1 + $0x98] sm:$0x7] }
0x1bbb   :  { %v4943_v20 = vpack.c.bf16 %v3998_v19, %v3997_v17 }
0x1bbd   :  { %4890 = vmatpush1.bf16.msra.mxu1 %v4889_v31 }
0x1bbe   :  { %4892 = vmatprep.subr.bf16.mxu1 %v4891_v29  ;;  %v3757_v29 = vld [vmem:[%s7345_s4 + $0x268] sm:$0x3f] }
0x1bc1   :  { %4894 = vmatpush1.bf16.msra.mxu1 %v4893_v41 }
0x1bc2   :  { %4896 = vmatprep.subr.bf16.mxu1 %v4895_v42 }
0x1bc5   :  { %4898 = vmatpush1.bf16.msra.mxu1 %v4897_v45 }
0x1bc6   :  { %4900 = vmatprep.subr.bf16.mxu1 %v4899_v46  ;;  %v3979_v46 = vld [vmem:[%s7349_s1] sm:$0xff] }
0x1bc9   :  { %4902 = vmatpush1.bf16.msra.mxu1 %v4901_v33  ;;  %v4916_v33 = vpack.c.bf16 %v3980_v37, %v3979_v46 }
0x1bca   :  { %4904 = vmatprep.subr.bf16.mxu1 %v4903_v49  ;;  %v3983_v49 = vld [vmem:[%s7349_s1 + $0x20] sm:$0xff] }
0x1bcb   :  { %4917 = vmatpush1.bf16.msra.mxu0 %v4916_v33 }
0x1bcc   :  { %4918 = vmatprep.subr.bf16.mxu0 %v5886_v62 }
0x1bcf   :  { %4920 = vmatpush1.bf16.msra.mxu0 %v4919_v56 }
0x1bd0   :  { %4921 = vmatprep.subr.bf16.mxu0 %v5886_v62 }
0x1c38   :  { %v3609_v60 = vpop.xlane.xlu0 %3608 }
0x1c39   :  { %v3611_v61 = vmul.f32 0.0032258064, %v3609_v60 }
0x1c3b   :  { %v7084_v2 = vsub.f32 %v7030_v47, %v3611_v61  ;;  %v7087_v4 = vsub.f32 %v7032_v23, %v3611_v61  ;;  %v7090_v5 = vsub.f32 %v7039_v32, %v3611_v61 }
0x1c3d   :  { %v3615_v6 = vmul.f32 %v7084_v2, %v7084_v2  ;;  %v3616_v57 = vmul.f32 %v7087_v4, %v7087_v4  ;;  %v3617_v8 = vmul.f32 %v7090_v5, %v7090_v5 }
0x1c3f   :  { %v3618_v47 = vsel %vm1269_vm15, %v3615_v6, 0.0  ;;  %v3619_v9 = vsel %vm1269_vm15, %v3616_v57, 0.0  ;;  %v3621_v32 = vsel %vm3605_vm0, %v3617_v8, 0.0  ;;  %v3660_v6 = vrot.slane %v3651_v54, %v6563_v40 }
0x1c40   :  { %v3620_v23 = vadd.f32 %v3619_v9, %v3618_v47  ;;  %v3656_v8 = vrot.slane %v3651_v54, %v6559_v38 }
0x1c42   :  { %v3622_v11 = vadd.f32 %v3621_v32, %v3620_v23 }
0x1c44   :  { %3623 = vadd.xlane.f32.xlu1 %v3622_v11  ;;  %v3744_v11 = vld [vmem:[%s7345_s4 + $0x200] sm:$0xff] }
0x1c45   :  { %v4905_v13 = vpack.c.bf16 %v3746_v58, %v3744_v11  ;;  %v3989_v58 = vld [vmem:[%s7349_s1 + $0x50] sm:$0xff] }
0x1c46   :  { %v4931_v59 = vpack.c.bf16 %v3990_v10, %v3989_v58 }
0x1cd1   :  { %v3624_v50 = vpop.xlane.xlu1 %3623 }
0x1cd2   :  { %v3625_v51 = vmul.f32 0.0032258064, %v3624_v50  ;;  %v3984_v50 = vld [vmem:[%s7349_s1 + $0x28] sm:$0xff] }
0x1cd4   :  { %v3626_v52 = vadd.f32 1e-05, %v3625_v51  ;;  %v4922_v51 = vpack.c.bf16 %v3984_v50, %v3983_v49 }
0x1cd6   :  { %5104 = vrsqrt.f32 %v3626_v52  ;;  %v3985_v52 = vld [vmem:[%s7349_s1 + $0x30] sm:$0xff]  ;;  %4923 = vmatpush1.bf16.msra.mxu0 %v4922_v51 }
0x1cd7   :  { %4924 = vmatprep.subr.bf16.mxu0 %v5886_v62 }
0x1ce0   :  { %v5105_v60 = vpop.eup %5104 }
0x1ce1   :  { %v3629_v61 = vmul.f32 %v5105_v60, %v7087_v4  ;;  %v3628_v57 = vmul.f32 %v5105_v60, %v7084_v2  ;;  %v3644_v2 = vrot.slane %v3631_v53, %v7024_v39  ;;  %v3630_v22 = vmul.f32 %v5105_v60, %v7090_v5  ;;  %v3986_v53 = vld [vmem:[%s7349_s1 + $0x38] sm:$0xff] }
0x1ce2   :  { %v3664_v5 = vrot.slane %v3651_v54, %v7024_v39  ;;  %v3758_v39 = vld [vmem:[%s7348_s28] sm:$0x3]  ;;  %v4925_v54 = vpack.c.bf16 %v3986_v53, %v3985_v52 }
0x1ce3   :  { %v3649_v47 = vmul.f32 %v3640_v55, %v3629_v61  ;;  %v3648_v9 = vmul.f32 %v3636_v3, %v3628_v57  ;;  %v3650_v24 = vmul.f32 %v3644_v2, %v3630_v22  ;;  %v3763_v35 = vrot.slane %v3758_v39, %v6559_v38  ;;  %v3994_v22 = vld [vmem:[%s7349_s1 + $0x78] sm:$0xff] }
0x1ce4   :  { %v3767_v36 = vrot.slane %v3758_v39, %v6563_v40  ;;  %4926 = vmatpush1.bf16.msra.mxu0 %v4925_v54 }
0x1ce5   :  { %v3669_v23 = vadd.f32 %v3660_v6, %v3649_v47  ;;  %v3668_v32 = vadd.f32 %v3656_v8, %v3648_v9  ;;  %v3670_v31 = vadd.f32 %v3664_v5, %v3650_v24  ;;  %4927 = vmatprep.subr.bf16.mxu0 %v5886_v62 }
0x1ce7   :  { %vm3672_vm1 = vcmp.ge.f32.partialorder %v3669_v23, 0.0  ;;  %v3675_v4 = vmul.f32 0.01, %v3669_v23  ;;  %vm3671_vm2 = vcmp.ge.f32.partialorder %v3668_v32, 0.0  ;;  %v3674_v12 = vmul.f32 0.01, %v3668_v32 }
0x1ce8   :  { %v3676_v30 = vmul.f32 0.01, %v3670_v31  ;;  %vm3673_vm7 = vcmp.ge.f32.partialorder %v3670_v31, 0.0 }
0x1ce9   :  { %v3678_v14 = vsel %vm3672_vm1, %v3669_v23, %v3675_v4  ;;  %v3677_v15 = vsel %vm3671_vm2, %v3668_v32, %v3674_v12  ;;  %v3987_v23 = vld [vmem:[%s7349_s1 + $0x40] sm:$0xff]  ;;  %v3988_v32 = vld [vmem:[%s7349_s1 + $0x48] sm:$0xff] }
0x1cea   :  { %3845 = vmatprep.mubr.f32.mxu1 %v3678_v14  ;;  %v4928_v11 = vpack.c.bf16 %v3988_v32, %v3987_v23  ;;  %v3991_v4 = vld [vmem:[%s7349_s1 + $0x60] sm:$0xff]  ;;  %v3992_v12 = vld [vmem:[%s7349_s1 + $0x68] sm:$0xff] }
0x1ceb   :  { %3846 = vmatmul.mubr.f32.vlgmr.msra.gmra.mrb[18].mxu1 %v3677_v15  ;;  %v4934_v2 = vpack.c.bf16 %v3992_v12, %v3991_v4  ;;  %v3995_v15 = vld [vmem:[%s7349_s1 + $0x80] sm:$0xff] }
0x1cec   :  { %4906 = vmatpush1.bf16.msra.mxu1 %v4905_v13  ;;  %3916 = vmatprep.mubr.f32.mxu1 %v5884_v0  ;;  %v3679_v0 = vsel %vm3673_vm7, %v3670_v31, %v3676_v30  ;;  %v3993_v13 = vld [vmem:[%s7349_s1 + $0x70] sm:$0xff] }
0x1ced   :  { %4908 = vmatprep.subr.bf16.mxu1 %v4907_v16  ;;  %4929 = vmatpush1.bf16.msra.mxu0 %v4928_v11  ;;  %v4937_v14 = vpack.c.bf16 %v3994_v22, %v3993_v13  ;;  %v3996_v16 = vld [vmem:[%s7349_s1 + $0x88] sm:$0xff] }
0x1cee   :  { %4930 = vmatprep.subr.bf16.mxu0 %v5886_v62  ;;  %v4940_v18 = vpack.c.bf16 %v3996_v16, %v3995_v15 }
0x1cf0   :  { %4910 = vmatpush1.bf16.msra.mxu1 %v4909_v21 }
0x1cf1   :  { %4912 = vmatprep.subr.bf16.mxu1 %v4911_v25  ;;  %4932 = vmatpush1.bf16.msra.mxu0 %v4931_v59  ;;  %v3945_v25 = vld [vmem:[%s7350_s3] sm:$0x3] }
0x1cf2   :  { %4933 = vmatprep.subr.bf16.mxu0 %v5886_v62  ;;  %v3954_v27 = vrot.slane %v3945_v25, %v6563_v40 }
0x1cf4   :  { %4914 = vmatpush1.bf16.msra.mxu1 %v4913_v28  ;;  %v3950_v28 = vrot.slane %v3945_v25, %v6559_v38 }
0x1cf5   :  { %4256 = vmatprep.subr.msk.mxu1 %vm3774_vm6, %v3757_v29  ;;  %4935 = vmatpush1.bf16.msra.mxu0 %v4934_v2 }
0x1cf6   :  { %4936 = vmatprep.subr.bf16.mxu0 %v5886_v62 }
0x1cf8   :  { %4257 = vmatpush1.msk.msra.mxu1 %vm3774_vm6, %v3756_v34  ;;  %v3968_v34 = vrot.slane %v3959_v26, %v6563_v40 }
0x1cf9   :  { %4258 = vmatmul.mubr.msk.f32.vlgmr.msra.gmra.mrb[18].mxu1 %vm3770_vm8, %v3679_v0  ;;  %4938 = vmatpush1.bf16.msra.mxu0 %v4937_v14 }
0x1cfa   :  { %4939 = vmatprep.subr.bf16.mxu0 %v5886_v62 }
0x1cfd   :  { %4941 = vmatpush1.bf16.msra.mxu0 %v4940_v18 }
0x1cfe   :  { %4942 = vmatprep.subr.bf16.mxu0 %v5886_v62  ;;  %v3964_v62 = vrot.slane %v3959_v26, %v6559_v38 }
0x1dcc   :  { %v3918_v41 = vpop.f32.mrb[18].mxu1 }
0x1dcd   :  { %v4947_v42 = vadd.f32 %v3918_v41, %v3763_v35  ;;  %v3920_v1 = vpop.f32.mrb[19].mxu1 }
0x1dce   :  { %v4948_v43 = vadd.f32 %v3920_v1, %v3767_v36 }
0x1dcf   :  { %v3923_v44 = vsel %vm1269_vm15, %v4947_v42, 0.0 }
0x1dd0   :  { %v3925_v63 = vsel %vm3924_vm12, %v4948_v43, 0.0 }
0x1dd1   :  { %v3926_v45 = vadd.f32 %v3925_v63, %v3923_v44  ;;  %v4259_v44 = vld [vmem:[%s7352_s2] ss:$0 sm:$0xff] }
0x1dd3   :  { %3927 = vadd.xlane.f32.xlu0 %v3926_v45 }
0x1e60   :  { %v3928_v55 = vpop.xlane.xlu0 %3927 }
0x1e61   :  { %v3930_v3 = vmul.f32 0.006451613, %v3928_v55 }
0x1e63   :  { %v3931_v60 = vsub.f32 %v4947_v42, %v3930_v3  ;;  %v3932_v61 = vsub.f32 %v4948_v43, %v3930_v3 }
0x1e65   :  { %v3933_v6 = vmul.f32 %v3931_v60, %v3931_v60  ;;  %v3934_v57 = vmul.f32 %v3932_v61, %v3932_v61 }
0x1e67   :  { %v3935_v8 = vsel %vm1269_vm15, %v3933_v6, 0.0  ;;  %v3936_v47 = vsel %vm3924_vm12, %v3934_v57, 0.0  ;;  %vm4010_vm15 = vcmask 1042432  }
0x1e68   :  { %v3937_v9 = vadd.f32 %v3936_v47, %v3935_v8  ;;  %vm4944_vm13 = vmpackc.low %vm4010_vm15, %vm5887_vm10 }
0x1e69   :  { %4945 = vmatpush1.bf16.msk.msra.mxu0 %vm4944_vm13, %v4943_v20 }
0x1e6a   :  { %3938 = vadd.xlane.f32.xlu1 %v3937_v9 }
0x1ef7   :  { %v3939_v21 = vpop.xlane.xlu1 %3938 }
0x1ef8   :  { %v3940_v24 = vmul.f32 0.006451613, %v3939_v21 }
0x1efa   :  { %v3941_v5 = vadd.f32 1e-05, %v3940_v24 }
0x1efc   :  { %5106 = vrsqrt.f32 %v3941_v5 }
0x1f06   :  { %v5107_v31 = vpop.eup %5106 }
0x1f07   :  { %v3943_v29 = vmul.f32 %v5107_v31, %v3931_v60  ;;  %v3944_v30 = vmul.f32 %v5107_v31, %v3932_v61 }
0x1f09   :  { %v3958_v0 = vmul.f32 %v3954_v27, %v3944_v30  ;;  %v3957_v39 = vmul.f32 %v3950_v28, %v3943_v29 }
0x1f0b   :  { %v3972_v35 = vadd.f32 %v3968_v34, %v3958_v0  ;;  %v3971_v36 = vadd.f32 %v3964_v62, %v3957_v39 }
0x1f0d   :  { %vm3974_vm10 = vcmp.ge.f32.partialorder %v3972_v35, 0.0  ;;  %v3976_v41 = vmul.f32 0.01, %v3972_v35  ;;  %vm3973_vm14 = vcmp.ge.f32.partialorder %v3971_v36, 0.0  ;;  %v3975_v42 = vmul.f32 0.01, %v3971_v36 }
0x1f0f   :  { %v3978_v1 = vsel %vm3974_vm10, %v3972_v35, %v3976_v41  ;;  %v3977_v43 = vsel %vm3973_vm14, %v3971_v36, %v3975_v42 }
0x1f10   :  { %4261 = vmatprep.mubr.msk.f32.mxu0 %vm4006_vm11, %v3978_v1 }
0x1f11   :  { %4079 = vmatmul.mubr.f32.vlgmr.msra.gmra.mrb[24].mxu0 %v3977_v43 }
0x1fe4   :  { %v4080_v63 = vpop.f32.mrb[24].mxu0 }
0x1fe5   :  { %v4081_v45 = vadd.f32 %v4259_v44, %v4080_v63  ;;  %v4082_v46 = vpop.f32.mrb[25].mxu0 }
0x1fe7   :  { %5108 = vtanh.f32 %v4081_v45 }
0x1ff1   :  { %v5109_v40 = vpop.eup %5108 }
0x1ff2   :  { %vm4085_vm3 = vcmp.ne.f32.partialorder %v5109_v40, %v5109_v40 }
0x1ff3   :  { %v4086_v38 = vsel %vm4085_vm3, 0.0, %v5109_v40 }
0x1ff4   :  { %v4262_v37 = vclamps-f32 %v4086_v38, 3.4028235e+38 }
0x1ff6   :  { %4089 = vst.msk [vmem:[#allocation46] sm:$0x3] %vm918_vm5, %v4262_v37 }
0x1ff7   :  { %5737 = shalt.err (!%p5734_p4)
}
0x1ff8   :  { %s5738_s10 = scalar_lea.hbm %s6277_s24, 32 }
0x1ff9   :  { %p5739_p5 = scmp.ne.s32.totalorder %s6277_s24, %s5738_s10  ;;  %p5742_p6 = scmp.lt.u32.totalorder %s5738_s10, %s6277_s24 }
0x1ffb   :  { %p5744_p7 = pnand %p5742_p6, %p5739_p5 }
0x1ffd   :  { %5747 = shalt.err (!%p5744_p7)
}
0x1ffe   :  { %4099 = dma.vmem_to_hbm [thread:$0]  %s4097_s12, 32, %s6277_s24, [#allocation4]  }
0x1fff   :  { %5778 = dma.done.wait [#allocation4], 32  }
0x2000   :  { %5779 = vsyncadd [#allocation4], 4294967264 }
0x2001   :  { %4103 = vsyncpa [#allocation3], 1 }
0x2002   :  { %4104 = vsyncpa [#allocation6], 1 }
0x2003   :  { %4105 = vsyncpa [#allocation9], 1 }
0x2004   :  { %4106 = vsyncpa [#allocation12], 1 }
0x2005   :  { %4107 = vsyncpa [#allocation15], 1 }
0x2006   :  { %4108 = vsyncpa [#allocation18], 1 }
0x2007   :  { %4109 = vsyncpa [#allocation21], 1 }
0x2008   :  { %4110 = vsyncpa [#allocation24], 1 }
0x2009   :  { %4111 = vsyncpa [#allocation27], 1 }
0x200a   :  { %4112 = vsyncpa [#allocation30], 1 }
0x200b   :  { %4113 = vsyncpa [#allocation33], 1 }
0x200c   :  { %4114 = vsyncpa [#allocation36], 1 }
0x200d   :  { %4115 = vsyncpa [#allocation39], 1 }
0x200e   :  { %4116 = vsyncpa [#allocation42], 1 }
0x200f   :  { %4117 = vsyncpa [#allocation45], 1 }
0x2010   :  { %4118 = vsyncpa [#allocation4], 1 }

</bundles_post_ra>
